<compile_context>
chip_gen: v7x
topology: tpu7x:2x2x1
jax: 0.10.0
libtpu: 0.0.40
codegen_flags: <defaults>
</compile_context>

<pallas_src>
import functools

import jax
import jax.numpy as jnp
from jax.experimental import pallas as pl
from jax.experimental.pallas import tpu as pltpu


# --------------------------------------------------------------------------
# Fused encoder kernel: one grid step processes `bb` batch items x all views.
# --------------------------------------------------------------------------
def _encoder_kernel(x_ref, pos_ref, mask_ref,
                    w_in_ref, b_in_ref,
                    ln1_g_ref, ln1_b_ref, w_qkv_ref, b_qkv_ref,
                    w_ap_ref, b_ap_ref, ln2_g_ref, ln2_b_ref,
                    w_fc_ref, b_fc_ref, w_mp_ref, b_mp_ref,
                    lnf_g_ref, lnf_b_ref, w_head_ref, b_head_ref,
                    o_ref, *, n_layer, n_head, mxu_dtype, batched_heads):
    bb, T, V, D_in = x_ref.shape
    E = w_in_ref.shape[1]
    H = n_head
    hd = E // H

    def mm(a, w):
        # MXU matmul: weights already pre-cast to mxu_dtype on the host,
        # activations cast per use; always f32 accumulation.
        return jnp.dot(a.astype(mxu_dtype), w, preferred_element_type=jnp.float32)

    def layernorm(x, g, b):
        mu = jnp.mean(x, axis=-1, keepdims=True)
        var = jnp.mean((x - mu) ** 2, axis=-1, keepdims=True)
        return (x - mu) * jax.lax.rsqrt(var + 1e-5) * g + b

    def softmax_lastdim(s):
        m = jnp.max(s, axis=-1, keepdims=True)
        p = jnp.exp(s - m)
        return p * pl.reciprocal(jnp.sum(p, axis=-1, keepdims=True), approx=True)

    def gelu(x):
        # tanh-approximate GELU (minGPT NewGELU)
        # TODO(synk): switch to exact erf GELU if the reference uses nn.GELU.
        return 0.5 * x * (1.0 + jnp.tanh(0.7978845608028654 *
                                         (x + 0.044715 * x * x * x)))

    mask = mask_ref[...]                                       # (T, T) additive
    pos = pos_ref[...]                                         # (T, E)

    def encode(x2, n_seq, batched_attention):
        """Full encoder on rows ordered (seq, t); returns (n_seq*T, out_dim)."""
        rows = n_seq * T
        h = mm(x2, w_in_ref[...]) + b_in_ref[...]              # (rows, E)
        h = (h.reshape(n_seq, T, E) + pos[None]).reshape(rows, E)

        # NOTE: static unroll; fine for small n_layer.
        # TODO(synk): lax.fori_loop + dynamic layer indexing for large n_layer.
        for l in range(n_layer):
            # ------------------------- attention ---------------------------
            ln1 = layernorm(h, ln1_g_ref[l:l + 1, :], ln1_b_ref[l:l + 1, :])
            qkv = mm(ln1, w_qkv_ref[l]) + b_qkv_ref[l:l + 1, :]   # (rows, 3E); Q pre-scaled

            if batched_attention:
                # All heads in one batched einsum: (rows, E) -> (n_seq*H, T, hd)
                def split(t):
                    return (t.reshape(n_seq, T, H, hd)
                            .transpose(0, 2, 1, 3)
                            .reshape(n_seq * H, T, hd))
                q = split(qkv[:, :E])
                k = split(qkv[:, E:2 * E])
                v = split(qkv[:, 2 * E:])
                s = jnp.einsum("zqd,zkd->zqk",
                               q.astype(mxu_dtype), k.astype(mxu_dtype),
                               preferred_element_type=jnp.float32)
                p = softmax_lastdim(s + mask[None])
                o = jnp.einsum("zqk,zkd->zqd",
                               p.astype(mxu_dtype), v.astype(mxu_dtype),
                               preferred_element_type=jnp.float32)
                o = o.reshape(n_seq, H, T, hd)
                # head merge folded into the attention output projection
                proj = jnp.einsum("shqd,hde->sqe",
                                  o.astype(mxu_dtype), w_ap_ref[l],
                                  preferred_element_type=jnp.float32).reshape(rows, E)
            else:
                # Conservative per-head fallback (previously validated path).
                w_ap2 = w_ap_ref[l].reshape(E, E)
                head_outs = []
                for hh in range(H):
                    q = qkv[:, hh * hd:(hh + 1) * hd].reshape(n_seq, T, hd)
                    k = qkv[:, E + hh * hd:E + (hh + 1) * hd].reshape(n_seq, T, hd)
                    v = qkv[:, 2 * E + hh * hd:2 * E + (hh + 1) * hd].reshape(n_seq, T, hd)
                    s = jnp.einsum("bqd,bkd->bqk",
                                   q.astype(mxu_dtype), k.astype(mxu_dtype),
                                   preferred_element_type=jnp.float32)
                    p = softmax_lastdim(s + mask[None])
                    o = jnp.einsum("bqk,bkd->bqd",
                                   p.astype(mxu_dtype), v.astype(mxu_dtype),
                                   preferred_element_type=jnp.float32)
                    head_outs.append(o.reshape(rows, hd))
                proj = mm(jnp.concatenate(head_outs, axis=-1), w_ap2)

            h = proj + b_ap_ref[l:l + 1, :] + h                # residual

            # --------------------------- MLP --------------------------------
            ln2 = layernorm(h, ln2_g_ref[l:l + 1, :], ln2_b_ref[l:l + 1, :])
            fc = gelu(mm(ln2, w_fc_ref[l]) + b_fc_ref[l:l + 1, :])
            h = mm(fc, w_mp_ref[l]) + b_mp_ref[l:l + 1, :] + h  # residual

        hf = layernorm(h, lnf_g_ref[...], lnf_b_ref[...])
        return mm(hf, w_head_ref[...]) + b_head_ref[...]       # (rows, out_dim)

    x4 = x_ref[...]                                            # (bb, T, V, D_in)
    if batched_heads:
        # Fold views into the sequence batch with in-VMEM relayouts (no host
        # HBM transposes); one encoder pass covers every view.
        S = bb * V
        x2 = x4.transpose(0, 2, 1, 3).reshape(S * T, D_in)     # rows = (b, v, t)
        out = encode(x2, S, True)                              # (S*T, out_dim)
        out = out.reshape(bb, V, T, -1).transpose(0, 2, 1, 3)  # (bb, T, V, out)
        o_ref[...] = out.astype(o_ref.dtype)
    else:
        # Conservative fallback: encoder per view, same I/O layout.
        for vv in range(V):
            x2 = x4[:, :, vv, :].reshape(bb * T, D_in)
            out_v = encode(x2, bb, False)                      # (bb*T, out_dim)
            o_ref[:, :, vv, :] = out_v.reshape(bb, T, -1).astype(o_ref.dtype)


# --------------------------------------------------------------------------
# VMEM-budgeted block sizing
# --------------------------------------------------------------------------
def _choose_block(N, T, V, D_in, E, H, out_dim, weight_bytes):
    """Pick batch items per grid step under a conservative VMEM budget."""
    def step_bytes(bb):
        rows = bb * T * V
        z = bb * V * H
        act = rows * (D_in + 20 * E + 2 * out_dim) + 3 * z * T * T
        io = 2 * bb * T * V * (D_in + out_dim)     # double-buffered x/out blocks
        return 4 * (act + io)

    budget = 40 * 1024 * 1024                      # fits v7x's 64 MiB/TC with headroom
    divisors = [d for d in range(1, N + 1) if N % d == 0]
    bb = 1
    for d in divisors:
        if 2 * weight_bytes + step_bytes(d) <= budget:
            bb = d
    if bb == N and N > 1:
        # keep >=2 grid steps so megacore sharding / DMA pipelining can engage
        bb = max(d for d in divisors if d < N)
    vmem_limit = int(min(64 * 1024 * 1024,
                         max(32 * 1024 * 1024,
                             2 * weight_bytes + step_bytes(bb) + (4 << 20))))
    return bb, vmem_limit


# --------------------------------------------------------------------------
# Wrapper: one pallas_call for the whole module forward (all views).
# --------------------------------------------------------------------------
def inverse_dynamics_projector(obs_enc, params, mask, *, n_head,
                               mxu_dtype=jnp.bfloat16, seqs_per_block=None):
    """obs_enc: (N, T, V, input_dim) -> (N, T, V, output_dim), single kernel."""
    N, T, V, D_in = obs_enc.shape
    E = params["w_in"].shape[1]
    out_dim = params["w_head"].shape[1]
    n_layer = len(params["layers"])
    H = n_head
    assert E % H == 0, (E, H)
    hd = E // H
    scale = 1.0 / (hd ** 0.5)

    stk = lambda name: jnp.stack([lp[name] for lp in params["layers"]], axis=0)

    # Fold the 1/sqrt(head_dim) softmax scale into the Q projection.
    w_qkv = stk("w_qkv").at[:, :, :E].multiply(scale)          # (L, E, 3E)
    b_qkv = stk("b_qkv").at[:, :E].multiply(scale)             # (L, 3E), f32

    # Pre-cast matmul weights to the MXU dtype once on the host (bf16 on all
    # TPU generations); biases / LN params stay f32.
    w_in = params["w_in"].astype(mxu_dtype)
    w_qkv = w_qkv.astype(mxu_dtype)
    w_ap = stk("w_attn_proj").astype(mxu_dtype).reshape(n_layer, H, hd, E)
    w_fc = stk("w_fc").astype(mxu_dtype)
    w_mp = stk("w_mlp_proj").astype(mxu_dtype)
    w_head = params["w_head"].astype(mxu_dtype)

    consts = (
        params["pos_emb"][:T],                                 # pos   (T, E)
        mask,                                                  # mask  (T, T)
        w_in, params["b_in"].reshape(1, E),
        stk("ln1_g"), stk("ln1_b"),
        w_qkv, b_qkv,
        w_ap, stk("b_attn_proj"),
        stk("ln2_g"), stk("ln2_b"),
        w_fc, stk("b_fc"),
        w_mp, stk("b_mlp_proj"),
        params["lnf_g"].reshape(1, E), params["lnf_b"].reshape(1, E),
        w_head, params["b_head"].reshape(1, out_dim),
    )
    weight_bytes = sum(int(c.size) * c.dtype.itemsize for c in consts)

    bb_auto, vmem_limit = _choose_block(N, T, V, D_in, E, H, out_dim, weight_bytes)
    bb = bb_auto if seqs_per_block is None else seqs_per_block
    assert N % bb == 0, (N, bb)
    grid = (N // bb,)

    def run(batched_heads, single_buffer_consts):
        def cspec(shape):
            nd = len(shape)
            imap = lambda i: (0,) * nd
            if single_buffer_consts:
                # Constant-index operands only need one VMEM buffer.
                return pl.BlockSpec(shape, imap, pipeline_mode=pl.Buffered(1))
            return pl.BlockSpec(shape, imap)

        in_specs = [pl.BlockSpec((bb, T, V, D_in), lambda i: (i, 0, 0, 0))]
        in_specs += [cspec(c.shape) for c in consts]
        kernel = functools.partial(_encoder_kernel, n_layer=n_layer, n_head=H,
                                   mxu_dtype=mxu_dtype, batched_heads=batched_heads)
        call = pl.pallas_call(
            kernel,
            out_shape=jax.ShapeDtypeStruct((N, T, V, out_dim), jnp.float32),
            grid=grid,
            in_specs=in_specs,
            out_specs=pl.BlockSpec((bb, T, V, out_dim), lambda i: (i, 0, 0, 0)),
            compiler_params=pltpu.CompilerParams(
                dimension_semantics=("parallel",),
                vmem_limit_bytes=vmem_limit),
        )
        return jax.block_until_ready(call(obs_enc, *consts))

    # Progressive fallback for portability across jaxlib/Mosaic versions:
    #   1) batched heads + single-buffered constants (fastest)
    #   2) batched heads, default buffering
    #   3) per-view / per-head conservative kernel (previously validated ops)
    attempts = ((True, True), (True, False), (False, False))
    for idx, (bh, sb) in enumerate(attempts):
        try:
            return run(bh, sb)
        except Exception:  # noqa: BLE001 - deliberate portability fallback
            if idx == len(attempts) - 1:
                raise


# --------------------------------------------------------------------------
# Parameter construction (deterministic, synthetic) and mask
# --------------------------------------------------------------------------
def init_params(key, *, input_dim, n_layer, n_embd, block_size, output_dim):
    std = 0.02
    ks = iter(jax.random.split(key, 4 + 6 * n_layer))
    p = {
        "w_in": jax.random.normal(next(ks), (input_dim, n_embd), jnp.float32) * std,
        "b_in": jnp.zeros((n_embd,), jnp.float32),
        "pos_emb": jax.random.normal(next(ks), (block_size, n_embd), jnp.float32) * std,
        "lnf_g": jnp.ones((n_embd,), jnp.float32),
        "lnf_b": jnp.zeros((n_embd,), jnp.float32),
        "w_head": jax.random.normal(next(ks), (n_embd, output_dim), jnp.float32) * std,
        "b_head": jnp.zeros((output_dim,), jnp.float32),
        "layers": [],
    }
    _ = next(ks)
    for _l in range(n_layer):
        lp = {
            "ln1_g": jnp.ones((n_embd,), jnp.float32),
            "ln1_b": jnp.zeros((n_embd,), jnp.float32),
            "w_qkv": jax.random.normal(next(ks), (n_embd, 3 * n_embd), jnp.float32) * std,
            "b_qkv": jnp.zeros((3 * n_embd,), jnp.float32),
            "w_attn_proj": jax.random.normal(next(ks), (n_embd, n_embd), jnp.float32) * std,
            "b_attn_proj": jnp.zeros((n_embd,), jnp.float32),
            "ln2_g": jnp.ones((n_embd,), jnp.float32),
            "ln2_b": jnp.zeros((n_embd,), jnp.float32),
            "w_fc": jax.random.normal(next(ks), (n_embd, 4 * n_embd), jnp.float32) * std,
            "b_fc": jnp.zeros((4 * n_embd,), jnp.float32),
            "w_mlp_proj": jax.random.normal(next(ks), (4 * n_embd, n_embd), jnp.float32) * std,
            "b_mlp_proj": jnp.zeros((n_embd,), jnp.float32),
        }
        _ = next(ks)
        _ = next(ks)
        p["layers"].append(lp)
    return p


def build_mask(T, use_diagonal_mask, diagonal_size):
    i = jnp.arange(T)[:, None]
    j = jnp.arange(T)[None, :]
    allowed = j <= i
    if use_diagonal_mask:
        allowed = allowed & ((i - j) < diagonal_size)
    return jnp.where(allowed, 0.0, -1e9).astype(jnp.float32)


# --------------------------------------------------------------------------
# Pure-JAX reference (same math) for a sanity check
# --------------------------------------------------------------------------
def _reference_forward(obs_enc, params, mask, *, n_head):
    N, T, V, _ = obs_enc.shape
    E = params["w_in"].shape[1]
    hd = E // n_head
    scale = 1.0 / (hd ** 0.5)

    def ln(x, g, b):
        mu = x.mean(-1, keepdims=True)
        var = ((x - mu) ** 2).mean(-1, keepdims=True)
        return (x - mu) * jax.lax.rsqrt(var + 1e-5) * g + b

    def encoder(x):                                        # (N, T, input_dim)
        h = x @ params["w_in"] + params["b_in"] + params["pos_emb"][None, :T]
        for lp in params["layers"]:
            a = ln(h, lp["ln1_g"], lp["ln1_b"])
            qkv = a @ lp["w_qkv"] + lp["b_qkv"]
            q, k, v = jnp.split(qkv, 3, axis=-1)
            heads = lambda t: t.reshape(N, T, n_head, hd).transpose(0, 2, 1, 3)
            q, k, v = heads(q), heads(k), heads(v)
            s = jnp.einsum("bhqd,bhkd->bhqk", q, k) * scale + mask
            p = jax.nn.softmax(s, axis=-1)
            o = jnp.einsum("bhqk,bhkd->bhqd", p, v)
            o = o.transpose(0, 2, 1, 3).reshape(N, T, E)
            h = h + o @ lp["w_attn_proj"] + lp["b_attn_proj"]
            a2 = ln(h, lp["ln2_g"], lp["ln2_b"])
            fcx = a2 @ lp["w_fc"] + lp["b_fc"]
            fcx = 0.5 * fcx * (1.0 + jnp.tanh(0.7978845608028654 *
                                              (fcx + 0.044715 * fcx ** 3)))
            h = h + fcx @ lp["w_mlp_proj"] + lp["b_mlp_proj"]
        hf = ln(h, params["lnf_g"], params["lnf_b"])
        return hf @ params["w_head"] + params["b_head"]

    return jnp.stack([encoder(obs_enc[:, :, v]) for v in range(V)], axis=2)


# --------------------------------------------------------------------------
if __name__ == "__main__":
    # small config consistent with the module's __init__
    window_size = 8
    input_dim = 16
    n_layer = 2
    n_head = 4
    n_embd = 32
    output_dim = 8
    use_diagonal_mask = True
    diagonal_size = 3

    N, T, V = 2, window_size, 2

    key = jax.random.PRNGKey(0)
    k_x, k_p = jax.random.split(key)
    obs_enc = jax.random.normal(k_x, (N, T, V, input_dim), jnp.float32)
    params = init_params(
        k_p,
        input_dim=input_dim,
        n_layer=n_layer,
        n_embd=n_embd,
        block_size=window_size,
        output_dim=output_dim,
    )
    mask = build_mask(T, use_diagonal_mask, diagonal_size)

    out = inverse_dynamics_projector(obs_enc, params, mask, n_head=n_head)
    out = jax.block_until_ready(out)

    assert out.shape == (N, T, V, output_dim), out.shape
    assert jnp.all(jnp.isfinite(out))

    ref = _reference_forward(obs_enc, params, mask, n_head=n_head)
    ref = jax.block_until_ready(ref)
    # loose tolerance: bf16 MXU weights/inputs + approx softmax reciprocal
    assert bool(jnp.allclose(out, ref, atol=3e-2, rtol=3e-2)), (
        float(jnp.max(jnp.abs(out - ref))))

    print("KERNEL_OK")
</pallas_src>

<mosaic_0001>
module attributes {stable_mosaic.version = 11 : i64} {
  func.func @_encoder_kernel(%arg0: i32, %arg1: memref<1x8x2x16xf32, #tpu.memory_space<vmem>>, %arg2: memref<8x32xf32, #tpu.memory_space<vmem>>, %arg3: memref<8x8xf32, #tpu.memory_space<vmem>>, %arg4: memref<16x32xbf16, #tpu.memory_space<vmem>>, %arg5: memref<1x32xf32, #tpu.memory_space<vmem>>, %arg6: memref<2x32xf32, #tpu.memory_space<vmem>>, %arg7: memref<2x32xf32, #tpu.memory_space<vmem>>, %arg8: memref<2x32x96xbf16, #tpu.memory_space<vmem>>, %arg9: memref<2x96xf32, #tpu.memory_space<vmem>>, %arg10: memref<2x4x8x32xbf16, #tpu.memory_space<vmem>>, %arg11: memref<2x32xf32, #tpu.memory_space<vmem>>, %arg12: memref<2x32xf32, #tpu.memory_space<vmem>>, %arg13: memref<2x32xf32, #tpu.memory_space<vmem>>, %arg14: memref<2x32x128xbf16, #tpu.memory_space<vmem>>, %arg15: memref<2x128xf32, #tpu.memory_space<vmem>>, %arg16: memref<2x128x32xbf16, #tpu.memory_space<vmem>>, %arg17: memref<2x32xf32, #tpu.memory_space<vmem>>, %arg18: memref<1x32xf32, #tpu.memory_space<vmem>>, %arg19: memref<1x32xf32, #tpu.memory_space<vmem>>, %arg20: memref<32x8xbf16, #tpu.memory_space<vmem>>, %arg21: memref<1x8xf32, #tpu.memory_space<vmem>>, %arg22: memref<1x8x2x8xf32, #tpu.memory_space<vmem>>) attributes {dimension_semantics = [#tpu.dimension_semantics<parallel>], iteration_bounds = array<i64: 2>, scalar_prefetch = 0 : i64, scratch_operands = 0 : i64, tpu.core_type = #tpu.core_type<tc>, window_params = [{transform_indices = @transform_0, window_bounds = array<i64: 1, 8, 2, 16>}, {pipeline_mode = #tpu.pipeline_mode<synchronous>, transform_indices = @transform_1, window_bounds = array<i64: 8, 32>}, {pipeline_mode = #tpu.pipeline_mode<synchronous>, transform_indices = @transform_2, window_bounds = array<i64: 8, 8>}, {pipeline_mode = #tpu.pipeline_mode<synchronous>, transform_indices = @transform_3, window_bounds = array<i64: 16, 32>}, {pipeline_mode = #tpu.pipeline_mode<synchronous>, transform_indices = @transform_4, window_bounds = array<i64: 1, 32>}, {pipeline_mode = #tpu.pipeline_mode<synchronous>, transform_indices = @transform_5, window_bounds = array<i64: 2, 32>}, {pipeline_mode = #tpu.pipeline_mode<synchronous>, transform_indices = @transform_6, window_bounds = array<i64: 2, 32>}, {pipeline_mode = #tpu.pipeline_mode<synchronous>, transform_indices = @transform_7, window_bounds = array<i64: 2, 32, 96>}, {pipeline_mode = #tpu.pipeline_mode<synchronous>, transform_indices = @transform_8, window_bounds = array<i64: 2, 96>}, {pipeline_mode = #tpu.pipeline_mode<synchronous>, transform_indices = @transform_9, window_bounds = array<i64: 2, 4, 8, 32>}, {pipeline_mode = #tpu.pipeline_mode<synchronous>, transform_indices = @transform_10, window_bounds = array<i64: 2, 32>}, {pipeline_mode = #tpu.pipeline_mode<synchronous>, transform_indices = @transform_11, window_bounds = array<i64: 2, 32>}, {pipeline_mode = #tpu.pipeline_mode<synchronous>, transform_indices = @transform_12, window_bounds = array<i64: 2, 32>}, {pipeline_mode = #tpu.pipeline_mode<synchronous>, transform_indices = @transform_13, window_bounds = array<i64: 2, 32, 128>}, {pipeline_mode = #tpu.pipeline_mode<synchronous>, transform_indices = @transform_14, window_bounds = array<i64: 2, 128>}, {pipeline_mode = #tpu.pipeline_mode<synchronous>, transform_indices = @transform_15, window_bounds = array<i64: 2, 128, 32>}, {pipeline_mode = #tpu.pipeline_mode<synchronous>, transform_indices = @transform_16, window_bounds = array<i64: 2, 32>}, {pipeline_mode = #tpu.pipeline_mode<synchronous>, transform_indices = @transform_17, window_bounds = array<i64: 1, 32>}, {pipeline_mode = #tpu.pipeline_mode<synchronous>, transform_indices = @transform_18, window_bounds = array<i64: 1, 32>}, {pipeline_mode = #tpu.pipeline_mode<synchronous>, transform_indices = @transform_19, window_bounds = array<i64: 32, 8>}, {pipeline_mode = #tpu.pipeline_mode<synchronous>, transform_indices = @transform_20, window_bounds = array<i64: 1, 8>}, {transform_indices = @transform_21, window_bounds = array<i64: 1, 8, 2, 8>}]} {
    %c0 = arith.constant 0 : index
    %c0_0 = arith.constant 0 : index
    %0 = vector.load %arg3[%c0, %c0_0] : memref<8x8xf32, #tpu.memory_space<vmem>>, vector<8x8xf32>
    %c0_1 = arith.constant 0 : index
    %c0_2 = arith.constant 0 : index
    %1 = vector.load %arg2[%c0_1, %c0_2] : memref<8x32xf32, #tpu.memory_space<vmem>>, vector<8x32xf32>
    %c0_3 = arith.constant 0 : index
    %c0_4 = arith.constant 0 : index
    %c0_5 = arith.constant 0 : index
    %c0_6 = arith.constant 0 : index
    %2 = vector.load %arg1[%c0_3, %c0_4, %c0_5, %c0_6] : memref<1x8x2x16xf32, #tpu.memory_space<vmem>>, vector<1x8x2x16xf32>
    %3 = vector.extract_strided_slice %2 {offsets = [0, 0, 0, 0], sizes = [1, 8, 1, 16], strides = [1, 1, 1, 1]} : vector<1x8x2x16xf32> to vector<1x8x1x16xf32>
    %4 = vector.shape_cast %3 : vector<1x8x1x16xf32> to vector<1x8x16xf32>
    %5 = vector.shape_cast %4 : vector<1x8x16xf32> to vector<8x16xf32>
    %c0_7 = arith.constant 0 : index
    %c0_8 = arith.constant 0 : index
    %6 = vector.load %arg4[%c0_7, %c0_8] : memref<16x32xbf16, #tpu.memory_space<vmem>>, vector<16x32xbf16>
    %7 = arith.truncf %5 : vector<8x16xf32> to vector<8x16xbf16>
    %cst = arith.constant dense<0.000000e+00> : vector<8x32xf32>
    %8 = tpu.matmul %7, %6, %cst {dimension_numbers = #tpu.dot_dimension_numbers<[1], [0], [0], [1], [0, 0, 1, 1], [], []>} : vector<8x16xbf16>, vector<16x32xbf16>, vector<8x32xf32> -> vector<8x32xf32>
    %c0_9 = arith.constant 0 : index
    %c0_10 = arith.constant 0 : index
    %9 = vector.load %arg5[%c0_9, %c0_10] : memref<1x32xf32, #tpu.memory_space<vmem>>, vector<1x32xf32>
    %10 = vector.broadcast %9 : vector<1x32xf32> to vector<8x32xf32>
    %11 = arith.addf %8, %10 : vector<8x32xf32>
    %12 = vector.shape_cast %11 : vector<8x32xf32> to vector<1x8x32xf32>
    %13 = vector.shape_cast %1 : vector<8x32xf32> to vector<1x8x32xf32>
    %14 = arith.addf %12, %13 : vector<1x8x32xf32>
    %15 = vector.shape_cast %14 : vector<1x8x32xf32> to vector<8x32xf32>
    %c0_11 = arith.constant 0 : index
    %c0_12 = arith.constant 0 : index
    %16 = vector.load %arg6[%c0_11, %c0_12] : memref<2x32xf32, #tpu.memory_space<vmem>>, vector<1x32xf32>
    %c0_13 = arith.constant 0 : index
    %c0_14 = arith.constant 0 : index
    %17 = vector.load %arg7[%c0_13, %c0_14] : memref<2x32xf32, #tpu.memory_space<vmem>>, vector<1x32xf32>
    %cst_15 = arith.constant dense<0.000000e+00> : vector<8xf32>
    %18 = vector.multi_reduction <add>, %15, %cst_15 [1] : vector<8x32xf32> to vector<8xf32>
    %19 = vector.shape_cast %18 : vector<8xf32> to vector<8x1xf32>
    %cst_16 = arith.constant 3.200000e+01 : f32
    %20 = vector.broadcast %cst_16 : f32 to vector<8x1xf32>
    %21 = arith.divf %19, %20 : vector<8x1xf32>
    %22 = vector.broadcast %21 : vector<8x1xf32> to vector<8x32xf32>
    %23 = arith.subf %15, %22 : vector<8x32xf32>
    %24 = arith.mulf %23, %23 : vector<8x32xf32>
    %cst_17 = arith.constant dense<0.000000e+00> : vector<8xf32>
    %25 = vector.multi_reduction <add>, %24, %cst_17 [1] : vector<8x32xf32> to vector<8xf32>
    %26 = vector.shape_cast %25 : vector<8xf32> to vector<8x1xf32>
    %cst_18 = arith.constant 3.200000e+01 : f32
    %27 = vector.broadcast %cst_18 : f32 to vector<8x1xf32>
    %28 = arith.divf %26, %27 : vector<8x1xf32>
    %29 = vector.broadcast %21 : vector<8x1xf32> to vector<8x32xf32>
    %30 = arith.subf %15, %29 : vector<8x32xf32>
    %cst_19 = arith.constant 9.99999974E-6 : f32
    %31 = vector.broadcast %cst_19 : f32 to vector<8x1xf32>
    %32 = arith.addf %28, %31 : vector<8x1xf32>
    %33 = math.rsqrt %32 : vector<8x1xf32>
    %34 = vector.broadcast %33 : vector<8x1xf32> to vector<8x32xf32>
    %35 = arith.mulf %30, %34 : vector<8x32xf32>
    %36 = vector.broadcast %16 : vector<1x32xf32> to vector<8x32xf32>
    %37 = arith.mulf %35, %36 : vector<8x32xf32>
    %38 = vector.broadcast %17 : vector<1x32xf32> to vector<8x32xf32>
    %39 = arith.addf %37, %38 : vector<8x32xf32>
    %c0_20 = arith.constant 0 : index
    %c0_21 = arith.constant 0 : index
    %c0_22 = arith.constant 0 : index
    %40 = vector.load %arg8[%c0_20, %c0_21, %c0_22] : memref<2x32x96xbf16, #tpu.memory_space<vmem>>, vector<1x32x96xbf16>
    %41 = vector.shape_cast %40 : vector<1x32x96xbf16> to vector<32x96xbf16>
    %42 = arith.truncf %39 : vector<8x32xf32> to vector<8x32xbf16>
    %cst_23 = arith.constant dense<0.000000e+00> : vector<8x96xf32>
    %43 = tpu.matmul %42, %41, %cst_23 {dimension_numbers = #tpu.dot_dimension_numbers<[1], [0], [0], [1], [0, 0, 1, 1], [], []>} : vector<8x32xbf16>, vector<32x96xbf16>, vector<8x96xf32> -> vector<8x96xf32>
    %c0_24 = arith.constant 0 : index
    %c0_25 = arith.constant 0 : index
    %44 = vector.load %arg9[%c0_24, %c0_25] : memref<2x96xf32, #tpu.memory_space<vmem>>, vector<1x96xf32>
    %45 = vector.broadcast %44 : vector<1x96xf32> to vector<8x96xf32>
    %46 = arith.addf %43, %45 : vector<8x96xf32>
    %c0_26 = arith.constant 0 : index
    %c0_27 = arith.constant 0 : index
    %c0_28 = arith.constant 0 : index
    %c0_29 = arith.constant 0 : index
    %47 = vector.load %arg10[%c0_26, %c0_27, %c0_28, %c0_29] : memref<2x4x8x32xbf16, #tpu.memory_space<vmem>>, vector<1x4x8x32xbf16>
    %48 = vector.shape_cast %47 : vector<1x4x8x32xbf16> to vector<4x8x32xbf16>
    %49 = vector.shape_cast %48 : vector<4x8x32xbf16> to vector<32x32xbf16>
    %50 = vector.extract_strided_slice %46 {offsets = [0, 0], sizes = [8, 8], strides = [1, 1]} : vector<8x96xf32> to vector<8x8xf32>
    %51 = vector.shape_cast %50 : vector<8x8xf32> to vector<1x8x8xf32>
    %52 = vector.extract_strided_slice %46 {offsets = [0, 32], sizes = [8, 8], strides = [1, 1]} : vector<8x96xf32> to vector<8x8xf32>
    %53 = vector.shape_cast %52 : vector<8x8xf32> to vector<1x8x8xf32>
    %54 = vector.extract_strided_slice %46 {offsets = [0, 64], sizes = [8, 8], strides = [1, 1]} : vector<8x96xf32> to vector<8x8xf32>
    %55 = vector.shape_cast %54 : vector<8x8xf32> to vector<1x8x8xf32>
    %56 = arith.truncf %51 : vector<1x8x8xf32> to vector<1x8x8xbf16>
    %57 = arith.truncf %53 : vector<1x8x8xf32> to vector<1x8x8xbf16>
    "tpu.trace_start"() <{level = 10 : i32, message = "bqd,bkd->bqk"}> : () -> ()
    %cst_30 = arith.constant dense<0.000000e+00> : vector<1x8x8xf32>
    %58 = tpu.matmul %56, %57, %cst_30 {dimension_numbers = #tpu.dot_dimension_numbers<[2], [2], [1], [1], [0, 0, 0, 1, 1, 1], [0], [0]>} : vector<1x8x8xbf16>, vector<1x8x8xbf16>, vector<1x8x8xf32> -> vector<1x8x8xf32>
    "tpu.trace_stop"() : () -> ()
    %59 = vector.shape_cast %0 : vector<8x8xf32> to vector<1x8x8xf32>
    %60 = arith.addf %58, %59 : vector<1x8x8xf32>
    %cst_31 = arith.constant dense<0xFF800000> : vector<1x8xf32>
    %61 = vector.multi_reduction <maximumf>, %60, %cst_31 [2] : vector<1x8x8xf32> to vector<1x8xf32>
    %62 = vector.shape_cast %61 : vector<1x8xf32> to vector<1x8x1xf32>
    %63 = vector.broadcast %62 : vector<1x8x1xf32> to vector<1x8x8xf32>
    %64 = arith.subf %60, %63 : vector<1x8x8xf32>
    %65 = math.exp %64 : vector<1x8x8xf32>
    %cst_32 = arith.constant dense<0.000000e+00> : vector<1x8xf32>
    %66 = vector.multi_reduction <add>, %65, %cst_32 [2] : vector<1x8x8xf32> to vector<1x8xf32>
    %67 = vector.shape_cast %66 : vector<1x8xf32> to vector<1x8x1xf32>
    %68 = tpu.reciprocal %67 {approx = true} : vector<1x8x1xf32> -> vector<1x8x1xf32>
    %69 = vector.broadcast %68 : vector<1x8x1xf32> to vector<1x8x8xf32>
    %70 = arith.mulf %65, %69 : vector<1x8x8xf32>
    %71 = arith.truncf %70 : vector<1x8x8xf32> to vector<1x8x8xbf16>
    %72 = arith.truncf %55 : vector<1x8x8xf32> to vector<1x8x8xbf16>
    "tpu.trace_start"() <{level = 10 : i32, message = "bqk,bkd->bqd"}> : () -> ()
    %cst_33 = arith.constant dense<0.000000e+00> : vector<1x8x8xf32>
    %73 = tpu.matmul %71, %72, %cst_33 {dimension_numbers = #tpu.dot_dimension_numbers<[2], [1], [1], [2], [0, 0, 0, 1, 1, 2], [0], [0]>} : vector<1x8x8xbf16>, vector<1x8x8xbf16>, vector<1x8x8xf32> -> vector<1x8x8xf32>
    "tpu.trace_stop"() : () -> ()
    %74 = vector.shape_cast %73 : vector<1x8x8xf32> to vector<8x8xf32>
    %75 = vector.extract_strided_slice %46 {offsets = [0, 8], sizes = [8, 8], strides = [1, 1]} : vector<8x96xf32> to vector<8x8xf32>
    %76 = vector.shape_cast %75 : vector<8x8xf32> to vector<1x8x8xf32>
    %77 = vector.extract_strided_slice %46 {offsets = [0, 40], sizes = [8, 8], strides = [1, 1]} : vector<8x96xf32> to vector<8x8xf32>
    %78 = vector.shape_cast %77 : vector<8x8xf32> to vector<1x8x8xf32>
    %79 = vector.extract_strided_slice %46 {offsets = [0, 72], sizes = [8, 8], strides = [1, 1]} : vector<8x96xf32> to vector<8x8xf32>
    %80 = vector.shape_cast %79 : vector<8x8xf32> to vector<1x8x8xf32>
    %81 = arith.truncf %76 : vector<1x8x8xf32> to vector<1x8x8xbf16>
    %82 = arith.truncf %78 : vector<1x8x8xf32> to vector<1x8x8xbf16>
    "tpu.trace_start"() <{level = 10 : i32, message = "bqd,bkd->bqk"}> : () -> ()
    %cst_34 = arith.constant dense<0.000000e+00> : vector<1x8x8xf32>
    %83 = tpu.matmul %81, %82, %cst_34 {dimension_numbers = #tpu.dot_dimension_numbers<[2], [2], [1], [1], [0, 0, 0, 1, 1, 1], [0], [0]>} : vector<1x8x8xbf16>, vector<1x8x8xbf16>, vector<1x8x8xf32> -> vector<1x8x8xf32>
    "tpu.trace_stop"() : () -> ()
    %84 = vector.shape_cast %0 : vector<8x8xf32> to vector<1x8x8xf32>
    %85 = arith.addf %83, %84 : vector<1x8x8xf32>
    %cst_35 = arith.constant dense<0xFF800000> : vector<1x8xf32>
    %86 = vector.multi_reduction <maximumf>, %85, %cst_35 [2] : vector<1x8x8xf32> to vector<1x8xf32>
    %87 = vector.shape_cast %86 : vector<1x8xf32> to vector<1x8x1xf32>
    %88 = vector.broadcast %87 : vector<1x8x1xf32> to vector<1x8x8xf32>
    %89 = arith.subf %85, %88 : vector<1x8x8xf32>
    %90 = math.exp %89 : vector<1x8x8xf32>
    %cst_36 = arith.constant dense<0.000000e+00> : vector<1x8xf32>
    %91 = vector.multi_reduction <add>, %90, %cst_36 [2] : vector<1x8x8xf32> to vector<1x8xf32>
    %92 = vector.shape_cast %91 : vector<1x8xf32> to vector<1x8x1xf32>
    %93 = tpu.reciprocal %92 {approx = true} : vector<1x8x1xf32> -> vector<1x8x1xf32>
    %94 = vector.broadcast %93 : vector<1x8x1xf32> to vector<1x8x8xf32>
    %95 = arith.mulf %90, %94 : vector<1x8x8xf32>
    %96 = arith.truncf %95 : vector<1x8x8xf32> to vector<1x8x8xbf16>
    %97 = arith.truncf %80 : vector<1x8x8xf32> to vector<1x8x8xbf16>
    "tpu.trace_start"() <{level = 10 : i32, message = "bqk,bkd->bqd"}> : () -> ()
    %cst_37 = arith.constant dense<0.000000e+00> : vector<1x8x8xf32>
    %98 = tpu.matmul %96, %97, %cst_37 {dimension_numbers = #tpu.dot_dimension_numbers<[2], [1], [1], [2], [0, 0, 0, 1, 1, 2], [0], [0]>} : vector<1x8x8xbf16>, vector<1x8x8xbf16>, vector<1x8x8xf32> -> vector<1x8x8xf32>
    "tpu.trace_stop"() : () -> ()
    %99 = vector.shape_cast %98 : vector<1x8x8xf32> to vector<8x8xf32>
    %100 = vector.extract_strided_slice %46 {offsets = [0, 16], sizes = [8, 8], strides = [1, 1]} : vector<8x96xf32> to vector<8x8xf32>
    %101 = vector.shape_cast %100 : vector<8x8xf32> to vector<1x8x8xf32>
    %102 = vector.extract_strided_slice %46 {offsets = [0, 48], sizes = [8, 8], strides = [1, 1]} : vector<8x96xf32> to vector<8x8xf32>
    %103 = vector.shape_cast %102 : vector<8x8xf32> to vector<1x8x8xf32>
    %104 = vector.extract_strided_slice %46 {offsets = [0, 80], sizes = [8, 8], strides = [1, 1]} : vector<8x96xf32> to vector<8x8xf32>
    %105 = vector.shape_cast %104 : vector<8x8xf32> to vector<1x8x8xf32>
    %106 = arith.truncf %101 : vector<1x8x8xf32> to vector<1x8x8xbf16>
    %107 = arith.truncf %103 : vector<1x8x8xf32> to vector<1x8x8xbf16>
    "tpu.trace_start"() <{level = 10 : i32, message = "bqd,bkd->bqk"}> : () -> ()
    %cst_38 = arith.constant dense<0.000000e+00> : vector<1x8x8xf32>
    %108 = tpu.matmul %106, %107, %cst_38 {dimension_numbers = #tpu.dot_dimension_numbers<[2], [2], [1], [1], [0, 0, 0, 1, 1, 1], [0], [0]>} : vector<1x8x8xbf16>, vector<1x8x8xbf16>, vector<1x8x8xf32> -> vector<1x8x8xf32>
    "tpu.trace_stop"() : () -> ()
    %109 = vector.shape_cast %0 : vector<8x8xf32> to vector<1x8x8xf32>
    %110 = arith.addf %108, %109 : vector<1x8x8xf32>
    %cst_39 = arith.constant dense<0xFF800000> : vector<1x8xf32>
    %111 = vector.multi_reduction <maximumf>, %110, %cst_39 [2] : vector<1x8x8xf32> to vector<1x8xf32>
    %112 = vector.shape_cast %111 : vector<1x8xf32> to vector<1x8x1xf32>
    %113 = vector.broadcast %112 : vector<1x8x1xf32> to vector<1x8x8xf32>
    %114 = arith.subf %110, %113 : vector<1x8x8xf32>
    %115 = math.exp %114 : vector<1x8x8xf32>
    %cst_40 = arith.constant dense<0.000000e+00> : vector<1x8xf32>
    %116 = vector.multi_reduction <add>, %115, %cst_40 [2] : vector<1x8x8xf32> to vector<1x8xf32>
    %117 = vector.shape_cast %116 : vector<1x8xf32> to vector<1x8x1xf32>
    %118 = tpu.reciprocal %117 {approx = true} : vector<1x8x1xf32> -> vector<1x8x1xf32>
    %119 = vector.broadcast %118 : vector<1x8x1xf32> to vector<1x8x8xf32>
    %120 = arith.mulf %115, %119 : vector<1x8x8xf32>
    %121 = arith.truncf %120 : vector<1x8x8xf32> to vector<1x8x8xbf16>
    %122 = arith.truncf %105 : vector<1x8x8xf32> to vector<1x8x8xbf16>
    "tpu.trace_start"() <{level = 10 : i32, message = "bqk,bkd->bqd"}> : () -> ()
    %cst_41 = arith.constant dense<0.000000e+00> : vector<1x8x8xf32>
    %123 = tpu.matmul %121, %122, %cst_41 {dimension_numbers = #tpu.dot_dimension_numbers<[2], [1], [1], [2], [0, 0, 0, 1, 1, 2], [0], [0]>} : vector<1x8x8xbf16>, vector<1x8x8xbf16>, vector<1x8x8xf32> -> vector<1x8x8xf32>
    "tpu.trace_stop"() : () -> ()
    %124 = vector.shape_cast %123 : vector<1x8x8xf32> to vector<8x8xf32>
    %125 = vector.extract_strided_slice %46 {offsets = [0, 24], sizes = [8, 8], strides = [1, 1]} : vector<8x96xf32> to vector<8x8xf32>
    %126 = vector.shape_cast %125 : vector<8x8xf32> to vector<1x8x8xf32>
    %127 = vector.extract_strided_slice %46 {offsets = [0, 56], sizes = [8, 8], strides = [1, 1]} : vector<8x96xf32> to vector<8x8xf32>
    %128 = vector.shape_cast %127 : vector<8x8xf32> to vector<1x8x8xf32>
    %129 = vector.extract_strided_slice %46 {offsets = [0, 88], sizes = [8, 8], strides = [1, 1]} : vector<8x96xf32> to vector<8x8xf32>
    %130 = vector.shape_cast %129 : vector<8x8xf32> to vector<1x8x8xf32>
    %131 = arith.truncf %126 : vector<1x8x8xf32> to vector<1x8x8xbf16>
    %132 = arith.truncf %128 : vector<1x8x8xf32> to vector<1x8x8xbf16>
    "tpu.trace_start"() <{level = 10 : i32, message = "bqd,bkd->bqk"}> : () -> ()
    %cst_42 = arith.constant dense<0.000000e+00> : vector<1x8x8xf32>
    %133 = tpu.matmul %131, %132, %cst_42 {dimension_numbers = #tpu.dot_dimension_numbers<[2], [2], [1], [1], [0, 0, 0, 1, 1, 1], [0], [0]>} : vector<1x8x8xbf16>, vector<1x8x8xbf16>, vector<1x8x8xf32> -> vector<1x8x8xf32>
    "tpu.trace_stop"() : () -> ()
    %134 = vector.shape_cast %0 : vector<8x8xf32> to vector<1x8x8xf32>
    %135 = arith.addf %133, %134 : vector<1x8x8xf32>
    %cst_43 = arith.constant dense<0xFF800000> : vector<1x8xf32>
    %136 = vector.multi_reduction <maximumf>, %135, %cst_43 [2] : vector<1x8x8xf32> to vector<1x8xf32>
    %137 = vector.shape_cast %136 : vector<1x8xf32> to vector<1x8x1xf32>
    %138 = vector.broadcast %137 : vector<1x8x1xf32> to vector<1x8x8xf32>
    %139 = arith.subf %135, %138 : vector<1x8x8xf32>
    %140 = math.exp %139 : vector<1x8x8xf32>
    %cst_44 = arith.constant dense<0.000000e+00> : vector<1x8xf32>
    %141 = vector.multi_reduction <add>, %140, %cst_44 [2] : vector<1x8x8xf32> to vector<1x8xf32>
    %142 = vector.shape_cast %141 : vector<1x8xf32> to vector<1x8x1xf32>
    %143 = tpu.reciprocal %142 {approx = true} : vector<1x8x1xf32> -> vector<1x8x1xf32>
    %144 = vector.broadcast %143 : vector<1x8x1xf32> to vector<1x8x8xf32>
    %145 = arith.mulf %140, %144 : vector<1x8x8xf32>
    %146 = arith.truncf %145 : vector<1x8x8xf32> to vector<1x8x8xbf16>
    %147 = arith.truncf %130 : vector<1x8x8xf32> to vector<1x8x8xbf16>
    "tpu.trace_start"() <{level = 10 : i32, message = "bqk,bkd->bqd"}> : () -> ()
    %cst_45 = arith.constant dense<0.000000e+00> : vector<1x8x8xf32>
    %148 = tpu.matmul %146, %147, %cst_45 {dimension_numbers = #tpu.dot_dimension_numbers<[2], [1], [1], [2], [0, 0, 0, 1, 1, 2], [0], [0]>} : vector<1x8x8xbf16>, vector<1x8x8xbf16>, vector<1x8x8xf32> -> vector<1x8x8xf32>
    "tpu.trace_stop"() : () -> ()
    %149 = vector.shape_cast %148 : vector<1x8x8xf32> to vector<8x8xf32>
    %150 = tpu.concatenate %74, %99, %124, %149 in 1 : vector<8x8xf32>, vector<8x8xf32>, vector<8x8xf32>, vector<8x8xf32> -> vector<8x32xf32>
    %151 = arith.truncf %150 : vector<8x32xf32> to vector<8x32xbf16>
    %cst_46 = arith.constant dense<0.000000e+00> : vector<8x32xf32>
    %152 = tpu.matmul %151, %49, %cst_46 {dimension_numbers = #tpu.dot_dimension_numbers<[1], [0], [0], [1], [0, 0, 1, 1], [], []>} : vector<8x32xbf16>, vector<32x32xbf16>, vector<8x32xf32> -> vector<8x32xf32>
    %c0_47 = arith.constant 0 : index
    %c0_48 = arith.constant 0 : index
    %153 = vector.load %arg11[%c0_47, %c0_48] : memref<2x32xf32, #tpu.memory_space<vmem>>, vector<1x32xf32>
    %154 = vector.broadcast %153 : vector<1x32xf32> to vector<8x32xf32>
    %155 = arith.addf %152, %154 : vector<8x32xf32>
    %156 = arith.addf %155, %15 : vector<8x32xf32>
    %c0_49 = arith.constant 0 : index
    %c0_50 = arith.constant 0 : index
    %157 = vector.load %arg12[%c0_49, %c0_50] : memref<2x32xf32, #tpu.memory_space<vmem>>, vector<1x32xf32>
    %c0_51 = arith.constant 0 : index
    %c0_52 = arith.constant 0 : index
    %158 = vector.load %arg13[%c0_51, %c0_52] : memref<2x32xf32, #tpu.memory_space<vmem>>, vector<1x32xf32>
    %cst_53 = arith.constant dense<0.000000e+00> : vector<8xf32>
    %159 = vector.multi_reduction <add>, %156, %cst_53 [1] : vector<8x32xf32> to vector<8xf32>
    %160 = vector.shape_cast %159 : vector<8xf32> to vector<8x1xf32>
    %cst_54 = arith.constant 3.200000e+01 : f32
    %161 = vector.broadcast %cst_54 : f32 to vector<8x1xf32>
    %162 = arith.divf %160, %161 : vector<8x1xf32>
    %163 = vector.broadcast %162 : vector<8x1xf32> to vector<8x32xf32>
    %164 = arith.subf %156, %163 : vector<8x32xf32>
    %165 = arith.mulf %164, %164 : vector<8x32xf32>
    %cst_55 = arith.constant dense<0.000000e+00> : vector<8xf32>
    %166 = vector.multi_reduction <add>, %165, %cst_55 [1] : vector<8x32xf32> to vector<8xf32>
    %167 = vector.shape_cast %166 : vector<8xf32> to vector<8x1xf32>
    %cst_56 = arith.constant 3.200000e+01 : f32
    %168 = vector.broadcast %cst_56 : f32 to vector<8x1xf32>
    %169 = arith.divf %167, %168 : vector<8x1xf32>
    %170 = vector.broadcast %162 : vector<8x1xf32> to vector<8x32xf32>
    %171 = arith.subf %156, %170 : vector<8x32xf32>
    %cst_57 = arith.constant 9.99999974E-6 : f32
    %172 = vector.broadcast %cst_57 : f32 to vector<8x1xf32>
    %173 = arith.addf %169, %172 : vector<8x1xf32>
    %174 = math.rsqrt %173 : vector<8x1xf32>
    %175 = vector.broadcast %174 : vector<8x1xf32> to vector<8x32xf32>
    %176 = arith.mulf %171, %175 : vector<8x32xf32>
    %177 = vector.broadcast %157 : vector<1x32xf32> to vector<8x32xf32>
    %178 = arith.mulf %176, %177 : vector<8x32xf32>
    %179 = vector.broadcast %158 : vector<1x32xf32> to vector<8x32xf32>
    %180 = arith.addf %178, %179 : vector<8x32xf32>
    %c0_58 = arith.constant 0 : index
    %c0_59 = arith.constant 0 : index
    %c0_60 = arith.constant 0 : index
    %181 = vector.load %arg14[%c0_58, %c0_59, %c0_60] : memref<2x32x128xbf16, #tpu.memory_space<vmem>>, vector<1x32x128xbf16>
    %182 = vector.shape_cast %181 : vector<1x32x128xbf16> to vector<32x128xbf16>
    %183 = arith.truncf %180 : vector<8x32xf32> to vector<8x32xbf16>
    %cst_61 = arith.constant dense<0.000000e+00> : vector<8x128xf32>
    %184 = tpu.matmul %183, %182, %cst_61 {dimension_numbers = #tpu.dot_dimension_numbers<[1], [0], [0], [1], [0, 0, 1, 1], [], []>} : vector<8x32xbf16>, vector<32x128xbf16>, vector<8x128xf32> -> vector<8x128xf32>
    %c0_62 = arith.constant 0 : index
    %c0_63 = arith.constant 0 : index
    %185 = vector.load %arg15[%c0_62, %c0_63] : memref<2x128xf32, #tpu.memory_space<vmem>>, vector<1x128xf32>
    %186 = vector.broadcast %185 : vector<1x128xf32> to vector<8x128xf32>
    %187 = arith.addf %184, %186 : vector<8x128xf32>
    %cst_64 = arith.constant 5.000000e-01 : f32
    %188 = vector.broadcast %cst_64 : f32 to vector<8x128xf32>
    %189 = arith.mulf %188, %187 : vector<8x128xf32>
    %cst_65 = arith.constant 4.471500e-02 : f32
    %190 = vector.broadcast %cst_65 : f32 to vector<8x128xf32>
    %191 = arith.mulf %190, %187 : vector<8x128xf32>
    %192 = arith.mulf %191, %187 : vector<8x128xf32>
    %193 = arith.mulf %192, %187 : vector<8x128xf32>
    %194 = arith.addf %187, %193 : vector<8x128xf32>
    %cst_66 = arith.constant 0.797884583 : f32
    %195 = vector.broadcast %cst_66 : f32 to vector<8x128xf32>
    %196 = arith.mulf %195, %194 : vector<8x128xf32>
    %197 = math.tanh %196 : vector<8x128xf32>
    %cst_67 = arith.constant 1.000000e+00 : f32
    %198 = vector.broadcast %cst_67 : f32 to vector<8x128xf32>
    %199 = arith.addf %198, %197 : vector<8x128xf32>
    %200 = arith.mulf %189, %199 : vector<8x128xf32>
    %c0_68 = arith.constant 0 : index
    %c0_69 = arith.constant 0 : index
    %c0_70 = arith.constant 0 : index
    %201 = vector.load %arg16[%c0_68, %c0_69, %c0_70] : memref<2x128x32xbf16, #tpu.memory_space<vmem>>, vector<1x128x32xbf16>
    %202 = vector.shape_cast %201 : vector<1x128x32xbf16> to vector<128x32xbf16>
    %203 = arith.truncf %200 : vector<8x128xf32> to vector<8x128xbf16>
    %cst_71 = arith.constant dense<0.000000e+00> : vector<8x32xf32>
    %204 = tpu.matmul %203, %202, %cst_71 {dimension_numbers = #tpu.dot_dimension_numbers<[1], [0], [0], [1], [0, 0, 1, 1], [], []>} : vector<8x128xbf16>, vector<128x32xbf16>, vector<8x32xf32> -> vector<8x32xf32>
    %c0_72 = arith.constant 0 : index
    %c0_73 = arith.constant 0 : index
    %205 = vector.load %arg17[%c0_72, %c0_73] : memref<2x32xf32, #tpu.memory_space<vmem>>, vector<1x32xf32>
    %206 = vector.broadcast %205 : vector<1x32xf32> to vector<8x32xf32>
    %207 = arith.addf %204, %206 : vector<8x32xf32>
    %208 = arith.addf %207, %156 : vector<8x32xf32>
    %c1 = arith.constant 1 : index
    %c0_74 = arith.constant 0 : index
    %209 = vector.load %arg6[%c1, %c0_74] : memref<2x32xf32, #tpu.memory_space<vmem>>, vector<1x32xf32>
    %c1_75 = arith.constant 1 : index
    %c0_76 = arith.constant 0 : index
    %210 = vector.load %arg7[%c1_75, %c0_76] : memref<2x32xf32, #tpu.memory_space<vmem>>, vector<1x32xf32>
    %cst_77 = arith.constant dense<0.000000e+00> : vector<8xf32>
    %211 = vector.multi_reduction <add>, %208, %cst_77 [1] : vector<8x32xf32> to vector<8xf32>
    %212 = vector.shape_cast %211 : vector<8xf32> to vector<8x1xf32>
    %cst_78 = arith.constant 3.200000e+01 : f32
    %213 = vector.broadcast %cst_78 : f32 to vector<8x1xf32>
    %214 = arith.divf %212, %213 : vector<8x1xf32>
    %215 = vector.broadcast %214 : vector<8x1xf32> to vector<8x32xf32>
    %216 = arith.subf %208, %215 : vector<8x32xf32>
    %217 = arith.mulf %216, %216 : vector<8x32xf32>
    %cst_79 = arith.constant dense<0.000000e+00> : vector<8xf32>
    %218 = vector.multi_reduction <add>, %217, %cst_79 [1] : vector<8x32xf32> to vector<8xf32>
    %219 = vector.shape_cast %218 : vector<8xf32> to vector<8x1xf32>
    %cst_80 = arith.constant 3.200000e+01 : f32
    %220 = vector.broadcast %cst_80 : f32 to vector<8x1xf32>
    %221 = arith.divf %219, %220 : vector<8x1xf32>
    %222 = vector.broadcast %214 : vector<8x1xf32> to vector<8x32xf32>
    %223 = arith.subf %208, %222 : vector<8x32xf32>
    %cst_81 = arith.constant 9.99999974E-6 : f32
    %224 = vector.broadcast %cst_81 : f32 to vector<8x1xf32>
    %225 = arith.addf %221, %224 : vector<8x1xf32>
    %226 = math.rsqrt %225 : vector<8x1xf32>
    %227 = vector.broadcast %226 : vector<8x1xf32> to vector<8x32xf32>
    %228 = arith.mulf %223, %227 : vector<8x32xf32>
    %229 = vector.broadcast %209 : vector<1x32xf32> to vector<8x32xf32>
    %230 = arith.mulf %228, %229 : vector<8x32xf32>
    %231 = vector.broadcast %210 : vector<1x32xf32> to vector<8x32xf32>
    %232 = arith.addf %230, %231 : vector<8x32xf32>
    %c1_82 = arith.constant 1 : index
    %c0_83 = arith.constant 0 : index
    %c0_84 = arith.constant 0 : index
    %233 = vector.load %arg8[%c1_82, %c0_83, %c0_84] : memref<2x32x96xbf16, #tpu.memory_space<vmem>>, vector<1x32x96xbf16>
    %234 = vector.shape_cast %233 : vector<1x32x96xbf16> to vector<32x96xbf16>
    %235 = arith.truncf %232 : vector<8x32xf32> to vector<8x32xbf16>
    %cst_85 = arith.constant dense<0.000000e+00> : vector<8x96xf32>
    %236 = tpu.matmul %235, %234, %cst_85 {dimension_numbers = #tpu.dot_dimension_numbers<[1], [0], [0], [1], [0, 0, 1, 1], [], []>} : vector<8x32xbf16>, vector<32x96xbf16>, vector<8x96xf32> -> vector<8x96xf32>
    %c1_86 = arith.constant 1 : index
    %c0_87 = arith.constant 0 : index
    %237 = vector.load %arg9[%c1_86, %c0_87] : memref<2x96xf32, #tpu.memory_space<vmem>>, vector<1x96xf32>
    %238 = vector.broadcast %237 : vector<1x96xf32> to vector<8x96xf32>
    %239 = arith.addf %236, %238 : vector<8x96xf32>
    %c1_88 = arith.constant 1 : index
    %c0_89 = arith.constant 0 : index
    %c0_90 = arith.constant 0 : index
    %c0_91 = arith.constant 0 : index
    %240 = vector.load %arg10[%c1_88, %c0_89, %c0_90, %c0_91] : memref<2x4x8x32xbf16, #tpu.memory_space<vmem>>, vector<1x4x8x32xbf16>
    %241 = vector.shape_cast %240 : vector<1x4x8x32xbf16> to vector<4x8x32xbf16>
    %242 = vector.shape_cast %241 : vector<4x8x32xbf16> to vector<32x32xbf16>
    %243 = vector.extract_strided_slice %239 {offsets = [0, 0], sizes = [8, 8], strides = [1, 1]} : vector<8x96xf32> to vector<8x8xf32>
    %244 = vector.shape_cast %243 : vector<8x8xf32> to vector<1x8x8xf32>
    %245 = vector.extract_strided_slice %239 {offsets = [0, 32], sizes = [8, 8], strides = [1, 1]} : vector<8x96xf32> to vector<8x8xf32>
    %246 = vector.shape_cast %245 : vector<8x8xf32> to vector<1x8x8xf32>
    %247 = vector.extract_strided_slice %239 {offsets = [0, 64], sizes = [8, 8], strides = [1, 1]} : vector<8x96xf32> to vector<8x8xf32>
    %248 = vector.shape_cast %247 : vector<8x8xf32> to vector<1x8x8xf32>
    %249 = arith.truncf %244 : vector<1x8x8xf32> to vector<1x8x8xbf16>
    %250 = arith.truncf %246 : vector<1x8x8xf32> to vector<1x8x8xbf16>
    "tpu.trace_start"() <{level = 10 : i32, message = "bqd,bkd->bqk"}> : () -> ()
    %cst_92 = arith.constant dense<0.000000e+00> : vector<1x8x8xf32>
    %251 = tpu.matmul %249, %250, %cst_92 {dimension_numbers = #tpu.dot_dimension_numbers<[2], [2], [1], [1], [0, 0, 0, 1, 1, 1], [0], [0]>} : vector<1x8x8xbf16>, vector<1x8x8xbf16>, vector<1x8x8xf32> -> vector<1x8x8xf32>
    "tpu.trace_stop"() : () -> ()
    %252 = vector.shape_cast %0 : vector<8x8xf32> to vector<1x8x8xf32>
    %253 = arith.addf %251, %252 : vector<1x8x8xf32>
    %cst_93 = arith.constant dense<0xFF800000> : vector<1x8xf32>
    %254 = vector.multi_reduction <maximumf>, %253, %cst_93 [2] : vector<1x8x8xf32> to vector<1x8xf32>
    %255 = vector.shape_cast %254 : vector<1x8xf32> to vector<1x8x1xf32>
    %256 = vector.broadcast %255 : vector<1x8x1xf32> to vector<1x8x8xf32>
    %257 = arith.subf %253, %256 : vector<1x8x8xf32>
    %258 = math.exp %257 : vector<1x8x8xf32>
    %cst_94 = arith.constant dense<0.000000e+00> : vector<1x8xf32>
    %259 = vector.multi_reduction <add>, %258, %cst_94 [2] : vector<1x8x8xf32> to vector<1x8xf32>
    %260 = vector.shape_cast %259 : vector<1x8xf32> to vector<1x8x1xf32>
    %261 = tpu.reciprocal %260 {approx = true} : vector<1x8x1xf32> -> vector<1x8x1xf32>
    %262 = vector.broadcast %261 : vector<1x8x1xf32> to vector<1x8x8xf32>
    %263 = arith.mulf %258, %262 : vector<1x8x8xf32>
    %264 = arith.truncf %263 : vector<1x8x8xf32> to vector<1x8x8xbf16>
    %265 = arith.truncf %248 : vector<1x8x8xf32> to vector<1x8x8xbf16>
    "tpu.trace_start"() <{level = 10 : i32, message = "bqk,bkd->bqd"}> : () -> ()
    %cst_95 = arith.constant dense<0.000000e+00> : vector<1x8x8xf32>
    %266 = tpu.matmul %264, %265, %cst_95 {dimension_numbers = #tpu.dot_dimension_numbers<[2], [1], [1], [2], [0, 0, 0, 1, 1, 2], [0], [0]>} : vector<1x8x8xbf16>, vector<1x8x8xbf16>, vector<1x8x8xf32> -> vector<1x8x8xf32>
    "tpu.trace_stop"() : () -> ()
    %267 = vector.shape_cast %266 : vector<1x8x8xf32> to vector<8x8xf32>
    %268 = vector.extract_strided_slice %239 {offsets = [0, 8], sizes = [8, 8], strides = [1, 1]} : vector<8x96xf32> to vector<8x8xf32>
    %269 = vector.shape_cast %268 : vector<8x8xf32> to vector<1x8x8xf32>
    %270 = vector.extract_strided_slice %239 {offsets = [0, 40], sizes = [8, 8], strides = [1, 1]} : vector<8x96xf32> to vector<8x8xf32>
    %271 = vector.shape_cast %270 : vector<8x8xf32> to vector<1x8x8xf32>
    %272 = vector.extract_strided_slice %239 {offsets = [0, 72], sizes = [8, 8], strides = [1, 1]} : vector<8x96xf32> to vector<8x8xf32>
    %273 = vector.shape_cast %272 : vector<8x8xf32> to vector<1x8x8xf32>
    %274 = arith.truncf %269 : vector<1x8x8xf32> to vector<1x8x8xbf16>
    %275 = arith.truncf %271 : vector<1x8x8xf32> to vector<1x8x8xbf16>
    "tpu.trace_start"() <{level = 10 : i32, message = "bqd,bkd->bqk"}> : () -> ()
    %cst_96 = arith.constant dense<0.000000e+00> : vector<1x8x8xf32>
    %276 = tpu.matmul %274, %275, %cst_96 {dimension_numbers = #tpu.dot_dimension_numbers<[2], [2], [1], [1], [0, 0, 0, 1, 1, 1], [0], [0]>} : vector<1x8x8xbf16>, vector<1x8x8xbf16>, vector<1x8x8xf32> -> vector<1x8x8xf32>
    "tpu.trace_stop"() : () -> ()
    %277 = vector.shape_cast %0 : vector<8x8xf32> to vector<1x8x8xf32>
    %278 = arith.addf %276, %277 : vector<1x8x8xf32>
    %cst_97 = arith.constant dense<0xFF800000> : vector<1x8xf32>
    %279 = vector.multi_reduction <maximumf>, %278, %cst_97 [2] : vector<1x8x8xf32> to vector<1x8xf32>
    %280 = vector.shape_cast %279 : vector<1x8xf32> to vector<1x8x1xf32>
    %281 = vector.broadcast %280 : vector<1x8x1xf32> to vector<1x8x8xf32>
    %282 = arith.subf %278, %281 : vector<1x8x8xf32>
    %283 = math.exp %282 : vector<1x8x8xf32>
    %cst_98 = arith.constant dense<0.000000e+00> : vector<1x8xf32>
    %284 = vector.multi_reduction <add>, %283, %cst_98 [2] : vector<1x8x8xf32> to vector<1x8xf32>
    %285 = vector.shape_cast %284 : vector<1x8xf32> to vector<1x8x1xf32>
    %286 = tpu.reciprocal %285 {approx = true} : vector<1x8x1xf32> -> vector<1x8x1xf32>
    %287 = vector.broadcast %286 : vector<1x8x1xf32> to vector<1x8x8xf32>
    %288 = arith.mulf %283, %287 : vector<1x8x8xf32>
    %289 = arith.truncf %288 : vector<1x8x8xf32> to vector<1x8x8xbf16>
    %290 = arith.truncf %273 : vector<1x8x8xf32> to vector<1x8x8xbf16>
    "tpu.trace_start"() <{level = 10 : i32, message = "bqk,bkd->bqd"}> : () -> ()
    %cst_99 = arith.constant dense<0.000000e+00> : vector<1x8x8xf32>
    %291 = tpu.matmul %289, %290, %cst_99 {dimension_numbers = #tpu.dot_dimension_numbers<[2], [1], [1], [2], [0, 0, 0, 1, 1, 2], [0], [0]>} : vector<1x8x8xbf16>, vector<1x8x8xbf16>, vector<1x8x8xf32> -> vector<1x8x8xf32>
    "tpu.trace_stop"() : () -> ()
    %292 = vector.shape_cast %291 : vector<1x8x8xf32> to vector<8x8xf32>
    %293 = vector.extract_strided_slice %239 {offsets = [0, 16], sizes = [8, 8], strides = [1, 1]} : vector<8x96xf32> to vector<8x8xf32>
    %294 = vector.shape_cast %293 : vector<8x8xf32> to vector<1x8x8xf32>
    %295 = vector.extract_strided_slice %239 {offsets = [0, 48], sizes = [8, 8], strides = [1, 1]} : vector<8x96xf32> to vector<8x8xf32>
    %296 = vector.shape_cast %295 : vector<8x8xf32> to vector<1x8x8xf32>
    %297 = vector.extract_strided_slice %239 {offsets = [0, 80], sizes = [8, 8], strides = [1, 1]} : vector<8x96xf32> to vector<8x8xf32>
    %298 = vector.shape_cast %297 : vector<8x8xf32> to vector<1x8x8xf32>
    %299 = arith.truncf %294 : vector<1x8x8xf32> to vector<1x8x8xbf16>
    %300 = arith.truncf %296 : vector<1x8x8xf32> to vector<1x8x8xbf16>
    "tpu.trace_start"() <{level = 10 : i32, message = "bqd,bkd->bqk"}> : () -> ()
    %cst_100 = arith.constant dense<0.000000e+00> : vector<1x8x8xf32>
    %301 = tpu.matmul %299, %300, %cst_100 {dimension_numbers = #tpu.dot_dimension_numbers<[2], [2], [1], [1], [0, 0, 0, 1, 1, 1], [0], [0]>} : vector<1x8x8xbf16>, vector<1x8x8xbf16>, vector<1x8x8xf32> -> vector<1x8x8xf32>
    "tpu.trace_stop"() : () -> ()
    %302 = vector.shape_cast %0 : vector<8x8xf32> to vector<1x8x8xf32>
    %303 = arith.addf %301, %302 : vector<1x8x8xf32>
    %cst_101 = arith.constant dense<0xFF800000> : vector<1x8xf32>
    %304 = vector.multi_reduction <maximumf>, %303, %cst_101 [2] : vector<1x8x8xf32> to vector<1x8xf32>
    %305 = vector.shape_cast %304 : vector<1x8xf32> to vector<1x8x1xf32>
    %306 = vector.broadcast %305 : vector<1x8x1xf32> to vector<1x8x8xf32>
    %307 = arith.subf %303, %306 : vector<1x8x8xf32>
    %308 = math.exp %307 : vector<1x8x8xf32>
    %cst_102 = arith.constant dense<0.000000e+00> : vector<1x8xf32>
    %309 = vector.multi_reduction <add>, %308, %cst_102 [2] : vector<1x8x8xf32> to vector<1x8xf32>
    %310 = vector.shape_cast %309 : vector<1x8xf32> to vector<1x8x1xf32>
    %311 = tpu.reciprocal %310 {approx = true} : vector<1x8x1xf32> -> vector<1x8x1xf32>
    %312 = vector.broadcast %311 : vector<1x8x1xf32> to vector<1x8x8xf32>
    %313 = arith.mulf %308, %312 : vector<1x8x8xf32>
    %314 = arith.truncf %313 : vector<1x8x8xf32> to vector<1x8x8xbf16>
    %315 = arith.truncf %298 : vector<1x8x8xf32> to vector<1x8x8xbf16>
    "tpu.trace_start"() <{level = 10 : i32, message = "bqk,bkd->bqd"}> : () -> ()
    %cst_103 = arith.constant dense<0.000000e+00> : vector<1x8x8xf32>
    %316 = tpu.matmul %314, %315, %cst_103 {dimension_numbers = #tpu.dot_dimension_numbers<[2], [1], [1], [2], [0, 0, 0, 1, 1, 2], [0], [0]>} : vector<1x8x8xbf16>, vector<1x8x8xbf16>, vector<1x8x8xf32> -> vector<1x8x8xf32>
    "tpu.trace_stop"() : () -> ()
    %317 = vector.shape_cast %316 : vector<1x8x8xf32> to vector<8x8xf32>
    %318 = vector.extract_strided_slice %239 {offsets = [0, 24], sizes = [8, 8], strides = [1, 1]} : vector<8x96xf32> to vector<8x8xf32>
    %319 = vector.shape_cast %318 : vector<8x8xf32> to vector<1x8x8xf32>
    %320 = vector.extract_strided_slice %239 {offsets = [0, 56], sizes = [8, 8], strides = [1, 1]} : vector<8x96xf32> to vector<8x8xf32>
    %321 = vector.shape_cast %320 : vector<8x8xf32> to vector<1x8x8xf32>
    %322 = vector.extract_strided_slice %239 {offsets = [0, 88], sizes = [8, 8], strides = [1, 1]} : vector<8x96xf32> to vector<8x8xf32>
    %323 = vector.shape_cast %322 : vector<8x8xf32> to vector<1x8x8xf32>
    %324 = arith.truncf %319 : vector<1x8x8xf32> to vector<1x8x8xbf16>
    %325 = arith.truncf %321 : vector<1x8x8xf32> to vector<1x8x8xbf16>
    "tpu.trace_start"() <{level = 10 : i32, message = "bqd,bkd->bqk"}> : () -> ()
    %cst_104 = arith.constant dense<0.000000e+00> : vector<1x8x8xf32>
    %326 = tpu.matmul %324, %325, %cst_104 {dimension_numbers = #tpu.dot_dimension_numbers<[2], [2], [1], [1], [0, 0, 0, 1, 1, 1], [0], [0]>} : vector<1x8x8xbf16>, vector<1x8x8xbf16>, vector<1x8x8xf32> -> vector<1x8x8xf32>
    "tpu.trace_stop"() : () -> ()
    %327 = vector.shape_cast %0 : vector<8x8xf32> to vector<1x8x8xf32>
    %328 = arith.addf %326, %327 : vector<1x8x8xf32>
    %cst_105 = arith.constant dense<0xFF800000> : vector<1x8xf32>
    %329 = vector.multi_reduction <maximumf>, %328, %cst_105 [2] : vector<1x8x8xf32> to vector<1x8xf32>
    %330 = vector.shape_cast %329 : vector<1x8xf32> to vector<1x8x1xf32>
    %331 = vector.broadcast %330 : vector<1x8x1xf32> to vector<1x8x8xf32>
    %332 = arith.subf %328, %331 : vector<1x8x8xf32>
    %333 = math.exp %332 : vector<1x8x8xf32>
    %cst_106 = arith.constant dense<0.000000e+00> : vector<1x8xf32>
    %334 = vector.multi_reduction <add>, %333, %cst_106 [2] : vector<1x8x8xf32> to vector<1x8xf32>
    %335 = vector.shape_cast %334 : vector<1x8xf32> to vector<1x8x1xf32>
    %336 = tpu.reciprocal %335 {approx = true} : vector<1x8x1xf32> -> vector<1x8x1xf32>
    %337 = vector.broadcast %336 : vector<1x8x1xf32> to vector<1x8x8xf32>
    %338 = arith.mulf %333, %337 : vector<1x8x8xf32>
    %339 = arith.truncf %338 : vector<1x8x8xf32> to vector<1x8x8xbf16>
    %340 = arith.truncf %323 : vector<1x8x8xf32> to vector<1x8x8xbf16>
    "tpu.trace_start"() <{level = 10 : i32, message = "bqk,bkd->bqd"}> : () -> ()
    %cst_107 = arith.constant dense<0.000000e+00> : vector<1x8x8xf32>
    %341 = tpu.matmul %339, %340, %cst_107 {dimension_numbers = #tpu.dot_dimension_numbers<[2], [1], [1], [2], [0, 0, 0, 1, 1, 2], [0], [0]>} : vector<1x8x8xbf16>, vector<1x8x8xbf16>, vector<1x8x8xf32> -> vector<1x8x8xf32>
    "tpu.trace_stop"() : () -> ()
    %342 = vector.shape_cast %341 : vector<1x8x8xf32> to vector<8x8xf32>
    %343 = tpu.concatenate %267, %292, %317, %342 in 1 : vector<8x8xf32>, vector<8x8xf32>, vector<8x8xf32>, vector<8x8xf32> -> vector<8x32xf32>
    %344 = arith.truncf %343 : vector<8x32xf32> to vector<8x32xbf16>
    %cst_108 = arith.constant dense<0.000000e+00> : vector<8x32xf32>
    %345 = tpu.matmul %344, %242, %cst_108 {dimension_numbers = #tpu.dot_dimension_numbers<[1], [0], [0], [1], [0, 0, 1, 1], [], []>} : vector<8x32xbf16>, vector<32x32xbf16>, vector<8x32xf32> -> vector<8x32xf32>
    %c1_109 = arith.constant 1 : index
    %c0_110 = arith.constant 0 : index
    %346 = vector.load %arg11[%c1_109, %c0_110] : memref<2x32xf32, #tpu.memory_space<vmem>>, vector<1x32xf32>
    %347 = vector.broadcast %346 : vector<1x32xf32> to vector<8x32xf32>
    %348 = arith.addf %345, %347 : vector<8x32xf32>
    %349 = arith.addf %348, %208 : vector<8x32xf32>
    %c1_111 = arith.constant 1 : index
    %c0_112 = arith.constant 0 : index
    %350 = vector.load %arg12[%c1_111, %c0_112] : memref<2x32xf32, #tpu.memory_space<vmem>>, vector<1x32xf32>
    %c1_113 = arith.constant 1 : index
    %c0_114 = arith.constant 0 : index
    %351 = vector.load %arg13[%c1_113, %c0_114] : memref<2x32xf32, #tpu.memory_space<vmem>>, vector<1x32xf32>
    %cst_115 = arith.constant dense<0.000000e+00> : vector<8xf32>
    %352 = vector.multi_reduction <add>, %349, %cst_115 [1] : vector<8x32xf32> to vector<8xf32>
    %353 = vector.shape_cast %352 : vector<8xf32> to vector<8x1xf32>
    %cst_116 = arith.constant 3.200000e+01 : f32
    %354 = vector.broadcast %cst_116 : f32 to vector<8x1xf32>
    %355 = arith.divf %353, %354 : vector<8x1xf32>
    %356 = vector.broadcast %355 : vector<8x1xf32> to vector<8x32xf32>
    %357 = arith.subf %349, %356 : vector<8x32xf32>
    %358 = arith.mulf %357, %357 : vector<8x32xf32>
    %cst_117 = arith.constant dense<0.000000e+00> : vector<8xf32>
    %359 = vector.multi_reduction <add>, %358, %cst_117 [1] : vector<8x32xf32> to vector<8xf32>
    %360 = vector.shape_cast %359 : vector<8xf32> to vector<8x1xf32>
    %cst_118 = arith.constant 3.200000e+01 : f32
    %361 = vector.broadcast %cst_118 : f32 to vector<8x1xf32>
    %362 = arith.divf %360, %361 : vector<8x1xf32>
    %363 = vector.broadcast %355 : vector<8x1xf32> to vector<8x32xf32>
    %364 = arith.subf %349, %363 : vector<8x32xf32>
    %cst_119 = arith.constant 9.99999974E-6 : f32
    %365 = vector.broadcast %cst_119 : f32 to vector<8x1xf32>
    %366 = arith.addf %362, %365 : vector<8x1xf32>
    %367 = math.rsqrt %366 : vector<8x1xf32>
    %368 = vector.broadcast %367 : vector<8x1xf32> to vector<8x32xf32>
    %369 = arith.mulf %364, %368 : vector<8x32xf32>
    %370 = vector.broadcast %350 : vector<1x32xf32> to vector<8x32xf32>
    %371 = arith.mulf %369, %370 : vector<8x32xf32>
    %372 = vector.broadcast %351 : vector<1x32xf32> to vector<8x32xf32>
    %373 = arith.addf %371, %372 : vector<8x32xf32>
    %c1_120 = arith.constant 1 : index
    %c0_121 = arith.constant 0 : index
    %c0_122 = arith.constant 0 : index
    %374 = vector.load %arg14[%c1_120, %c0_121, %c0_122] : memref<2x32x128xbf16, #tpu.memory_space<vmem>>, vector<1x32x128xbf16>
    %375 = vector.shape_cast %374 : vector<1x32x128xbf16> to vector<32x128xbf16>
    %376 = arith.truncf %373 : vector<8x32xf32> to vector<8x32xbf16>
    %cst_123 = arith.constant dense<0.000000e+00> : vector<8x128xf32>
    %377 = tpu.matmul %376, %375, %cst_123 {dimension_numbers = #tpu.dot_dimension_numbers<[1], [0], [0], [1], [0, 0, 1, 1], [], []>} : vector<8x32xbf16>, vector<32x128xbf16>, vector<8x128xf32> -> vector<8x128xf32>
    %c1_124 = arith.constant 1 : index
    %c0_125 = arith.constant 0 : index
    %378 = vector.load %arg15[%c1_124, %c0_125] : memref<2x128xf32, #tpu.memory_space<vmem>>, vector<1x128xf32>
    %379 = vector.broadcast %378 : vector<1x128xf32> to vector<8x128xf32>
    %380 = arith.addf %377, %379 : vector<8x128xf32>
    %cst_126 = arith.constant 5.000000e-01 : f32
    %381 = vector.broadcast %cst_126 : f32 to vector<8x128xf32>
    %382 = arith.mulf %381, %380 : vector<8x128xf32>
    %cst_127 = arith.constant 4.471500e-02 : f32
    %383 = vector.broadcast %cst_127 : f32 to vector<8x128xf32>
    %384 = arith.mulf %383, %380 : vector<8x128xf32>
    %385 = arith.mulf %384, %380 : vector<8x128xf32>
    %386 = arith.mulf %385, %380 : vector<8x128xf32>
    %387 = arith.addf %380, %386 : vector<8x128xf32>
    %cst_128 = arith.constant 0.797884583 : f32
    %388 = vector.broadcast %cst_128 : f32 to vector<8x128xf32>
    %389 = arith.mulf %388, %387 : vector<8x128xf32>
    %390 = math.tanh %389 : vector<8x128xf32>
    %cst_129 = arith.constant 1.000000e+00 : f32
    %391 = vector.broadcast %cst_129 : f32 to vector<8x128xf32>
    %392 = arith.addf %391, %390 : vector<8x128xf32>
    %393 = arith.mulf %382, %392 : vector<8x128xf32>
    %c1_130 = arith.constant 1 : index
    %c0_131 = arith.constant 0 : index
    %c0_132 = arith.constant 0 : index
    %394 = vector.load %arg16[%c1_130, %c0_131, %c0_132] : memref<2x128x32xbf16, #tpu.memory_space<vmem>>, vector<1x128x32xbf16>
    %395 = vector.shape_cast %394 : vector<1x128x32xbf16> to vector<128x32xbf16>
    %396 = arith.truncf %393 : vector<8x128xf32> to vector<8x128xbf16>
    %cst_133 = arith.constant dense<0.000000e+00> : vector<8x32xf32>
    %397 = tpu.matmul %396, %395, %cst_133 {dimension_numbers = #tpu.dot_dimension_numbers<[1], [0], [0], [1], [0, 0, 1, 1], [], []>} : vector<8x128xbf16>, vector<128x32xbf16>, vector<8x32xf32> -> vector<8x32xf32>
    %c1_134 = arith.constant 1 : index
    %c0_135 = arith.constant 0 : index
    %398 = vector.load %arg17[%c1_134, %c0_135] : memref<2x32xf32, #tpu.memory_space<vmem>>, vector<1x32xf32>
    %399 = vector.broadcast %398 : vector<1x32xf32> to vector<8x32xf32>
    %400 = arith.addf %397, %399 : vector<8x32xf32>
    %401 = arith.addf %400, %349 : vector<8x32xf32>
    %c0_136 = arith.constant 0 : index
    %c0_137 = arith.constant 0 : index
    %402 = vector.load %arg18[%c0_136, %c0_137] : memref<1x32xf32, #tpu.memory_space<vmem>>, vector<1x32xf32>
    %c0_138 = arith.constant 0 : index
    %c0_139 = arith.constant 0 : index
    %403 = vector.load %arg19[%c0_138, %c0_139] : memref<1x32xf32, #tpu.memory_space<vmem>>, vector<1x32xf32>
    %cst_140 = arith.constant dense<0.000000e+00> : vector<8xf32>
    %404 = vector.multi_reduction <add>, %401, %cst_140 [1] : vector<8x32xf32> to vector<8xf32>
    %405 = vector.shape_cast %404 : vector<8xf32> to vector<8x1xf32>
    %cst_141 = arith.constant 3.200000e+01 : f32
    %406 = vector.broadcast %cst_141 : f32 to vector<8x1xf32>
    %407 = arith.divf %405, %406 : vector<8x1xf32>
    %408 = vector.broadcast %407 : vector<8x1xf32> to vector<8x32xf32>
    %409 = arith.subf %401, %408 : vector<8x32xf32>
    %410 = arith.mulf %409, %409 : vector<8x32xf32>
    %cst_142 = arith.constant dense<0.000000e+00> : vector<8xf32>
    %411 = vector.multi_reduction <add>, %410, %cst_142 [1] : vector<8x32xf32> to vector<8xf32>
    %412 = vector.shape_cast %411 : vector<8xf32> to vector<8x1xf32>
    %cst_143 = arith.constant 3.200000e+01 : f32
    %413 = vector.broadcast %cst_143 : f32 to vector<8x1xf32>
    %414 = arith.divf %412, %413 : vector<8x1xf32>
    %415 = vector.broadcast %407 : vector<8x1xf32> to vector<8x32xf32>
    %416 = arith.subf %401, %415 : vector<8x32xf32>
    %cst_144 = arith.constant 9.99999974E-6 : f32
    %417 = vector.broadcast %cst_144 : f32 to vector<8x1xf32>
    %418 = arith.addf %414, %417 : vector<8x1xf32>
    %419 = math.rsqrt %418 : vector<8x1xf32>
    %420 = vector.broadcast %419 : vector<8x1xf32> to vector<8x32xf32>
    %421 = arith.mulf %416, %420 : vector<8x32xf32>
    %422 = vector.broadcast %402 : vector<1x32xf32> to vector<8x32xf32>
    %423 = arith.mulf %421, %422 : vector<8x32xf32>
    %424 = vector.broadcast %403 : vector<1x32xf32> to vector<8x32xf32>
    %425 = arith.addf %423, %424 : vector<8x32xf32>
    %c0_145 = arith.constant 0 : index
    %c0_146 = arith.constant 0 : index
    %426 = vector.load %arg20[%c0_145, %c0_146] : memref<32x8xbf16, #tpu.memory_space<vmem>>, vector<32x8xbf16>
    %427 = arith.truncf %425 : vector<8x32xf32> to vector<8x32xbf16>
    %cst_147 = arith.constant dense<0.000000e+00> : vector<8x8xf32>
    %428 = tpu.matmul %427, %426, %cst_147 {dimension_numbers = #tpu.dot_dimension_numbers<[1], [0], [0], [1], [0, 0, 1, 1], [], []>} : vector<8x32xbf16>, vector<32x8xbf16>, vector<8x8xf32> -> vector<8x8xf32>
    %c0_148 = arith.constant 0 : index
    %c0_149 = arith.constant 0 : index
    %429 = vector.load %arg21[%c0_148, %c0_149] : memref<1x8xf32, #tpu.memory_space<vmem>>, vector<1x8xf32>
    %430 = vector.broadcast %429 : vector<1x8xf32> to vector<8x8xf32>
    %431 = arith.addf %428, %430 : vector<8x8xf32>
    %432 = vector.shape_cast %431 : vector<8x8xf32> to vector<1x8x8xf32>
    %c0_150 = arith.constant 0 : index
    %c0_151 = arith.constant 0 : index
    %c0_152 = arith.constant 0 : index
    %c0_153 = arith.constant 0 : index
    %433 = vector.load %arg22[%c0_150, %c0_151, %c0_152, %c0_153] : memref<1x8x2x8xf32, #tpu.memory_space<vmem>>, vector<1x8x1x8xf32>
    %434 = vector.shape_cast %433 : vector<1x8x1x8xf32> to vector<1x8x8xf32>
    %435 = vector.shape_cast %432 : vector<1x8x8xf32> to vector<1x8x1x8xf32>
    tpu.vector_store %arg22[%c0_150, %c0_151, %c0_152, %c0_153], %435 {strides = array<i32>} : memref<1x8x2x8xf32, #tpu.memory_space<vmem>>, vector<1x8x1x8xf32>,
    %436 = vector.extract_strided_slice %2 {offsets = [0, 0, 1, 0], sizes = [1, 8, 1, 16], strides = [1, 1, 1, 1]} : vector<1x8x2x16xf32> to vector<1x8x1x16xf32>
    %437 = vector.shape_cast %436 : vector<1x8x1x16xf32> to vector<1x8x16xf32>
    %438 = vector.shape_cast %437 : vector<1x8x16xf32> to vector<8x16xf32>
    %c0_154 = arith.constant 0 : index
    %c0_155 = arith.constant 0 : index
    %439 = vector.load %arg4[%c0_154, %c0_155] : memref<16x32xbf16, #tpu.memory_space<vmem>>, vector<16x32xbf16>
    %440 = arith.truncf %438 : vector<8x16xf32> to vector<8x16xbf16>
    %cst_156 = arith.constant dense<0.000000e+00> : vector<8x32xf32>
    %441 = tpu.matmul %440, %439, %cst_156 {dimension_numbers = #tpu.dot_dimension_numbers<[1], [0], [0], [1], [0, 0, 1, 1], [], []>} : vector<8x16xbf16>, vector<16x32xbf16>, vector<8x32xf32> -> vector<8x32xf32>
    %c0_157 = arith.constant 0 : index
    %c0_158 = arith.constant 0 : index
    %442 = vector.load %arg5[%c0_157, %c0_158] : memref<1x32xf32, #tpu.memory_space<vmem>>, vector<1x32xf32>
    %443 = vector.broadcast %442 : vector<1x32xf32> to vector<8x32xf32>
    %444 = arith.addf %441, %443 : vector<8x32xf32>
    %445 = vector.shape_cast %444 : vector<8x32xf32> to vector<1x8x32xf32>
    %446 = vector.shape_cast %1 : vector<8x32xf32> to vector<1x8x32xf32>
    %447 = arith.addf %445, %446 : vector<1x8x32xf32>
    %448 = vector.shape_cast %447 : vector<1x8x32xf32> to vector<8x32xf32>
    %c0_159 = arith.constant 0 : index
    %c0_160 = arith.constant 0 : index
    %449 = vector.load %arg6[%c0_159, %c0_160] : memref<2x32xf32, #tpu.memory_space<vmem>>, vector<1x32xf32>
    %c0_161 = arith.constant 0 : index
    %c0_162 = arith.constant 0 : index
    %450 = vector.load %arg7[%c0_161, %c0_162] : memref<2x32xf32, #tpu.memory_space<vmem>>, vector<1x32xf32>
    %cst_163 = arith.constant dense<0.000000e+00> : vector<8xf32>
    %451 = vector.multi_reduction <add>, %448, %cst_163 [1] : vector<8x32xf32> to vector<8xf32>
    %452 = vector.shape_cast %451 : vector<8xf32> to vector<8x1xf32>
    %cst_164 = arith.constant 3.200000e+01 : f32
    %453 = vector.broadcast %cst_164 : f32 to vector<8x1xf32>
    %454 = arith.divf %452, %453 : vector<8x1xf32>
    %455 = vector.broadcast %454 : vector<8x1xf32> to vector<8x32xf32>
    %456 = arith.subf %448, %455 : vector<8x32xf32>
    %457 = arith.mulf %456, %456 : vector<8x32xf32>
    %cst_165 = arith.constant dense<0.000000e+00> : vector<8xf32>
    %458 = vector.multi_reduction <add>, %457, %cst_165 [1] : vector<8x32xf32> to vector<8xf32>
    %459 = vector.shape_cast %458 : vector<8xf32> to vector<8x1xf32>
    %cst_166 = arith.constant 3.200000e+01 : f32
    %460 = vector.broadcast %cst_166 : f32 to vector<8x1xf32>
    %461 = arith.divf %459, %460 : vector<8x1xf32>
    %462 = vector.broadcast %454 : vector<8x1xf32> to vector<8x32xf32>
    %463 = arith.subf %448, %462 : vector<8x32xf32>
    %cst_167 = arith.constant 9.99999974E-6 : f32
    %464 = vector.broadcast %cst_167 : f32 to vector<8x1xf32>
    %465 = arith.addf %461, %464 : vector<8x1xf32>
    %466 = math.rsqrt %465 : vector<8x1xf32>
    %467 = vector.broadcast %466 : vector<8x1xf32> to vector<8x32xf32>
    %468 = arith.mulf %463, %467 : vector<8x32xf32>
    %469 = vector.broadcast %449 : vector<1x32xf32> to vector<8x32xf32>
    %470 = arith.mulf %468, %469 : vector<8x32xf32>
    %471 = vector.broadcast %450 : vector<1x32xf32> to vector<8x32xf32>
    %472 = arith.addf %470, %471 : vector<8x32xf32>
    %c0_168 = arith.constant 0 : index
    %c0_169 = arith.constant 0 : index
    %c0_170 = arith.constant 0 : index
    %473 = vector.load %arg8[%c0_168, %c0_169, %c0_170] : memref<2x32x96xbf16, #tpu.memory_space<vmem>>, vector<1x32x96xbf16>
    %474 = vector.shape_cast %473 : vector<1x32x96xbf16> to vector<32x96xbf16>
    %475 = arith.truncf %472 : vector<8x32xf32> to vector<8x32xbf16>
    %cst_171 = arith.constant dense<0.000000e+00> : vector<8x96xf32>
    %476 = tpu.matmul %475, %474, %cst_171 {dimension_numbers = #tpu.dot_dimension_numbers<[1], [0], [0], [1], [0, 0, 1, 1], [], []>} : vector<8x32xbf16>, vector<32x96xbf16>, vector<8x96xf32> -> vector<8x96xf32>
    %c0_172 = arith.constant 0 : index
    %c0_173 = arith.constant 0 : index
    %477 = vector.load %arg9[%c0_172, %c0_173] : memref<2x96xf32, #tpu.memory_space<vmem>>, vector<1x96xf32>
    %478 = vector.broadcast %477 : vector<1x96xf32> to vector<8x96xf32>
    %479 = arith.addf %476, %478 : vector<8x96xf32>
    %c0_174 = arith.constant 0 : index
    %c0_175 = arith.constant 0 : index
    %c0_176 = arith.constant 0 : index
    %c0_177 = arith.constant 0 : index
    %480 = vector.load %arg10[%c0_174, %c0_175, %c0_176, %c0_177] : memref<2x4x8x32xbf16, #tpu.memory_space<vmem>>, vector<1x4x8x32xbf16>
    %481 = vector.shape_cast %480 : vector<1x4x8x32xbf16> to vector<4x8x32xbf16>
    %482 = vector.shape_cast %481 : vector<4x8x32xbf16> to vector<32x32xbf16>
    %483 = vector.extract_strided_slice %479 {offsets = [0, 0], sizes = [8, 8], strides = [1, 1]} : vector<8x96xf32> to vector<8x8xf32>
    %484 = vector.shape_cast %483 : vector<8x8xf32> to vector<1x8x8xf32>
    %485 = vector.extract_strided_slice %479 {offsets = [0, 32], sizes = [8, 8], strides = [1, 1]} : vector<8x96xf32> to vector<8x8xf32>
    %486 = vector.shape_cast %485 : vector<8x8xf32> to vector<1x8x8xf32>
    %487 = vector.extract_strided_slice %479 {offsets = [0, 64], sizes = [8, 8], strides = [1, 1]} : vector<8x96xf32> to vector<8x8xf32>
    %488 = vector.shape_cast %487 : vector<8x8xf32> to vector<1x8x8xf32>
    %489 = arith.truncf %484 : vector<1x8x8xf32> to vector<1x8x8xbf16>
    %490 = arith.truncf %486 : vector<1x8x8xf32> to vector<1x8x8xbf16>
    "tpu.trace_start"() <{level = 10 : i32, message = "bqd,bkd->bqk"}> : () -> ()
    %cst_178 = arith.constant dense<0.000000e+00> : vector<1x8x8xf32>
    %491 = tpu.matmul %489, %490, %cst_178 {dimension_numbers = #tpu.dot_dimension_numbers<[2], [2], [1], [1], [0, 0, 0, 1, 1, 1], [0], [0]>} : vector<1x8x8xbf16>, vector<1x8x8xbf16>, vector<1x8x8xf32> -> vector<1x8x8xf32>
    "tpu.trace_stop"() : () -> ()
    %492 = vector.shape_cast %0 : vector<8x8xf32> to vector<1x8x8xf32>
    %493 = arith.addf %491, %492 : vector<1x8x8xf32>
    %cst_179 = arith.constant dense<0xFF800000> : vector<1x8xf32>
    %494 = vector.multi_reduction <maximumf>, %493, %cst_179 [2] : vector<1x8x8xf32> to vector<1x8xf32>
    %495 = vector.shape_cast %494 : vector<1x8xf32> to vector<1x8x1xf32>
    %496 = vector.broadcast %495 : vector<1x8x1xf32> to vector<1x8x8xf32>
    %497 = arith.subf %493, %496 : vector<1x8x8xf32>
    %498 = math.exp %497 : vector<1x8x8xf32>
    %cst_180 = arith.constant dense<0.000000e+00> : vector<1x8xf32>
    %499 = vector.multi_reduction <add>, %498, %cst_180 [2] : vector<1x8x8xf32> to vector<1x8xf32>
    %500 = vector.shape_cast %499 : vector<1x8xf32> to vector<1x8x1xf32>
    %501 = tpu.reciprocal %500 {approx = true} : vector<1x8x1xf32> -> vector<1x8x1xf32>
    %502 = vector.broadcast %501 : vector<1x8x1xf32> to vector<1x8x8xf32>
    %503 = arith.mulf %498, %502 : vector<1x8x8xf32>
    %504 = arith.truncf %503 : vector<1x8x8xf32> to vector<1x8x8xbf16>
    %505 = arith.truncf %488 : vector<1x8x8xf32> to vector<1x8x8xbf16>
    "tpu.trace_start"() <{level = 10 : i32, message = "bqk,bkd->bqd"}> : () -> ()
    %cst_181 = arith.constant dense<0.000000e+00> : vector<1x8x8xf32>
    %506 = tpu.matmul %504, %505, %cst_181 {dimension_numbers = #tpu.dot_dimension_numbers<[2], [1], [1], [2], [0, 0, 0, 1, 1, 2], [0], [0]>} : vector<1x8x8xbf16>, vector<1x8x8xbf16>, vector<1x8x8xf32> -> vector<1x8x8xf32>
    "tpu.trace_stop"() : () -> ()
    %507 = vector.shape_cast %506 : vector<1x8x8xf32> to vector<8x8xf32>
    %508 = vector.extract_strided_slice %479 {offsets = [0, 8], sizes = [8, 8], strides = [1, 1]} : vector<8x96xf32> to vector<8x8xf32>
    %509 = vector.shape_cast %508 : vector<8x8xf32> to vector<1x8x8xf32>
    %510 = vector.extract_strided_slice %479 {offsets = [0, 40], sizes = [8, 8], strides = [1, 1]} : vector<8x96xf32> to vector<8x8xf32>
    %511 = vector.shape_cast %510 : vector<8x8xf32> to vector<1x8x8xf32>
    %512 = vector.extract_strided_slice %479 {offsets = [0, 72], sizes = [8, 8], strides = [1, 1]} : vector<8x96xf32> to vector<8x8xf32>
    %513 = vector.shape_cast %512 : vector<8x8xf32> to vector<1x8x8xf32>
    %514 = arith.truncf %509 : vector<1x8x8xf32> to vector<1x8x8xbf16>
    %515 = arith.truncf %511 : vector<1x8x8xf32> to vector<1x8x8xbf16>
    "tpu.trace_start"() <{level = 10 : i32, message = "bqd,bkd->bqk"}> : () -> ()
    %cst_182 = arith.constant dense<0.000000e+00> : vector<1x8x8xf32>
    %516 = tpu.matmul %514, %515, %cst_182 {dimension_numbers = #tpu.dot_dimension_numbers<[2], [2], [1], [1], [0, 0, 0, 1, 1, 1], [0], [0]>} : vector<1x8x8xbf16>, vector<1x8x8xbf16>, vector<1x8x8xf32> -> vector<1x8x8xf32>
    "tpu.trace_stop"() : () -> ()
    %517 = vector.shape_cast %0 : vector<8x8xf32> to vector<1x8x8xf32>
    %518 = arith.addf %516, %517 : vector<1x8x8xf32>
    %cst_183 = arith.constant dense<0xFF800000> : vector<1x8xf32>
    %519 = vector.multi_reduction <maximumf>, %518, %cst_183 [2] : vector<1x8x8xf32> to vector<1x8xf32>
    %520 = vector.shape_cast %519 : vector<1x8xf32> to vector<1x8x1xf32>
    %521 = vector.broadcast %520 : vector<1x8x1xf32> to vector<1x8x8xf32>
    %522 = arith.subf %518, %521 : vector<1x8x8xf32>
    %523 = math.exp %522 : vector<1x8x8xf32>
    %cst_184 = arith.constant dense<0.000000e+00> : vector<1x8xf32>
    %524 = vector.multi_reduction <add>, %523, %cst_184 [2] : vector<1x8x8xf32> to vector<1x8xf32>
    %525 = vector.shape_cast %524 : vector<1x8xf32> to vector<1x8x1xf32>
    %526 = tpu.reciprocal %525 {approx = true} : vector<1x8x1xf32> -> vector<1x8x1xf32>
    %527 = vector.broadcast %526 : vector<1x8x1xf32> to vector<1x8x8xf32>
    %528 = arith.mulf %523, %527 : vector<1x8x8xf32>
    %529 = arith.truncf %528 : vector<1x8x8xf32> to vector<1x8x8xbf16>
    %530 = arith.truncf %513 : vector<1x8x8xf32> to vector<1x8x8xbf16>
    "tpu.trace_start"() <{level = 10 : i32, message = "bqk,bkd->bqd"}> : () -> ()
    %cst_185 = arith.constant dense<0.000000e+00> : vector<1x8x8xf32>
    %531 = tpu.matmul %529, %530, %cst_185 {dimension_numbers = #tpu.dot_dimension_numbers<[2], [1], [1], [2], [0, 0, 0, 1, 1, 2], [0], [0]>} : vector<1x8x8xbf16>, vector<1x8x8xbf16>, vector<1x8x8xf32> -> vector<1x8x8xf32>
    "tpu.trace_stop"() : () -> ()
    %532 = vector.shape_cast %531 : vector<1x8x8xf32> to vector<8x8xf32>
    %533 = vector.extract_strided_slice %479 {offsets = [0, 16], sizes = [8, 8], strides = [1, 1]} : vector<8x96xf32> to vector<8x8xf32>
    %534 = vector.shape_cast %533 : vector<8x8xf32> to vector<1x8x8xf32>
    %535 = vector.extract_strided_slice %479 {offsets = [0, 48], sizes = [8, 8], strides = [1, 1]} : vector<8x96xf32> to vector<8x8xf32>
    %536 = vector.shape_cast %535 : vector<8x8xf32> to vector<1x8x8xf32>
    %537 = vector.extract_strided_slice %479 {offsets = [0, 80], sizes = [8, 8], strides = [1, 1]} : vector<8x96xf32> to vector<8x8xf32>
    %538 = vector.shape_cast %537 : vector<8x8xf32> to vector<1x8x8xf32>
    %539 = arith.truncf %534 : vector<1x8x8xf32> to vector<1x8x8xbf16>
    %540 = arith.truncf %536 : vector<1x8x8xf32> to vector<1x8x8xbf16>
    "tpu.trace_start"() <{level = 10 : i32, message = "bqd,bkd->bqk"}> : () -> ()
    %cst_186 = arith.constant dense<0.000000e+00> : vector<1x8x8xf32>
    %541 = tpu.matmul %539, %540, %cst_186 {dimension_numbers = #tpu.dot_dimension_numbers<[2], [2], [1], [1], [0, 0, 0, 1, 1, 1], [0], [0]>} : vector<1x8x8xbf16>, vector<1x8x8xbf16>, vector<1x8x8xf32> -> vector<1x8x8xf32>
    "tpu.trace_stop"() : () -> ()
    %542 = vector.shape_cast %0 : vector<8x8xf32> to vector<1x8x8xf32>
    %543 = arith.addf %541, %542 : vector<1x8x8xf32>
    %cst_187 = arith.constant dense<0xFF800000> : vector<1x8xf32>
    %544 = vector.multi_reduction <maximumf>, %543, %cst_187 [2] : vector<1x8x8xf32> to vector<1x8xf32>
    %545 = vector.shape_cast %544 : vector<1x8xf32> to vector<1x8x1xf32>
    %546 = vector.broadcast %545 : vector<1x8x1xf32> to vector<1x8x8xf32>
    %547 = arith.subf %543, %546 : vector<1x8x8xf32>
    %548 = math.exp %547 : vector<1x8x8xf32>
    %cst_188 = arith.constant dense<0.000000e+00> : vector<1x8xf32>
    %549 = vector.multi_reduction <add>, %548, %cst_188 [2] : vector<1x8x8xf32> to vector<1x8xf32>
    %550 = vector.shape_cast %549 : vector<1x8xf32> to vector<1x8x1xf32>
    %551 = tpu.reciprocal %550 {approx = true} : vector<1x8x1xf32> -> vector<1x8x1xf32>
    %552 = vector.broadcast %551 : vector<1x8x1xf32> to vector<1x8x8xf32>
    %553 = arith.mulf %548, %552 : vector<1x8x8xf32>
    %554 = arith.truncf %553 : vector<1x8x8xf32> to vector<1x8x8xbf16>
    %555 = arith.truncf %538 : vector<1x8x8xf32> to vector<1x8x8xbf16>
    "tpu.trace_start"() <{level = 10 : i32, message = "bqk,bkd->bqd"}> : () -> ()
    %cst_189 = arith.constant dense<0.000000e+00> : vector<1x8x8xf32>
    %556 = tpu.matmul %554, %555, %cst_189 {dimension_numbers = #tpu.dot_dimension_numbers<[2], [1], [1], [2], [0, 0, 0, 1, 1, 2], [0], [0]>} : vector<1x8x8xbf16>, vector<1x8x8xbf16>, vector<1x8x8xf32> -> vector<1x8x8xf32>
    "tpu.trace_stop"() : () -> ()
    %557 = vector.shape_cast %556 : vector<1x8x8xf32> to vector<8x8xf32>
    %558 = vector.extract_strided_slice %479 {offsets = [0, 24], sizes = [8, 8], strides = [1, 1]} : vector<8x96xf32> to vector<8x8xf32>
    %559 = vector.shape_cast %558 : vector<8x8xf32> to vector<1x8x8xf32>
    %560 = vector.extract_strided_slice %479 {offsets = [0, 56], sizes = [8, 8], strides = [1, 1]} : vector<8x96xf32> to vector<8x8xf32>
    %561 = vector.shape_cast %560 : vector<8x8xf32> to vector<1x8x8xf32>
    %562 = vector.extract_strided_slice %479 {offsets = [0, 88], sizes = [8, 8], strides = [1, 1]} : vector<8x96xf32> to vector<8x8xf32>
    %563 = vector.shape_cast %562 : vector<8x8xf32> to vector<1x8x8xf32>
    %564 = arith.truncf %559 : vector<1x8x8xf32> to vector<1x8x8xbf16>
    %565 = arith.truncf %561 : vector<1x8x8xf32> to vector<1x8x8xbf16>
    "tpu.trace_start"() <{level = 10 : i32, message = "bqd,bkd->bqk"}> : () -> ()
    %cst_190 = arith.constant dense<0.000000e+00> : vector<1x8x8xf32>
    %566 = tpu.matmul %564, %565, %cst_190 {dimension_numbers = #tpu.dot_dimension_numbers<[2], [2], [1], [1], [0, 0, 0, 1, 1, 1], [0], [0]>} : vector<1x8x8xbf16>, vector<1x8x8xbf16>, vector<1x8x8xf32> -> vector<1x8x8xf32>
    "tpu.trace_stop"() : () -> ()
    %567 = vector.shape_cast %0 : vector<8x8xf32> to vector<1x8x8xf32>
    %568 = arith.addf %566, %567 : vector<1x8x8xf32>
    %cst_191 = arith.constant dense<0xFF800000> : vector<1x8xf32>
    %569 = vector.multi_reduction <maximumf>, %568, %cst_191 [2] : vector<1x8x8xf32> to vector<1x8xf32>
    %570 = vector.shape_cast %569 : vector<1x8xf32> to vector<1x8x1xf32>
    %571 = vector.broadcast %570 : vector<1x8x1xf32> to vector<1x8x8xf32>
    %572 = arith.subf %568, %571 : vector<1x8x8xf32>
    %573 = math.exp %572 : vector<1x8x8xf32>
    %cst_192 = arith.constant dense<0.000000e+00> : vector<1x8xf32>
    %574 = vector.multi_reduction <add>, %573, %cst_192 [2] : vector<1x8x8xf32> to vector<1x8xf32>
    %575 = vector.shape_cast %574 : vector<1x8xf32> to vector<1x8x1xf32>
    %576 = tpu.reciprocal %575 {approx = true} : vector<1x8x1xf32> -> vector<1x8x1xf32>
    %577 = vector.broadcast %576 : vector<1x8x1xf32> to vector<1x8x8xf32>
    %578 = arith.mulf %573, %577 : vector<1x8x8xf32>
    %579 = arith.truncf %578 : vector<1x8x8xf32> to vector<1x8x8xbf16>
    %580 = arith.truncf %563 : vector<1x8x8xf32> to vector<1x8x8xbf16>
    "tpu.trace_start"() <{level = 10 : i32, message = "bqk,bkd->bqd"}> : () -> ()
    %cst_193 = arith.constant dense<0.000000e+00> : vector<1x8x8xf32>
    %581 = tpu.matmul %579, %580, %cst_193 {dimension_numbers = #tpu.dot_dimension_numbers<[2], [1], [1], [2], [0, 0, 0, 1, 1, 2], [0], [0]>} : vector<1x8x8xbf16>, vector<1x8x8xbf16>, vector<1x8x8xf32> -> vector<1x8x8xf32>
    "tpu.trace_stop"() : () -> ()
    %582 = vector.shape_cast %581 : vector<1x8x8xf32> to vector<8x8xf32>
    %583 = tpu.concatenate %507, %532, %557, %582 in 1 : vector<8x8xf32>, vector<8x8xf32>, vector<8x8xf32>, vector<8x8xf32> -> vector<8x32xf32>
    %584 = arith.truncf %583 : vector<8x32xf32> to vector<8x32xbf16>
    %cst_194 = arith.constant dense<0.000000e+00> : vector<8x32xf32>
    %585 = tpu.matmul %584, %482, %cst_194 {dimension_numbers = #tpu.dot_dimension_numbers<[1], [0], [0], [1], [0, 0, 1, 1], [], []>} : vector<8x32xbf16>, vector<32x32xbf16>, vector<8x32xf32> -> vector<8x32xf32>
    %c0_195 = arith.constant 0 : index
    %c0_196 = arith.constant 0 : index
    %586 = vector.load %arg11[%c0_195, %c0_196] : memref<2x32xf32, #tpu.memory_space<vmem>>, vector<1x32xf32>
    %587 = vector.broadcast %586 : vector<1x32xf32> to vector<8x32xf32>
    %588 = arith.addf %585, %587 : vector<8x32xf32>
    %589 = arith.addf %588, %448 : vector<8x32xf32>
    %c0_197 = arith.constant 0 : index
    %c0_198 = arith.constant 0 : index
    %590 = vector.load %arg12[%c0_197, %c0_198] : memref<2x32xf32, #tpu.memory_space<vmem>>, vector<1x32xf32>
    %c0_199 = arith.constant 0 : index
    %c0_200 = arith.constant 0 : index
    %591 = vector.load %arg13[%c0_199, %c0_200] : memref<2x32xf32, #tpu.memory_space<vmem>>, vector<1x32xf32>
    %cst_201 = arith.constant dense<0.000000e+00> : vector<8xf32>
    %592 = vector.multi_reduction <add>, %589, %cst_201 [1] : vector<8x32xf32> to vector<8xf32>
    %593 = vector.shape_cast %592 : vector<8xf32> to vector<8x1xf32>
    %cst_202 = arith.constant 3.200000e+01 : f32
    %594 = vector.broadcast %cst_202 : f32 to vector<8x1xf32>
    %595 = arith.divf %593, %594 : vector<8x1xf32>
    %596 = vector.broadcast %595 : vector<8x1xf32> to vector<8x32xf32>
    %597 = arith.subf %589, %596 : vector<8x32xf32>
    %598 = arith.mulf %597, %597 : vector<8x32xf32>
    %cst_203 = arith.constant dense<0.000000e+00> : vector<8xf32>
    %599 = vector.multi_reduction <add>, %598, %cst_203 [1] : vector<8x32xf32> to vector<8xf32>
    %600 = vector.shape_cast %599 : vector<8xf32> to vector<8x1xf32>
    %cst_204 = arith.constant 3.200000e+01 : f32
    %601 = vector.broadcast %cst_204 : f32 to vector<8x1xf32>
    %602 = arith.divf %600, %601 : vector<8x1xf32>
    %603 = vector.broadcast %595 : vector<8x1xf32> to vector<8x32xf32>
    %604 = arith.subf %589, %603 : vector<8x32xf32>
    %cst_205 = arith.constant 9.99999974E-6 : f32
    %605 = vector.broadcast %cst_205 : f32 to vector<8x1xf32>
    %606 = arith.addf %602, %605 : vector<8x1xf32>
    %607 = math.rsqrt %606 : vector<8x1xf32>
    %608 = vector.broadcast %607 : vector<8x1xf32> to vector<8x32xf32>
    %609 = arith.mulf %604, %608 : vector<8x32xf32>
    %610 = vector.broadcast %590 : vector<1x32xf32> to vector<8x32xf32>
    %611 = arith.mulf %609, %610 : vector<8x32xf32>
    %612 = vector.broadcast %591 : vector<1x32xf32> to vector<8x32xf32>
    %613 = arith.addf %611, %612 : vector<8x32xf32>
    %c0_206 = arith.constant 0 : index
    %c0_207 = arith.constant 0 : index
    %c0_208 = arith.constant 0 : index
    %614 = vector.load %arg14[%c0_206, %c0_207, %c0_208] : memref<2x32x128xbf16, #tpu.memory_space<vmem>>, vector<1x32x128xbf16>
    %615 = vector.shape_cast %614 : vector<1x32x128xbf16> to vector<32x128xbf16>
    %616 = arith.truncf %613 : vector<8x32xf32> to vector<8x32xbf16>
    %cst_209 = arith.constant dense<0.000000e+00> : vector<8x128xf32>
    %617 = tpu.matmul %616, %615, %cst_209 {dimension_numbers = #tpu.dot_dimension_numbers<[1], [0], [0], [1], [0, 0, 1, 1], [], []>} : vector<8x32xbf16>, vector<32x128xbf16>, vector<8x128xf32> -> vector<8x128xf32>
    %c0_210 = arith.constant 0 : index
    %c0_211 = arith.constant 0 : index
    %618 = vector.load %arg15[%c0_210, %c0_211] : memref<2x128xf32, #tpu.memory_space<vmem>>, vector<1x128xf32>
    %619 = vector.broadcast %618 : vector<1x128xf32> to vector<8x128xf32>
    %620 = arith.addf %617, %619 : vector<8x128xf32>
    %cst_212 = arith.constant 5.000000e-01 : f32
    %621 = vector.broadcast %cst_212 : f32 to vector<8x128xf32>
    %622 = arith.mulf %621, %620 : vector<8x128xf32>
    %cst_213 = arith.constant 4.471500e-02 : f32
    %623 = vector.broadcast %cst_213 : f32 to vector<8x128xf32>
    %624 = arith.mulf %623, %620 : vector<8x128xf32>
    %625 = arith.mulf %624, %620 : vector<8x128xf32>
    %626 = arith.mulf %625, %620 : vector<8x128xf32>
    %627 = arith.addf %620, %626 : vector<8x128xf32>
    %cst_214 = arith.constant 0.797884583 : f32
    %628 = vector.broadcast %cst_214 : f32 to vector<8x128xf32>
    %629 = arith.mulf %628, %627 : vector<8x128xf32>
    %630 = math.tanh %629 : vector<8x128xf32>
    %cst_215 = arith.constant 1.000000e+00 : f32
    %631 = vector.broadcast %cst_215 : f32 to vector<8x128xf32>
    %632 = arith.addf %631, %630 : vector<8x128xf32>
    %633 = arith.mulf %622, %632 : vector<8x128xf32>
    %c0_216 = arith.constant 0 : index
    %c0_217 = arith.constant 0 : index
    %c0_218 = arith.constant 0 : index
    %634 = vector.load %arg16[%c0_216, %c0_217, %c0_218] : memref<2x128x32xbf16, #tpu.memory_space<vmem>>, vector<1x128x32xbf16>
    %635 = vector.shape_cast %634 : vector<1x128x32xbf16> to vector<128x32xbf16>
    %636 = arith.truncf %633 : vector<8x128xf32> to vector<8x128xbf16>
    %cst_219 = arith.constant dense<0.000000e+00> : vector<8x32xf32>
    %637 = tpu.matmul %636, %635, %cst_219 {dimension_numbers = #tpu.dot_dimension_numbers<[1], [0], [0], [1], [0, 0, 1, 1], [], []>} : vector<8x128xbf16>, vector<128x32xbf16>, vector<8x32xf32> -> vector<8x32xf32>
    %c0_220 = arith.constant 0 : index
    %c0_221 = arith.constant 0 : index
    %638 = vector.load %arg17[%c0_220, %c0_221] : memref<2x32xf32, #tpu.memory_space<vmem>>, vector<1x32xf32>
    %639 = vector.broadcast %638 : vector<1x32xf32> to vector<8x32xf32>
    %640 = arith.addf %637, %639 : vector<8x32xf32>
    %641 = arith.addf %640, %589 : vector<8x32xf32>
    %c1_222 = arith.constant 1 : index
    %c0_223 = arith.constant 0 : index
    %642 = vector.load %arg6[%c1_222, %c0_223] : memref<2x32xf32, #tpu.memory_space<vmem>>, vector<1x32xf32>
    %c1_224 = arith.constant 1 : index
    %c0_225 = arith.constant 0 : index
    %643 = vector.load %arg7[%c1_224, %c0_225] : memref<2x32xf32, #tpu.memory_space<vmem>>, vector<1x32xf32>
    %cst_226 = arith.constant dense<0.000000e+00> : vector<8xf32>
    %644 = vector.multi_reduction <add>, %641, %cst_226 [1] : vector<8x32xf32> to vector<8xf32>
    %645 = vector.shape_cast %644 : vector<8xf32> to vector<8x1xf32>
    %cst_227 = arith.constant 3.200000e+01 : f32
    %646 = vector.broadcast %cst_227 : f32 to vector<8x1xf32>
    %647 = arith.divf %645, %646 : vector<8x1xf32>
    %648 = vector.broadcast %647 : vector<8x1xf32> to vector<8x32xf32>
    %649 = arith.subf %641, %648 : vector<8x32xf32>
    %650 = arith.mulf %649, %649 : vector<8x32xf32>
    %cst_228 = arith.constant dense<0.000000e+00> : vector<8xf32>
    %651 = vector.multi_reduction <add>, %650, %cst_228 [1] : vector<8x32xf32> to vector<8xf32>
    %652 = vector.shape_cast %651 : vector<8xf32> to vector<8x1xf32>
    %cst_229 = arith.constant 3.200000e+01 : f32
    %653 = vector.broadcast %cst_229 : f32 to vector<8x1xf32>
    %654 = arith.divf %652, %653 : vector<8x1xf32>
    %655 = vector.broadcast %647 : vector<8x1xf32> to vector<8x32xf32>
    %656 = arith.subf %641, %655 : vector<8x32xf32>
    %cst_230 = arith.constant 9.99999974E-6 : f32
    %657 = vector.broadcast %cst_230 : f32 to vector<8x1xf32>
    %658 = arith.addf %654, %657 : vector<8x1xf32>
    %659 = math.rsqrt %658 : vector<8x1xf32>
    %660 = vector.broadcast %659 : vector<8x1xf32> to vector<8x32xf32>
    %661 = arith.mulf %656, %660 : vector<8x32xf32>
    %662 = vector.broadcast %642 : vector<1x32xf32> to vector<8x32xf32>
    %663 = arith.mulf %661, %662 : vector<8x32xf32>
    %664 = vector.broadcast %643 : vector<1x32xf32> to vector<8x32xf32>
    %665 = arith.addf %663, %664 : vector<8x32xf32>
    %c1_231 = arith.constant 1 : index
    %c0_232 = arith.constant 0 : index
    %c0_233 = arith.constant 0 : index
    %666 = vector.load %arg8[%c1_231, %c0_232, %c0_233] : memref<2x32x96xbf16, #tpu.memory_space<vmem>>, vector<1x32x96xbf16>
    %667 = vector.shape_cast %666 : vector<1x32x96xbf16> to vector<32x96xbf16>
    %668 = arith.truncf %665 : vector<8x32xf32> to vector<8x32xbf16>
    %cst_234 = arith.constant dense<0.000000e+00> : vector<8x96xf32>
    %669 = tpu.matmul %668, %667, %cst_234 {dimension_numbers = #tpu.dot_dimension_numbers<[1], [0], [0], [1], [0, 0, 1, 1], [], []>} : vector<8x32xbf16>, vector<32x96xbf16>, vector<8x96xf32> -> vector<8x96xf32>
    %c1_235 = arith.constant 1 : index
    %c0_236 = arith.constant 0 : index
    %670 = vector.load %arg9[%c1_235, %c0_236] : memref<2x96xf32, #tpu.memory_space<vmem>>, vector<1x96xf32>
    %671 = vector.broadcast %670 : vector<1x96xf32> to vector<8x96xf32>
    %672 = arith.addf %669, %671 : vector<8x96xf32>
    %c1_237 = arith.constant 1 : index
    %c0_238 = arith.constant 0 : index
    %c0_239 = arith.constant 0 : index
    %c0_240 = arith.constant 0 : index
    %673 = vector.load %arg10[%c1_237, %c0_238, %c0_239, %c0_240] : memref<2x4x8x32xbf16, #tpu.memory_space<vmem>>, vector<1x4x8x32xbf16>
    %674 = vector.shape_cast %673 : vector<1x4x8x32xbf16> to vector<4x8x32xbf16>
    %675 = vector.shape_cast %674 : vector<4x8x32xbf16> to vector<32x32xbf16>
    %676 = vector.extract_strided_slice %672 {offsets = [0, 0], sizes = [8, 8], strides = [1, 1]} : vector<8x96xf32> to vector<8x8xf32>
    %677 = vector.shape_cast %676 : vector<8x8xf32> to vector<1x8x8xf32>
    %678 = vector.extract_strided_slice %672 {offsets = [0, 32], sizes = [8, 8], strides = [1, 1]} : vector<8x96xf32> to vector<8x8xf32>
    %679 = vector.shape_cast %678 : vector<8x8xf32> to vector<1x8x8xf32>
    %680 = vector.extract_strided_slice %672 {offsets = [0, 64], sizes = [8, 8], strides = [1, 1]} : vector<8x96xf32> to vector<8x8xf32>
    %681 = vector.shape_cast %680 : vector<8x8xf32> to vector<1x8x8xf32>
    %682 = arith.truncf %677 : vector<1x8x8xf32> to vector<1x8x8xbf16>
    %683 = arith.truncf %679 : vector<1x8x8xf32> to vector<1x8x8xbf16>
    "tpu.trace_start"() <{level = 10 : i32, message = "bqd,bkd->bqk"}> : () -> ()
    %cst_241 = arith.constant dense<0.000000e+00> : vector<1x8x8xf32>
    %684 = tpu.matmul %682, %683, %cst_241 {dimension_numbers = #tpu.dot_dimension_numbers<[2], [2], [1], [1], [0, 0, 0, 1, 1, 1], [0], [0]>} : vector<1x8x8xbf16>, vector<1x8x8xbf16>, vector<1x8x8xf32> -> vector<1x8x8xf32>
    "tpu.trace_stop"() : () -> ()
    %685 = vector.shape_cast %0 : vector<8x8xf32> to vector<1x8x8xf32>
    %686 = arith.addf %684, %685 : vector<1x8x8xf32>
    %cst_242 = arith.constant dense<0xFF800000> : vector<1x8xf32>
    %687 = vector.multi_reduction <maximumf>, %686, %cst_242 [2] : vector<1x8x8xf32> to vector<1x8xf32>
    %688 = vector.shape_cast %687 : vector<1x8xf32> to vector<1x8x1xf32>
    %689 = vector.broadcast %688 : vector<1x8x1xf32> to vector<1x8x8xf32>
    %690 = arith.subf %686, %689 : vector<1x8x8xf32>
    %691 = math.exp %690 : vector<1x8x8xf32>
    %cst_243 = arith.constant dense<0.000000e+00> : vector<1x8xf32>
    %692 = vector.multi_reduction <add>, %691, %cst_243 [2] : vector<1x8x8xf32> to vector<1x8xf32>
    %693 = vector.shape_cast %692 : vector<1x8xf32> to vector<1x8x1xf32>
    %694 = tpu.reciprocal %693 {approx = true} : vector<1x8x1xf32> -> vector<1x8x1xf32>
    %695 = vector.broadcast %694 : vector<1x8x1xf32> to vector<1x8x8xf32>
    %696 = arith.mulf %691, %695 : vector<1x8x8xf32>
    %697 = arith.truncf %696 : vector<1x8x8xf32> to vector<1x8x8xbf16>
    %698 = arith.truncf %681 : vector<1x8x8xf32> to vector<1x8x8xbf16>
    "tpu.trace_start"() <{level = 10 : i32, message = "bqk,bkd->bqd"}> : () -> ()
    %cst_244 = arith.constant dense<0.000000e+00> : vector<1x8x8xf32>
    %699 = tpu.matmul %697, %698, %cst_244 {dimension_numbers = #tpu.dot_dimension_numbers<[2], [1], [1], [2], [0, 0, 0, 1, 1, 2], [0], [0]>} : vector<1x8x8xbf16>, vector<1x8x8xbf16>, vector<1x8x8xf32> -> vector<1x8x8xf32>
    "tpu.trace_stop"() : () -> ()
    %700 = vector.shape_cast %699 : vector<1x8x8xf32> to vector<8x8xf32>
    %701 = vector.extract_strided_slice %672 {offsets = [0, 8], sizes = [8, 8], strides = [1, 1]} : vector<8x96xf32> to vector<8x8xf32>
    %702 = vector.shape_cast %701 : vector<8x8xf32> to vector<1x8x8xf32>
    %703 = vector.extract_strided_slice %672 {offsets = [0, 40], sizes = [8, 8], strides = [1, 1]} : vector<8x96xf32> to vector<8x8xf32>
    %704 = vector.shape_cast %703 : vector<8x8xf32> to vector<1x8x8xf32>
    %705 = vector.extract_strided_slice %672 {offsets = [0, 72], sizes = [8, 8], strides = [1, 1]} : vector<8x96xf32> to vector<8x8xf32>
    %706 = vector.shape_cast %705 : vector<8x8xf32> to vector<1x8x8xf32>
    %707 = arith.truncf %702 : vector<1x8x8xf32> to vector<1x8x8xbf16>
    %708 = arith.truncf %704 : vector<1x8x8xf32> to vector<1x8x8xbf16>
    "tpu.trace_start"() <{level = 10 : i32, message = "bqd,bkd->bqk"}> : () -> ()
    %cst_245 = arith.constant dense<0.000000e+00> : vector<1x8x8xf32>
    %709 = tpu.matmul %707, %708, %cst_245 {dimension_numbers = #tpu.dot_dimension_numbers<[2], [2], [1], [1], [0, 0, 0, 1, 1, 1], [0], [0]>} : vector<1x8x8xbf16>, vector<1x8x8xbf16>, vector<1x8x8xf32> -> vector<1x8x8xf32>
    "tpu.trace_stop"() : () -> ()
    %710 = vector.shape_cast %0 : vector<8x8xf32> to vector<1x8x8xf32>
    %711 = arith.addf %709, %710 : vector<1x8x8xf32>
    %cst_246 = arith.constant dense<0xFF800000> : vector<1x8xf32>
    %712 = vector.multi_reduction <maximumf>, %711, %cst_246 [2] : vector<1x8x8xf32> to vector<1x8xf32>
    %713 = vector.shape_cast %712 : vector<1x8xf32> to vector<1x8x1xf32>
    %714 = vector.broadcast %713 : vector<1x8x1xf32> to vector<1x8x8xf32>
    %715 = arith.subf %711, %714 : vector<1x8x8xf32>
    %716 = math.exp %715 : vector<1x8x8xf32>
    %cst_247 = arith.constant dense<0.000000e+00> : vector<1x8xf32>
    %717 = vector.multi_reduction <add>, %716, %cst_247 [2] : vector<1x8x8xf32> to vector<1x8xf32>
    %718 = vector.shape_cast %717 : vector<1x8xf32> to vector<1x8x1xf32>
    %719 = tpu.reciprocal %718 {approx = true} : vector<1x8x1xf32> -> vector<1x8x1xf32>
    %720 = vector.broadcast %719 : vector<1x8x1xf32> to vector<1x8x8xf32>
    %721 = arith.mulf %716, %720 : vector<1x8x8xf32>
    %722 = arith.truncf %721 : vector<1x8x8xf32> to vector<1x8x8xbf16>
    %723 = arith.truncf %706 : vector<1x8x8xf32> to vector<1x8x8xbf16>
    "tpu.trace_start"() <{level = 10 : i32, message = "bqk,bkd->bqd"}> : () -> ()
    %cst_248 = arith.constant dense<0.000000e+00> : vector<1x8x8xf32>
    %724 = tpu.matmul %722, %723, %cst_248 {dimension_numbers = #tpu.dot_dimension_numbers<[2], [1], [1], [2], [0, 0, 0, 1, 1, 2], [0], [0]>} : vector<1x8x8xbf16>, vector<1x8x8xbf16>, vector<1x8x8xf32> -> vector<1x8x8xf32>
    "tpu.trace_stop"() : () -> ()
    %725 = vector.shape_cast %724 : vector<1x8x8xf32> to vector<8x8xf32>
    %726 = vector.extract_strided_slice %672 {offsets = [0, 16], sizes = [8, 8], strides = [1, 1]} : vector<8x96xf32> to vector<8x8xf32>
    %727 = vector.shape_cast %726 : vector<8x8xf32> to vector<1x8x8xf32>
    %728 = vector.extract_strided_slice %672 {offsets = [0, 48], sizes = [8, 8], strides = [1, 1]} : vector<8x96xf32> to vector<8x8xf32>
    %729 = vector.shape_cast %728 : vector<8x8xf32> to vector<1x8x8xf32>
    %730 = vector.extract_strided_slice %672 {offsets = [0, 80], sizes = [8, 8], strides = [1, 1]} : vector<8x96xf32> to vector<8x8xf32>
    %731 = vector.shape_cast %730 : vector<8x8xf32> to vector<1x8x8xf32>
    %732 = arith.truncf %727 : vector<1x8x8xf32> to vector<1x8x8xbf16>
    %733 = arith.truncf %729 : vector<1x8x8xf32> to vector<1x8x8xbf16>
    "tpu.trace_start"() <{level = 10 : i32, message = "bqd,bkd->bqk"}> : () -> ()
    %cst_249 = arith.constant dense<0.000000e+00> : vector<1x8x8xf32>
    %734 = tpu.matmul %732, %733, %cst_249 {dimension_numbers = #tpu.dot_dimension_numbers<[2], [2], [1], [1], [0, 0, 0, 1, 1, 1], [0], [0]>} : vector<1x8x8xbf16>, vector<1x8x8xbf16>, vector<1x8x8xf32> -> vector<1x8x8xf32>
    "tpu.trace_stop"() : () -> ()
    %735 = vector.shape_cast %0 : vector<8x8xf32> to vector<1x8x8xf32>
    %736 = arith.addf %734, %735 : vector<1x8x8xf32>
    %cst_250 = arith.constant dense<0xFF800000> : vector<1x8xf32>
    %737 = vector.multi_reduction <maximumf>, %736, %cst_250 [2] : vector<1x8x8xf32> to vector<1x8xf32>
    %738 = vector.shape_cast %737 : vector<1x8xf32> to vector<1x8x1xf32>
    %739 = vector.broadcast %738 : vector<1x8x1xf32> to vector<1x8x8xf32>
    %740 = arith.subf %736, %739 : vector<1x8x8xf32>
    %741 = math.exp %740 : vector<1x8x8xf32>
    %cst_251 = arith.constant dense<0.000000e+00> : vector<1x8xf32>
    %742 = vector.multi_reduction <add>, %741, %cst_251 [2] : vector<1x8x8xf32> to vector<1x8xf32>
    %743 = vector.shape_cast %742 : vector<1x8xf32> to vector<1x8x1xf32>
    %744 = tpu.reciprocal %743 {approx = true} : vector<1x8x1xf32> -> vector<1x8x1xf32>
    %745 = vector.broadcast %744 : vector<1x8x1xf32> to vector<1x8x8xf32>
    %746 = arith.mulf %741, %745 : vector<1x8x8xf32>
    %747 = arith.truncf %746 : vector<1x8x8xf32> to vector<1x8x8xbf16>
    %748 = arith.truncf %731 : vector<1x8x8xf32> to vector<1x8x8xbf16>
    "tpu.trace_start"() <{level = 10 : i32, message = "bqk,bkd->bqd"}> : () -> ()
    %cst_252 = arith.constant dense<0.000000e+00> : vector<1x8x8xf32>
    %749 = tpu.matmul %747, %748, %cst_252 {dimension_numbers = #tpu.dot_dimension_numbers<[2], [1], [1], [2], [0, 0, 0, 1, 1, 2], [0], [0]>} : vector<1x8x8xbf16>, vector<1x8x8xbf16>, vector<1x8x8xf32> -> vector<1x8x8xf32>
    "tpu.trace_stop"() : () -> ()
    %750 = vector.shape_cast %749 : vector<1x8x8xf32> to vector<8x8xf32>
    %751 = vector.extract_strided_slice %672 {offsets = [0, 24], sizes = [8, 8], strides = [1, 1]} : vector<8x96xf32> to vector<8x8xf32>
    %752 = vector.shape_cast %751 : vector<8x8xf32> to vector<1x8x8xf32>
    %753 = vector.extract_strided_slice %672 {offsets = [0, 56], sizes = [8, 8], strides = [1, 1]} : vector<8x96xf32> to vector<8x8xf32>
    %754 = vector.shape_cast %753 : vector<8x8xf32> to vector<1x8x8xf32>
    %755 = vector.extract_strided_slice %672 {offsets = [0, 88], sizes = [8, 8], strides = [1, 1]} : vector<8x96xf32> to vector<8x8xf32>
    %756 = vector.shape_cast %755 : vector<8x8xf32> to vector<1x8x8xf32>
    %757 = arith.truncf %752 : vector<1x8x8xf32> to vector<1x8x8xbf16>
    %758 = arith.truncf %754 : vector<1x8x8xf32> to vector<1x8x8xbf16>
    "tpu.trace_start"() <{level = 10 : i32, message = "bqd,bkd->bqk"}> : () -> ()
    %cst_253 = arith.constant dense<0.000000e+00> : vector<1x8x8xf32>
    %759 = tpu.matmul %757, %758, %cst_253 {dimension_numbers = #tpu.dot_dimension_numbers<[2], [2], [1], [1], [0, 0, 0, 1, 1, 1], [0], [0]>} : vector<1x8x8xbf16>, vector<1x8x8xbf16>, vector<1x8x8xf32> -> vector<1x8x8xf32>
    "tpu.trace_stop"() : () -> ()
    %760 = vector.shape_cast %0 : vector<8x8xf32> to vector<1x8x8xf32>
    %761 = arith.addf %759, %760 : vector<1x8x8xf32>
    %cst_254 = arith.constant dense<0xFF800000> : vector<1x8xf32>
    %762 = vector.multi_reduction <maximumf>, %761, %cst_254 [2] : vector<1x8x8xf32> to vector<1x8xf32>
    %763 = vector.shape_cast %762 : vector<1x8xf32> to vector<1x8x1xf32>
    %764 = vector.broadcast %763 : vector<1x8x1xf32> to vector<1x8x8xf32>
    %765 = arith.subf %761, %764 : vector<1x8x8xf32>
    %766 = math.exp %765 : vector<1x8x8xf32>
    %cst_255 = arith.constant dense<0.000000e+00> : vector<1x8xf32>
    %767 = vector.multi_reduction <add>, %766, %cst_255 [2] : vector<1x8x8xf32> to vector<1x8xf32>
    %768 = vector.shape_cast %767 : vector<1x8xf32> to vector<1x8x1xf32>
    %769 = tpu.reciprocal %768 {approx = true} : vector<1x8x1xf32> -> vector<1x8x1xf32>
    %770 = vector.broadcast %769 : vector<1x8x1xf32> to vector<1x8x8xf32>
    %771 = arith.mulf %766, %770 : vector<1x8x8xf32>
    %772 = arith.truncf %771 : vector<1x8x8xf32> to vector<1x8x8xbf16>
    %773 = arith.truncf %756 : vector<1x8x8xf32> to vector<1x8x8xbf16>
    "tpu.trace_start"() <{level = 10 : i32, message = "bqk,bkd->bqd"}> : () -> ()
    %cst_256 = arith.constant dense<0.000000e+00> : vector<1x8x8xf32>
    %774 = tpu.matmul %772, %773, %cst_256 {dimension_numbers = #tpu.dot_dimension_numbers<[2], [1], [1], [2], [0, 0, 0, 1, 1, 2], [0], [0]>} : vector<1x8x8xbf16>, vector<1x8x8xbf16>, vector<1x8x8xf32> -> vector<1x8x8xf32>
    "tpu.trace_stop"() : () -> ()
    %775 = vector.shape_cast %774 : vector<1x8x8xf32> to vector<8x8xf32>
    %776 = tpu.concatenate %700, %725, %750, %775 in 1 : vector<8x8xf32>, vector<8x8xf32>, vector<8x8xf32>, vector<8x8xf32> -> vector<8x32xf32>
    %777 = arith.truncf %776 : vector<8x32xf32> to vector<8x32xbf16>
    %cst_257 = arith.constant dense<0.000000e+00> : vector<8x32xf32>
    %778 = tpu.matmul %777, %675, %cst_257 {dimension_numbers = #tpu.dot_dimension_numbers<[1], [0], [0], [1], [0, 0, 1, 1], [], []>} : vector<8x32xbf16>, vector<32x32xbf16>, vector<8x32xf32> -> vector<8x32xf32>
    %c1_258 = arith.constant 1 : index
    %c0_259 = arith.constant 0 : index
    %779 = vector.load %arg11[%c1_258, %c0_259] : memref<2x32xf32, #tpu.memory_space<vmem>>, vector<1x32xf32>
    %780 = vector.broadcast %779 : vector<1x32xf32> to vector<8x32xf32>
    %781 = arith.addf %778, %780 : vector<8x32xf32>
    %782 = arith.addf %781, %641 : vector<8x32xf32>
    %c1_260 = arith.constant 1 : index
    %c0_261 = arith.constant 0 : index
    %783 = vector.load %arg12[%c1_260, %c0_261] : memref<2x32xf32, #tpu.memory_space<vmem>>, vector<1x32xf32>
    %c1_262 = arith.constant 1 : index
    %c0_263 = arith.constant 0 : index
    %784 = vector.load %arg13[%c1_262, %c0_263] : memref<2x32xf32, #tpu.memory_space<vmem>>, vector<1x32xf32>
    %cst_264 = arith.constant dense<0.000000e+00> : vector<8xf32>
    %785 = vector.multi_reduction <add>, %782, %cst_264 [1] : vector<8x32xf32> to vector<8xf32>
    %786 = vector.shape_cast %785 : vector<8xf32> to vector<8x1xf32>
    %cst_265 = arith.constant 3.200000e+01 : f32
    %787 = vector.broadcast %cst_265 : f32 to vector<8x1xf32>
    %788 = arith.divf %786, %787 : vector<8x1xf32>
    %789 = vector.broadcast %788 : vector<8x1xf32> to vector<8x32xf32>
    %790 = arith.subf %782, %789 : vector<8x32xf32>
    %791 = arith.mulf %790, %790 : vector<8x32xf32>
    %cst_266 = arith.constant dense<0.000000e+00> : vector<8xf32>
    %792 = vector.multi_reduction <add>, %791, %cst_266 [1] : vector<8x32xf32> to vector<8xf32>
    %793 = vector.shape_cast %792 : vector<8xf32> to vector<8x1xf32>
    %cst_267 = arith.constant 3.200000e+01 : f32
    %794 = vector.broadcast %cst_267 : f32 to vector<8x1xf32>
    %795 = arith.divf %793, %794 : vector<8x1xf32>
    %796 = vector.broadcast %788 : vector<8x1xf32> to vector<8x32xf32>
    %797 = arith.subf %782, %796 : vector<8x32xf32>
    %cst_268 = arith.constant 9.99999974E-6 : f32
    %798 = vector.broadcast %cst_268 : f32 to vector<8x1xf32>
    %799 = arith.addf %795, %798 : vector<8x1xf32>
    %800 = math.rsqrt %799 : vector<8x1xf32>
    %801 = vector.broadcast %800 : vector<8x1xf32> to vector<8x32xf32>
    %802 = arith.mulf %797, %801 : vector<8x32xf32>
    %803 = vector.broadcast %783 : vector<1x32xf32> to vector<8x32xf32>
    %804 = arith.mulf %802, %803 : vector<8x32xf32>
    %805 = vector.broadcast %784 : vector<1x32xf32> to vector<8x32xf32>
    %806 = arith.addf %804, %805 : vector<8x32xf32>
    %c1_269 = arith.constant 1 : index
    %c0_270 = arith.constant 0 : index
    %c0_271 = arith.constant 0 : index
    %807 = vector.load %arg14[%c1_269, %c0_270, %c0_271] : memref<2x32x128xbf16, #tpu.memory_space<vmem>>, vector<1x32x128xbf16>
    %808 = vector.shape_cast %807 : vector<1x32x128xbf16> to vector<32x128xbf16>
    %809 = arith.truncf %806 : vector<8x32xf32> to vector<8x32xbf16>
    %cst_272 = arith.constant dense<0.000000e+00> : vector<8x128xf32>
    %810 = tpu.matmul %809, %808, %cst_272 {dimension_numbers = #tpu.dot_dimension_numbers<[1], [0], [0], [1], [0, 0, 1, 1], [], []>} : vector<8x32xbf16>, vector<32x128xbf16>, vector<8x128xf32> -> vector<8x128xf32>
    %c1_273 = arith.constant 1 : index
    %c0_274 = arith.constant 0 : index
    %811 = vector.load %arg15[%c1_273, %c0_274] : memref<2x128xf32, #tpu.memory_space<vmem>>, vector<1x128xf32>
    %812 = vector.broadcast %811 : vector<1x128xf32> to vector<8x128xf32>
    %813 = arith.addf %810, %812 : vector<8x128xf32>
    %cst_275 = arith.constant 5.000000e-01 : f32
    %814 = vector.broadcast %cst_275 : f32 to vector<8x128xf32>
    %815 = arith.mulf %814, %813 : vector<8x128xf32>
    %cst_276 = arith.constant 4.471500e-02 : f32
    %816 = vector.broadcast %cst_276 : f32 to vector<8x128xf32>
    %817 = arith.mulf %816, %813 : vector<8x128xf32>
    %818 = arith.mulf %817, %813 : vector<8x128xf32>
    %819 = arith.mulf %818, %813 : vector<8x128xf32>
    %820 = arith.addf %813, %819 : vector<8x128xf32>
    %cst_277 = arith.constant 0.797884583 : f32
    %821 = vector.broadcast %cst_277 : f32 to vector<8x128xf32>
    %822 = arith.mulf %821, %820 : vector<8x128xf32>
    %823 = math.tanh %822 : vector<8x128xf32>
    %cst_278 = arith.constant 1.000000e+00 : f32
    %824 = vector.broadcast %cst_278 : f32 to vector<8x128xf32>
    %825 = arith.addf %824, %823 : vector<8x128xf32>
    %826 = arith.mulf %815, %825 : vector<8x128xf32>
    %c1_279 = arith.constant 1 : index
    %c0_280 = arith.constant 0 : index
    %c0_281 = arith.constant 0 : index
    %827 = vector.load %arg16[%c1_279, %c0_280, %c0_281] : memref<2x128x32xbf16, #tpu.memory_space<vmem>>, vector<1x128x32xbf16>
    %828 = vector.shape_cast %827 : vector<1x128x32xbf16> to vector<128x32xbf16>
    %829 = arith.truncf %826 : vector<8x128xf32> to vector<8x128xbf16>
    %cst_282 = arith.constant dense<0.000000e+00> : vector<8x32xf32>
    %830 = tpu.matmul %829, %828, %cst_282 {dimension_numbers = #tpu.dot_dimension_numbers<[1], [0], [0], [1], [0, 0, 1, 1], [], []>} : vector<8x128xbf16>, vector<128x32xbf16>, vector<8x32xf32> -> vector<8x32xf32>
    %c1_283 = arith.constant 1 : index
    %c0_284 = arith.constant 0 : index
    %831 = vector.load %arg17[%c1_283, %c0_284] : memref<2x32xf32, #tpu.memory_space<vmem>>, vector<1x32xf32>
    %832 = vector.broadcast %831 : vector<1x32xf32> to vector<8x32xf32>
    %833 = arith.addf %830, %832 : vector<8x32xf32>
    %834 = arith.addf %833, %782 : vector<8x32xf32>
    %c0_285 = arith.constant 0 : index
    %c0_286 = arith.constant 0 : index
    %835 = vector.load %arg18[%c0_285, %c0_286] : memref<1x32xf32, #tpu.memory_space<vmem>>, vector<1x32xf32>
    %c0_287 = arith.constant 0 : index
    %c0_288 = arith.constant 0 : index
    %836 = vector.load %arg19[%c0_287, %c0_288] : memref<1x32xf32, #tpu.memory_space<vmem>>, vector<1x32xf32>
    %cst_289 = arith.constant dense<0.000000e+00> : vector<8xf32>
    %837 = vector.multi_reduction <add>, %834, %cst_289 [1] : vector<8x32xf32> to vector<8xf32>
    %838 = vector.shape_cast %837 : vector<8xf32> to vector<8x1xf32>
    %cst_290 = arith.constant 3.200000e+01 : f32
    %839 = vector.broadcast %cst_290 : f32 to vector<8x1xf32>
    %840 = arith.divf %838, %839 : vector<8x1xf32>
    %841 = vector.broadcast %840 : vector<8x1xf32> to vector<8x32xf32>
    %842 = arith.subf %834, %841 : vector<8x32xf32>
    %843 = arith.mulf %842, %842 : vector<8x32xf32>
    %cst_291 = arith.constant dense<0.000000e+00> : vector<8xf32>
    %844 = vector.multi_reduction <add>, %843, %cst_291 [1] : vector<8x32xf32> to vector<8xf32>
    %845 = vector.shape_cast %844 : vector<8xf32> to vector<8x1xf32>
    %cst_292 = arith.constant 3.200000e+01 : f32
    %846 = vector.broadcast %cst_292 : f32 to vector<8x1xf32>
    %847 = arith.divf %845, %846 : vector<8x1xf32>
    %848 = vector.broadcast %840 : vector<8x1xf32> to vector<8x32xf32>
    %849 = arith.subf %834, %848 : vector<8x32xf32>
    %cst_293 = arith.constant 9.99999974E-6 : f32
    %850 = vector.broadcast %cst_293 : f32 to vector<8x1xf32>
    %851 = arith.addf %847, %850 : vector<8x1xf32>
    %852 = math.rsqrt %851 : vector<8x1xf32>
    %853 = vector.broadcast %852 : vector<8x1xf32> to vector<8x32xf32>
    %854 = arith.mulf %849, %853 : vector<8x32xf32>
    %855 = vector.broadcast %835 : vector<1x32xf32> to vector<8x32xf32>
    %856 = arith.mulf %854, %855 : vector<8x32xf32>
    %857 = vector.broadcast %836 : vector<1x32xf32> to vector<8x32xf32>
    %858 = arith.addf %856, %857 : vector<8x32xf32>
    %c0_294 = arith.constant 0 : index
    %c0_295 = arith.constant 0 : index
    %859 = vector.load %arg20[%c0_294, %c0_295] : memref<32x8xbf16, #tpu.memory_space<vmem>>, vector<32x8xbf16>
    %860 = arith.truncf %858 : vector<8x32xf32> to vector<8x32xbf16>
    %cst_296 = arith.constant dense<0.000000e+00> : vector<8x8xf32>
    %861 = tpu.matmul %860, %859, %cst_296 {dimension_numbers = #tpu.dot_dimension_numbers<[1], [0], [0], [1], [0, 0, 1, 1], [], []>} : vector<8x32xbf16>, vector<32x8xbf16>, vector<8x8xf32> -> vector<8x8xf32>
    %c0_297 = arith.constant 0 : index
    %c0_298 = arith.constant 0 : index
    %862 = vector.load %arg21[%c0_297, %c0_298] : memref<1x8xf32, #tpu.memory_space<vmem>>, vector<1x8xf32>
    %863 = vector.broadcast %862 : vector<1x8xf32> to vector<8x8xf32>
    %864 = arith.addf %861, %863 : vector<8x8xf32>
    %865 = vector.shape_cast %864 : vector<8x8xf32> to vector<1x8x8xf32>
    %c0_299 = arith.constant 0 : index
    %c0_300 = arith.constant 0 : index
    %c1_301 = arith.constant 1 : index
    %c0_302 = arith.constant 0 : index
    %866 = vector.load %arg22[%c0_299, %c0_300, %c1_301, %c0_302] : memref<1x8x2x8xf32, #tpu.memory_space<vmem>>, vector<1x8x1x8xf32>
    %867 = vector.shape_cast %866 : vector<1x8x1x8xf32> to vector<1x8x8xf32>
    %868 = vector.shape_cast %865 : vector<1x8x8xf32> to vector<1x8x1x8xf32>
    tpu.vector_store %arg22[%c0_299, %c0_300, %c1_301, %c0_302], %868 {strides = array<i32>} : memref<1x8x2x8xf32, #tpu.memory_space<vmem>>, vector<1x8x1x8xf32>,
    return
  }
  func.func @transform_0(%arg0: i32) -> (i32, i32, i32, i32) {
    %c0_i32 = arith.constant 0 : i32
    %c0_i32_0 = arith.constant 0 : i32
    %c0_i32_1 = arith.constant 0 : i32
    %c0_i32_2 = arith.constant 0 : i32
    return %arg0, %c0_i32, %c0_i32_0, %c0_i32_1 : i32, i32, i32, i32
  }
  func.func @transform_1(%arg0: i32) -> (i32, i32) {
    %c0_i32 = arith.constant 0 : i32
    %c0_i32_0 = arith.constant 0 : i32
    %c0_i32_1 = arith.constant 0 : i32
    return %c0_i32, %c0_i32_0 : i32, i32
  }
  func.func @transform_2(%arg0: i32) -> (i32, i32) {
    %c0_i32 = arith.constant 0 : i32
    %c0_i32_0 = arith.constant 0 : i32
    %c0_i32_1 = arith.constant 0 : i32
    return %c0_i32, %c0_i32_0 : i32, i32
  }
  func.func @transform_3(%arg0: i32) -> (i32, i32) {
    %c0_i32 = arith.constant 0 : i32
    %c0_i32_0 = arith.constant 0 : i32
    %c0_i32_1 = arith.constant 0 : i32
    return %c0_i32, %c0_i32_0 : i32, i32
  }
  func.func @transform_4(%arg0: i32) -> (i32, i32) {
    %c0_i32 = arith.constant 0 : i32
    %c0_i32_0 = arith.constant 0 : i32
    %c0_i32_1 = arith.constant 0 : i32
    return %c0_i32, %c0_i32_0 : i32, i32
  }
  func.func @transform_5(%arg0: i32) -> (i32, i32) {
    %c0_i32 = arith.constant 0 : i32
    %c0_i32_0 = arith.constant 0 : i32
    %c0_i32_1 = arith.constant 0 : i32
    return %c0_i32, %c0_i32_0 : i32, i32
  }
  func.func @transform_6(%arg0: i32) -> (i32, i32) {
    %c0_i32 = arith.constant 0 : i32
    %c0_i32_0 = arith.constant 0 : i32
    %c0_i32_1 = arith.constant 0 : i32
    return %c0_i32, %c0_i32_0 : i32, i32
  }
  func.func @transform_7(%arg0: i32) -> (i32, i32, i32) {
    %c0_i32 = arith.constant 0 : i32
    %c0_i32_0 = arith.constant 0 : i32
    %c0_i32_1 = arith.constant 0 : i32
    %c0_i32_2 = arith.constant 0 : i32
    return %c0_i32, %c0_i32_0, %c0_i32_1 : i32, i32, i32
  }
  func.func @transform_8(%arg0: i32) -> (i32, i32) {
    %c0_i32 = arith.constant 0 : i32
    %c0_i32_0 = arith.constant 0 : i32
    %c0_i32_1 = arith.constant 0 : i32
    return %c0_i32, %c0_i32_0 : i32, i32
  }
  func.func @transform_9(%arg0: i32) -> (i32, i32, i32, i32) {
    %c0_i32 = arith.constant 0 : i32
    %c0_i32_0 = arith.constant 0 : i32
    %c0_i32_1 = arith.constant 0 : i32
    %c0_i32_2 = arith.constant 0 : i32
    %c0_i32_3 = arith.constant 0 : i32
    return %c0_i32, %c0_i32_0, %c0_i32_1, %c0_i32_2 : i32, i32, i32, i32
  }
  func.func @transform_10(%arg0: i32) -> (i32, i32) {
    %c0_i32 = arith.constant 0 : i32
    %c0_i32_0 = arith.constant 0 : i32
    %c0_i32_1 = arith.constant 0 : i32
    return %c0_i32, %c0_i32_0 : i32, i32
  }
  func.func @transform_11(%arg0: i32) -> (i32, i32) {
    %c0_i32 = arith.constant 0 : i32
    %c0_i32_0 = arith.constant 0 : i32
    %c0_i32_1 = arith.constant 0 : i32
    return %c0_i32, %c0_i32_0 : i32, i32
  }
  func.func @transform_12(%arg0: i32) -> (i32, i32) {
    %c0_i32 = arith.constant 0 : i32
    %c0_i32_0 = arith.constant 0 : i32
    %c0_i32_1 = arith.constant 0 : i32
    return %c0_i32, %c0_i32_0 : i32, i32
  }
  func.func @transform_13(%arg0: i32) -> (i32, i32, i32) {
    %c0_i32 = arith.constant 0 : i32
    %c0_i32_0 = arith.constant 0 : i32
    %c0_i32_1 = arith.constant 0 : i32
    %c0_i32_2 = arith.constant 0 : i32
    return %c0_i32, %c0_i32_0, %c0_i32_1 : i32, i32, i32
  }
  func.func @transform_14(%arg0: i32) -> (i32, i32) {
    %c0_i32 = arith.constant 0 : i32
    %c0_i32_0 = arith.constant 0 : i32
    %c0_i32_1 = arith.constant 0 : i32
    return %c0_i32, %c0_i32_0 : i32, i32
  }
  func.func @transform_15(%arg0: i32) -> (i32, i32, i32) {
    %c0_i32 = arith.constant 0 : i32
    %c0_i32_0 = arith.constant 0 : i32
    %c0_i32_1 = arith.constant 0 : i32
    %c0_i32_2 = arith.constant 0 : i32
    return %c0_i32, %c0_i32_0, %c0_i32_1 : i32, i32, i32
  }
  func.func @transform_16(%arg0: i32) -> (i32, i32) {
    %c0_i32 = arith.constant 0 : i32
    %c0_i32_0 = arith.constant 0 : i32
    %c0_i32_1 = arith.constant 0 : i32
    return %c0_i32, %c0_i32_0 : i32, i32
  }
  func.func @transform_17(%arg0: i32) -> (i32, i32) {
    %c0_i32 = arith.constant 0 : i32
    %c0_i32_0 = arith.constant 0 : i32
    %c0_i32_1 = arith.constant 0 : i32
    return %c0_i32, %c0_i32_0 : i32, i32
  }
  func.func @transform_18(%arg0: i32) -> (i32, i32) {
    %c0_i32 = arith.constant 0 : i32
    %c0_i32_0 = arith.constant 0 : i32
    %c0_i32_1 = arith.constant 0 : i32
    return %c0_i32, %c0_i32_0 : i32, i32
  }
  func.func @transform_19(%arg0: i32) -> (i32, i32) {
    %c0_i32 = arith.constant 0 : i32
    %c0_i32_0 = arith.constant 0 : i32
    %c0_i32_1 = arith.constant 0 : i32
    return %c0_i32, %c0_i32_0 : i32, i32
  }
  func.func @transform_20(%arg0: i32) -> (i32, i32) {
    %c0_i32 = arith.constant 0 : i32
    %c0_i32_0 = arith.constant 0 : i32
    %c0_i32_1 = arith.constant 0 : i32
    return %c0_i32, %c0_i32_0 : i32, i32
  }
  func.func @transform_21(%arg0: i32) -> (i32, i32, i32, i32) {
    %c0_i32 = arith.constant 0 : i32
    %c0_i32_0 = arith.constant 0 : i32
    %c0_i32_1 = arith.constant 0 : i32
    %c0_i32_2 = arith.constant 0 : i32
    return %arg0, %c0_i32, %c0_i32_0, %c0_i32_1 : i32, i32, i32, i32
  }
}

</mosaic_0001>

<bundles_post_ra>
// kernel: tpu_custom_call.1
= control target key start
LH: loop header
LB: loop body
LE: loop exit
PB: predicated region body
PF: predicated region fallthrough
CT: control target
= control target key end

     0   :  { %s6750_s0 = inlined_call_operand.vmem [shape: f32[2,8,2,16], index: 0, kind: input, shape index: {}]   ;;  %s6751_s1 = inlined_call_operand.vmem [shape: f32[8,32], index: 1, kind: input, shape index: {}]   ;;  %s6752_s2 = inlined_call_operand.vmem [shape: f32[8,8], index: 2, kind: input, shape index: {}]   ;;  %s6753_s3 = inlined_call_operand.vmem [shape: bf16[16,32], index: 3, kind: input, shape index: {}]   ;;  %s6754_s4 = inlined_call_operand.vmem [shape: f32[1,32], index: 4, kind: input, shape index: {}]   ;;  %s6755_s5 = inlined_call_operand.vmem [shape: f32[2,32], index: 5, kind: input, shape index: {}]   ;;  %s6756_s6 = inlined_call_operand.vmem [shape: f32[2,32], index: 6, kind: input, shape index: {}]   ;;  %s6757_s7 = inlined_call_operand.vmem [shape: bf16[2,32,96], index: 7, kind: input, shape index: {}]   ;;  %s6758_s8 = inlined_call_operand.vmem [shape: f32[2,96], index: 8, kind: input, shape index: {}]   ;;  %s6759_s9 = inlined_call_operand.vmem [shape: bf16[2,4,8,32], index: 9, kind: input, shape index: {}]   ;;  %s6760_s10 = inlined_call_operand.vmem [shape: f32[2,32], index: 10, kind: input, shape index: {}]   ;;  %s6761_s11 = inlined_call_operand.vmem [shape: f32[2,32], index: 11, kind: input, shape index: {}]   ;;  %s6762_s12 = inlined_call_operand.vmem [shape: f32[2,32], index: 12, kind: input, shape index: {}]   ;;  %s6763_s13 = inlined_call_operand.vmem [shape: bf16[2,32,128], index: 13, kind: input, shape index: {}]   ;;  %s6764_s14 = inlined_call_operand.vmem [shape: f32[2,128], index: 14, kind: input, shape index: {}]   ;;  %s6765_s15 = inlined_call_operand.vmem [shape: bf16[2,128,32], index: 15, kind: input, shape index: {}]   ;;  %s6766_s16 = inlined_call_operand.vmem [shape: f32[2,32], index: 16, kind: input, shape index: {}]   ;;  %s6767_s17 = inlined_call_operand.vmem [shape: f32[1,32], index: 17, kind: input, shape index: {}]   ;;  %s6768_s18 = inlined_call_operand.vmem [shape: f32[1,32], index: 18, kind: input, shape index: {}]   ;;  %s6769_s19 = inlined_call_operand.vmem [shape: bf16[32,8], index: 19, kind: input, shape index: {}]   ;;  %s6770_s20 = inlined_call_operand.vmem [shape: f32[1,8], index: 20, kind: input, shape index: {}]   ;;  %s6771_s21 = inlined_call_operand.hbm [shape: f32[2,8,2,8], index: 21, kind: output, shape index: {}]  }
   0x1   :  { %6827 = sst [smem:[#allocation15_spill]] %s6750_s0 }
   0x2   :  { %6828 = sst [smem:[#allocation16_spill]] %s6751_s1 }
   0x3   :  { %6829 = sst [smem:[#allocation17_spill]] %s6752_s2 }
   0x4   :  { %6830 = sst [smem:[#allocation18_spill]] %s6753_s3 }
   0x5   :  { %6831 = sst [smem:[#allocation19_spill]] %s6754_s4 }
   0x6   :  { %6832 = sst [smem:[#allocation20_spill]] %s6755_s5 }
   0x7   :  { %6833 = sst [smem:[#allocation21_spill]] %s6760_s10 }
   0x8   :  { %6834 = sst [smem:[#allocation22_spill]] %s6761_s11 }
   0x9   :  { %6835 = sst [smem:[#allocation23_spill]] %s6762_s12 }
   0xa   :  { %6836 = sst [smem:[#allocation24_spill]] %s6763_s13 }
   0xb   :  { %6837 = sst [smem:[#allocation25_spill]] %s6767_s17 }
   0xc   :  { %6838 = sst [smem:[#allocation26_spill]] %s6768_s18 }
   0xd   :  { %6839 = sst [smem:[#allocation27_spill]] %s6769_s19 }
   0xe   :  { %6840 = sst [smem:[#allocation28_spill]] %s6770_s20 }
   0xf   :  { %6841 = sst [smem:[#allocation29_spill]] %s6771_s21 }
  0x10   :  { %26 = vsyncpa [#allocation3], 0 }
  0x11   :  { %28 = vsyncpa [#allocation3 + $0x1], 0  ;;  %s5710_s2 = smov 0   ;;  %s5712_s25 = smov 0  }
  0x12   :  { %s5714_s26 = smov 0   ;;  %s5716_s27 = smov 0  }
  0x13 LB: > { %6842 = sst [smem:[#allocation5_spill]] %s5566_s2  ;;  %s5731_s3 = sadd.s32 4294967295, %s5578_s27   ;;  %s5578_s27 = sphi %s5716_s27, %s6910_s27   ;;  %s5574_s26 = sphi %s5714_s26, %s6913_s26   ;;  %s5570_s25 = sphi %s5712_s25, %s6912_s25   ;;  %s5566_s2 = sphi %s5710_s2, %s6911_s2  }
  0x14   : > { %6843 = sst [smem:[#allocation6_spill]] %s5570_s25  ;;  %s4540_s28 = sadd.s32 4294967294, %s5578_s27  }
  0x15   : > { %6844 = sst [smem:[#allocation7_spill]] %s5574_s26  ;;  %s5735_s29 = sadd.s32 1, %s5578_s27  }
  0x16   : > { %6845 = sst [smem:[#allocation8_spill]] %s5578_s27  ;;  %s487_s0 = sadd.s32 1, %s5574_s26 }
  0x17   : > { %6846 = sst [smem:[#allocation9_spill]] %s5731_s3  ;;  %s484_s4 = ssub.s32 %s5578_s27, %s5735_s29 }
  0x18   : > { %6847 = sst [smem:[#allocation10_spill]] %s5735_s29  ;;  %p497_p0 = scmp.ne.s32.totalorder %s5574_s26, %s5570_s25 }
  0x19   : > { %p485_p1 = scmp.eq.s32.totalorder %s484_s4, 0  ;;  %p498_p2 = scmp.eq.s32.totalorder %s5731_s3, 1 }
  0x1a   : > { %p503_p3 = scmp.ne.s32.totalorder %s5570_s25, %s5566_s2  ;;  %p504_p4 = scmp.eq.s32.totalorder %s4540_s28, 1 }
  0x1b   : > { %s5746_s30 = scalar_select %p485_p1, %s5574_s26, %s487_s0  }
  0x1c   : > { %p5748_p5 = por %p498_p2, %p497_p0  ;;  %p5752_p6 = por %p504_p4, %p503_p3 }
  0x1d   : > { %6848 = sst [smem:[#allocation11_spill]] %s5746_s30  ;;  %p4543_p7 = scmp.ge.s32.totalorder %s5578_s27, 1 }
  0x1e   : > { %s6849_s5 = scalar_select %p5748_p5, 1, 0 }
  0x1f   : > { %s6851_s22 = scalar_select %p5752_p6, 1, 0 }
  0x20   : > { %6850 = sst [smem:[#allocation12_spill]] %s6849_s5  ;;  %p590_p8 = scmp.lt.s32.totalorder %s5578_s27, 3 }
  0x21   : > { %6852 = sst [smem:[#allocation13_spill]] %s6851_s22 }
  0x22   : > { %p591_p9 = pnand %p4543_p7, %p590_p8 }
  0x24   : > { %594 = sbr.rel (%p591_p9) target bundleno = 12689 (0x3191), region = 104 }
  0x2b   : > { %s6853_s24 = sld [smem:[#allocation18_spill]]  ;;  %v5580_v1 = vmov 0.0   ;;  %p650_p10 = scmp.lt.s32.totalorder %s5731_s3, 1  ;;  %vm5581_vm0 = vmmov 0   ;;  %vm700_vm1 = vcmask 1041409   ;;  %vm703_vm2 = vcmask 1042434  }
  0x2c   : > { %4906 = vmatprep.subr.bf16.mxu0 %v5580_v1  ;;  %4926 = vmatprep.subr.bf16.mxu1 %v5580_v1  ;;  %s6854_s1 = sld [smem:[#allocation15_spill]]  ;;  %vm706_vm3 = vcmask 1043459   ;;  %vm709_vm4 = vcmask 1044484   ;;  %vm712_vm5 = vcmask 1045509   ;;  %vm715_vm6 = vcmask 1046534   ;;  %v5361_v55 = vld [vmem:[%s6757_s7] sm:$0xff]  }
  0x2d   : > { %4908 = vmatprep.mubr.msk.bf16.mxu0 %vm5581_vm0, %v5580_v1  ;;  %s651_s28 = scalar_select %p650_p10, %s5731_s3, 1  ;;  %4928 = vmatprep.mubr.msk.bf16.mxu1 %vm5581_vm0, %v5580_v1  ;;  %vm718_vm7 = vcmask 1047559   ;;  %vm727_vm8 = vcmask 130048   ;;  %vm774_vm9 = vcmask 261120   ;;  %v5362_v56 = vld [vmem:[%s6757_s7 + $0x8] sm:$0xff]   ;;  %vm872_vm10 = vcmask 64512  }
  0x2e   : > { %s6857_s22 = sld [smem:[#allocation20_spill]]  ;;  %v4551_v63 = vld [vmem:[%s6756_s6] ss:$0 sm:$0xff]  ;;  %s6781_s26 = smov 120   ;;  %vm936_vm11 = vcmask 1043456   ;;  %vm1324_vm12 = vcmask 195584  }
  0x2f   : > { %s4758_s0 = sshll.u32 %s651_s28, 4  ;;  %s6801_s29 = smov 96   ;;  %vm2577_vm13 = vcmask 57344  }
  0x30   : > { %s6785_s28 = smov 80   ;;  %s6789_s4 = smov 112  }
  0x31   : > { %v5360_v0 = vld [vmem:[%s6853_s24] sm:$0xff]   ;;  %s6783_s23 = smov 72   ;;  %s6806_s2 = smov 16  }
  0x32   : > { %4907 = vmatpush3.bf16.msra.mxu0 %v5360_v0  ;;  %s654_s30 = scalar_lea.vmem %s6854_s1, %s4758_s0  ;;  %s6855_s0 = sld [smem:[#allocation19_spill]] }
  0x33   : > { %4912 = vmatprep.subr.bf16.mxu0 %v5580_v1  ;;  %v658_v2 = vld [vmem:[%s654_s30] sm:$0x3]  ;;  %v659_v3 = vld [vmem:[%s654_s30 + $0x2] sm:$0x3]  ;;  %v660_v4 = vld [vmem:[%s654_s30 + $0x4] sm:$0x3] }
  0x34   : > { %v661_v5 = vld [vmem:[%s654_s30 + $0x6] sm:$0x3]  ;;  %v662_v6 = vld [vmem:[%s654_s30 + $0x8] sm:$0x3]  ;;  %v663_v7 = vld [vmem:[%s654_s30 + $0xa] sm:$0x3]  ;;  %v668_v8 = vpack.c.bf16 %v658_v2, %v658_v2  ;;  %v669_v9 = vpack.c.bf16 %v659_v3, %v659_v3  ;;  %v670_v10 = vpack.c.bf16 %v660_v4, %v660_v4 }
  0x35   : > { %v664_v11 = vld [vmem:[%s654_s30 + $0xc] sm:$0x3]  ;;  %v665_v12 = vld [vmem:[%s654_s30 + $0xe] sm:$0x3]  ;;  %v671_v13 = vpack.c.bf16 %v661_v5, %v661_v5  ;;  %v672_v14 = vpack.c.bf16 %v662_v6, %v662_v6  ;;  %v673_v15 = vpack.c.bf16 %v663_v7, %v663_v7  ;;  %s6856_s1 = sld [smem:[#allocation16_spill]]  ;;  %s6799_s30 = smov 88  }
  0x36   : > { %v674_v16 = vpack.c.bf16 %v664_v11, %v664_v11  ;;  %v675_v17 = vpack.c.bf16 %v665_v12, %v665_v12  ;;  %v5773_v18 = vunpack.c.l.b16 %v668_v8  ;;  %v5775_v19 = vunpack.c.l.b16 %v669_v9  ;;  %v4550_v61 = vld [vmem:[%s6857_s22] ss:$0 sm:$0xff]  ;;  %s6859_s10 = sld [smem:[#allocation21_spill]]  ;;  %s6860_s13 = sld [smem:[#allocation24_spill]] }
  0x37   : > { %v5777_v20 = vunpack.c.l.b16 %v670_v10  ;;  %v5779_v21 = vunpack.c.l.b16 %v671_v13  ;;  %v5781_v22 = vunpack.c.l.b16 %v672_v14  ;;  %v5783_v23 = vunpack.c.l.b16 %v673_v15  ;;  %v4552_v4 = vld [vmem:[%s6758_s8] ss:$0 sm:$0xff]  ;;  %s6861_s11 = sld [smem:[#allocation22_spill]]  ;;  %s6862_s12 = sld [smem:[#allocation23_spill]] }
  0x38   : > { %v5785_v24 = vunpack.c.l.b16 %v674_v16  ;;  %v5787_v25 = vunpack.c.l.b16 %v675_v17  ;;  %v699_v26 = vrot.slane %v5775_v19, 7  ;;  %v4547_v41 = vld [vmem:[%s6855_s0] ss:$0 sm:$0xff]  ;;  %s6864_s21 = smov 88   ;;  %s6865_s27 = smov 120  }
  0x39   : > { %v702_v27 = vrot.slane %v5777_v20, 6  ;;  %v705_v28 = vrot.slane %v5779_v21, 5  ;;  %v708_v29 = vrot.slane %v5781_v22, 4  ;;  %v711_v31 = vrot.slane %v5783_v23, 3  ;;  %s6871_s5 = smov 48   ;;  %s6872_s3 = smov 56  }
  0x3a   : > { %v701_v30 = vsel %vm700_vm1, %v699_v26, %v5773_v18  ;;  %v714_v33 = vrot.slane %v5785_v24, 2  ;;  %v717_v35 = vrot.slane %v5787_v25, 1  ;;  %s6877_s19 = sld [smem:[#allocation27_spill]]  ;;  %s6878_s17 = sld [smem:[#allocation25_spill]] }
  0x3b   : > { %v704_v32 = vsel %vm703_vm2, %v702_v27, %v701_v30  ;;  %v657_v42 = vld [vmem:[%s6856_s1] sm:$0xff]  ;;  %s6879_s18 = sld [smem:[#allocation26_spill]]  ;;  %s6880_s20 = sld [smem:[#allocation28_spill]] }
  0x3c   : > { %v707_v34 = vsel %vm706_vm3, %v705_v28, %v704_v32 }
  0x3d   : > { %v710_v36 = vsel %vm709_vm4, %v708_v29, %v707_v34 }
  0x3e   : > { %v713_v37 = vsel %vm712_vm5, %v711_v31, %v710_v36 }
  0x3f   : > { %v716_v38 = vsel %vm715_vm6, %v714_v33, %v713_v37 }
  0x40   : > { %v719_v39 = vsel %vm718_vm7, %v717_v35, %v716_v38 }
  0x41   : > { %v720_v40 = vpack.c.b16 %v719_v39, %v719_v39 }
  0x43   : > { %4909 = vmatmul.mubr.msk.bf16.vlgmr.msra.gmra.mrb[0].mxu0 %vm727_vm8, %v720_v40 }
  0x44   : > { %4916 = vmatprep.mubr.msk.bf16.mxu0 %vm5581_vm0, %v5580_v1  ;;  %4913 = vmatpush3.bf16.msra.mxu0 %v5361_v55 }
  0x45   : > { %4914 = vmatprep.subr.bf16.mxu0 %v5580_v1 }
  0x48   : > { %4915 = vmatpush3.bf16.msra.mxu0 %v5362_v56 }
  0x49   : > { %4920 = vmatprep.subr.bf16.mxu0 %v5580_v1 }
 0x116   : > { %v765_v43 = vpop.f32.mrb[0].mxu0 }
 0x117   : > { %v766_v44 = vadd.f32 %v4547_v41, %v765_v43  ;;  %v4910_v45 = vpop.f32.mrb[1].mxu0 }
 0x118   : > { %v768_v46 = vpop.f32.mrb[2].mxu0 }
 0x119   : > { %v5813_v47 = vadd.f32 %v766_v44, %v657_v42  ;;  %v4911_v48 = vpop.f32.mrb[3].mxu0 }
 0x11b   : > { %v775_v49 = vsel %vm774_vm9, %v5813_v47, 0.0 }
 0x11c   : > { %776 = vadd.xlane.f32.xlu0 %v775_v49 }
 0x1a9   : > { %v777_v50 = vpop.xlane.xlu0 %776 }
 0x1aa   : > { %v779_v51 = vmul.f32 0.03125, %v777_v50 }
 0x1ac   : > { %v780_v52 = vsub.f32 %v5813_v47, %v779_v51 }
 0x1ae   : > { %v781_v53 = vmul.f32 %v780_v52, %v780_v52 }
 0x1b0   : > { %v782_v54 = vsel %vm774_vm9, %v781_v53, 0.0 }
 0x1b1   : > { %783 = vadd.xlane.f32.xlu0 %v782_v54 }
 0x23e   : > { %v784_v57 = vpop.xlane.xlu0 %783 }
 0x23f   : > { %v785_v58 = vmul.f32 0.03125, %v784_v57 }
 0x241   : > { %v786_v59 = vadd.f32 1e-05, %v785_v58 }
 0x243   : > { %5422 = vrsqrt.f32 %v786_v59 }
 0x24d   : > { %v5423_v60 = vpop.eup %5422 }
 0x24e   : > { %v788_v62 = vmul.f32 %v5423_v60, %v780_v52 }
 0x250   : > { %v793_v0 = vmul.f32 %v4550_v61, %v788_v62 }
 0x252   : > { %v798_v2 = vadd.f32 %v4551_v63, %v793_v0 }
 0x254   : > { %v803_v3 = vpack.c.bf16 %v798_v2, %v798_v2 }
 0x256   : > { %4917 = vmatmul.mubr.msk.bf16.vlgmr.msra.gmra.mrb[4].mxu0 %vm774_vm9, %v803_v3 }
 0x257   : > { %4922 = vmatprep.mubr.msk.bf16.mxu0 %vm5581_vm0, %v5580_v1 }
 0x329   : > { %v858_v5 = vpop.f32.mrb[4].mxu0 }
 0x32a   : > { %v859_v6 = vadd.f32 %v4552_v4, %v858_v5  ;;  %v4918_v7 = vpop.f32.mrb[5].mxu0 }
 0x32b   : > { %v861_v8 = vpop.f32.mrb[6].mxu0 }
 0x32c   : > { %v5839_v9 = vpack.c.bf16 %v859_v6, %v859_v6  ;;  %v4919_v10 = vpop.f32.mrb[7].mxu0 }
 0x32e   : > { %980 = vrot.lane.b32.xlu0 %v5839_v9, %s6781_s26  ;;  %870 = vrot.lane.b32.xlu1 %v5839_v9, %s6801_s29  ;;  %s6787_s26 = smov 104   ;;  %s6863_s29 = smov 96  }
 0x332   : > { %982 = vrot.lane.b32.xlu1 %v5839_v9, %s6799_s30  ;;  %s6866_s30 = smov 112  }
 0x336   : > { %1092 = vrot.lane.b32.xlu1 %v5839_v9, %s6785_s28  ;;  %s6795_s28 = smov 56  }
 0x33a   : > { %1090 = vrot.lane.b32.xlu1 %v5839_v9, %s6789_s4  ;;  %s6875_s4 = smov 16  }
 0x33e   : > { %1202 = vrot.lane.b32.xlu1 %v5839_v9, %s6783_s23  ;;  %s6797_s23 = smov 48  }
 0x342   : > { %1200 = vrot.lane.b32.xlu1 %v5839_v9, %s6787_s26  ;;  %s6858_s26 = sld [smem:[#allocation17_spill]] }
 0x348   : > { %v5879_v30 = vld [vmem:[%s6858_s26] sm:$0xff]  ;;  %s6791_s26 = smov 64  }
 0x3a0   : > { %v871_v11 = vpop.permute.xlu1 %870  ;;  %v981_v16 = vpop.permute.xlu0 %980 }
 0x3a1   : > { %v877_v12 = vsel %vm872_vm10, %v871_v11, 0 }
 0x3a2   : > { %4921 = vmatpush3.bf16.xpose.msra.mxu0 %v877_v12 }
 0x3a3   : > { %4932 = vmatprep.subr.bf16.mxu0 %v5580_v1 }
 0x3a4   : > { %v983_v13 = vpop.permute.xlu1 %982 }
 0x3a5   : > { %v988_v14 = vsel %vm872_vm10, %v983_v13, 0 }
 0x3a8   : > { %v1093_v15 = vpop.permute.xlu1 %1092 }
 0x3a9   : > { %4923 = vmatmul.mubr.msk.bf16.vlgmr.msra.gmra.mrb[8].mxu0 %vm872_vm10, %v5839_v9  ;;  %v1098_v26 = vsel %vm872_vm10, %v1093_v15, 0 }
 0x3aa   : > { %4933 = vmatpush3.bf16.xpose.msra.mxu0 %v988_v14  ;;  %4934 = vmatprep.mubr.msk.bf16.mxu0 %vm5581_vm0, %v5580_v1 }
 0x3ab   : > { %4944 = vmatprep.subr.bf16.mxu0 %v5580_v1 }
 0x3ac   : > { %v1091_v17 = vpop.permute.xlu1 %1090 }
 0x3b0   : > { %v1203_v27 = vpop.permute.xlu1 %1202 }
 0x3b1   : > { %4935 = vmatmul.mubr.msk.bf16.vlgmr.msra.gmra.mrb[12].mxu0 %vm872_vm10, %v981_v16  ;;  %v1208_v28 = vsel %vm872_vm10, %v1203_v27, 0 }
 0x3b2   : > { %4945 = vmatpush3.bf16.xpose.msra.mxu0 %v1098_v26  ;;  %4946 = vmatprep.mubr.msk.bf16.mxu0 %vm5581_vm0, %v5580_v1 }
 0x3b3   : > { %4956 = vmatprep.subr.bf16.mxu0 %v5580_v1 }
 0x3b4   : > { %v1201_v29 = vpop.permute.xlu1 %1200 }
 0x3b9   : > { %4947 = vmatmul.mubr.msk.bf16.vlgmr.msra.gmra.mrb[16].mxu0 %vm872_vm10, %v1091_v17 }
 0x3ba   : > { %4957 = vmatpush3.bf16.xpose.msra.mxu0 %v1208_v28  ;;  %4958 = vmatprep.mubr.msk.bf16.mxu0 %vm5581_vm0, %v5580_v1 }
 0x3bb   : > { %4968 = vmatprep.subr.bf16.mxu0 %v5580_v1 }
 0x3c1   : > { %4959 = vmatmul.mubr.msk.bf16.vlgmr.msra.gmra.mrb[20].mxu0 %vm872_vm10, %v1201_v29 }
 0x3c2   : > { %4972 = vmatprep.mubr.msk.bf16.mxu0 %vm5581_vm0, %v5580_v1 }
 0x47c   : > { %v913_v31 = vpop.f32.mrb[8].mxu0 }
 0x47d   : > { %v914_v32 = vadd.f32 %v913_v31, %v5879_v30  ;;  %v4924_v33 = vpop.f32.mrb[9].mxu0 }
 0x47e   : > { %v916_v34 = vpop.f32.mrb[10].mxu0 }
 0x47f   : > { %v4925_v35 = vpop.f32.mrb[11].mxu0  ;;  %v919_v36 = vsel %vm872_vm10, %v914_v32, -inf }
 0x480   : > { %920 = vmax.xlane.f32.xlu1 %v919_v36 }
 0x484   : > { %v1024_v37 = vpop.f32.mrb[12].mxu0 }
 0x485   : > { %v1025_v38 = vadd.f32 %v1024_v37, %v5879_v30  ;;  %v4936_v39 = vpop.f32.mrb[13].mxu0 }
 0x486   : > { %v1027_v40 = vpop.f32.mrb[14].mxu0 }
 0x487   : > { %v4937_v41 = vpop.f32.mrb[15].mxu0  ;;  %v1030_v42 = vsel %vm872_vm10, %v1025_v38, -inf }
 0x488   : > { %1031 = vmax.xlane.f32.xlu0 %v1030_v42 }
 0x48c   : > { %v1134_v43 = vpop.f32.mrb[16].mxu0 }
 0x48d   : > { %v1135_v44 = vadd.f32 %v1134_v43, %v5879_v30  ;;  %v4948_v45 = vpop.f32.mrb[17].mxu0 }
 0x48e   : > { %v1137_v46 = vpop.f32.mrb[18].mxu0 }
 0x48f   : > { %v4949_v48 = vpop.f32.mrb[19].mxu0  ;;  %v1140_v49 = vsel %vm872_vm10, %v1135_v44, -inf }
 0x490   : > { %1141 = vmax.xlane.f32.xlu1 %v1140_v49 }
 0x494   : > { %v1244_v50 = vpop.f32.mrb[20].mxu0 }
 0x495   : > { %v1245_v51 = vadd.f32 %v1244_v50, %v5879_v30  ;;  %v4960_v52 = vpop.f32.mrb[21].mxu0 }
 0x496   : > { %v1247_v53 = vpop.f32.mrb[22].mxu0 }
 0x497   : > { %v4961_v54 = vpop.f32.mrb[23].mxu0  ;;  %v1250_v55 = vsel %vm872_vm10, %v1245_v51, -inf }
 0x498   : > { %1251 = vmax.xlane.f32.xlu0 %v1250_v55  ;;  %v5363_v55 = vld [vmem:[%s6759_s9] sm:$0xff]  }
 0x499   : > { %4969 = vmatpush3.bf16.msra.mxu0 %v5363_v55 }
 0x49a   : > { %4970 = vmatprep.subr.bf16.mxu0 %v5580_v1 }
 0x50d   : > { %v921_v56 = vpop.xlane.xlu1 %920 }
 0x50e   : > { %v922_v57 = vsub.f32 %v914_v32, %v921_v56  ;;  %v5364_v56 = vld [vmem:[%s6759_s9 + $0x8] sm:$0xff]  }
 0x50f   : > { %4971 = vmatpush3.bf16.msra.mxu0 %v5364_v56 }
 0x510   : > { %v923_v58 = vmul.f32 1.442695, %v922_v57  ;;  %4984 = vmatprep.subr.bf16.mxu0 %v5580_v1 }
 0x512   : > { %5424 = vpow2.f32 %v923_v58 }
 0x515   : > { %v1032_v59 = vpop.xlane.xlu0 %1031 }
 0x516   : > { %v1033_v60 = vsub.f32 %v1025_v38, %v1032_v59 }
 0x518   : > { %v1034_v61 = vmul.f32 1.442695, %v1033_v60 }
 0x51a   : > { %5426 = vpow2.f32 %v1034_v61 }
 0x51c   : > { %v5425_v62 = vpop.eup %5424 }
 0x51d   : > { %v925_v63 = vsel %vm872_vm10, %v5425_v62, 0.0  ;;  %v1142_v8 = vpop.xlane.xlu1 %1141 }
 0x51e   : > { %926 = vadd.xlane.f32.xlu1 %v925_v63  ;;  %v1143_v10 = vsub.f32 %v1135_v44, %v1142_v8 }
 0x520   : > { %v1144_v11 = vmul.f32 1.442695, %v1143_v10  ;;  %v4564_v10 = vld [vmem:[%s6859_s10] ss:$0 sm:$0xff] }
 0x524   : > { %v5427_v0 = vpop.eup %5426 }
 0x525   : > { %v1252_v2 = vpop.xlane.xlu0 %1251  ;;  %v1036_v3 = vsel %vm872_vm10, %v5427_v0, 0.0 }
 0x526   : > { %v1253_v4 = vsub.f32 %v1245_v51, %v1252_v2  ;;  %1037 = vadd.xlane.f32.xlu0 %v1036_v3 }
 0x528   : > { %v1254_v5 = vmul.f32 1.442695, %v1253_v4 }
 0x52a   : > { %5428 = vpow2.f32 %v1254_v5 }
 0x52b   : > { %5430 = vpow2.f32 %v1144_v11 }
 0x52f   : > { %931 = vrot.lane.b32.xlu1 %v5839_v9, %s6791_s26  ;;  %s6793_s26 = smov 40  }
 0x534   : > { %v5429_v6 = vpop.eup %5428 }
 0x535   : > { %v1256_v7 = vsel %vm872_vm10, %v5429_v6, 0.0  ;;  %v5431_v12 = vpop.eup %5430 }
 0x536   : > { %1257 = vadd.xlane.f32.xlu0 %v1256_v7  ;;  %v1146_v13 = vsel %vm872_vm10, %v5431_v12, 0.0 }
 0x54c   : > { %1042 = vrot.lane.b32.xlu0 %v5839_v9, %s6795_s28  ;;  %s6804_s28 = smov 24  }
 0x553   : > { %1147 = vadd.xlane.f32.xlu1 %v1146_v13 }
 0x564   : > { %1152 = vrot.lane.b32.xlu1 %v5839_v9, %s6797_s23  ;;  %s6869_s23 = smov 80  }
 0x568   : > { %1262 = vrot.lane.b32.xlu1 %v5839_v9, %s6793_s26  ;;  %s6808_s26 = smov 8  }
 0x5ab   : > { %v927_v14 = vpop.xlane.xlu1 %926 }
 0x5ac   : > { %5432 = vrcp.f32 %v927_v14 }
 0x5af   : > { %v932_v15 = vpop.permute.xlu1 %931 }
 0x5b0   : > { %v938_v16 = vsel %vm936_vm11, %v932_v15, 0 }
 0x5b1   : > { %4927 = vmatpush3.bf16.msra.mxu1 %v938_v16 }
 0x5b2   : > { %4938 = vmatprep.subr.bf16.mxu1 %v5580_v1 }
 0x5b3   : > { %v1038_v26 = vpop.xlane.xlu0 %1037 }
 0x5b4   : > { %5434 = vrcp.f32 %v1038_v26 }
 0x5b6   : > { %v5433_v17 = vpop.eup %5432 }
 0x5b7   : > { %v929_v27 = vmul.f32 %v5433_v17, %v5425_v62 }
 0x5b9   : > { %v930_v28 = vpack.c.bf16 %v929_v27, %v929_v27 }
 0x5bb   : > { %4929 = vmatmul.mubr.msk.bf16.vlgmr.msra.gmra.mrb[0].mxu1 %vm872_vm10, %v930_v28 }
 0x5bc   : > { %4940 = vmatprep.mubr.msk.bf16.mxu1 %vm5581_vm0, %v5580_v1 }
 0x5be   : > { %v5435_v9 = vpop.eup %5434 }
 0x5bf   : > { %v1040_v31 = vmul.f32 %v5435_v9, %v5427_v0 }
 0x5c1   : > { %v1041_v34 = vpack.c.bf16 %v1040_v31, %v1040_v31  ;;  %v5365_v31 = vld [vmem:[%s6860_s13] sm:$0xff]  }
 0x5c3   : > { %v1258_v29 = vpop.xlane.xlu0 %1257 }
 0x5c7   : > { %v1043_v32 = vpop.permute.xlu0 %1042 }
 0x5c8   : > { %v1048_v33 = vsel %vm936_vm11, %v1043_v32, 0  ;;  %v5367_v32 = vld [vmem:[%s6765_s15] sm:$0xff]  }
 0x5c9   : > { %4939 = vmatpush3.bf16.msra.mxu1 %v1048_v33 }
 0x5ca   : > { %4950 = vmatprep.subr.bf16.mxu1 %v5580_v1 }
 0x5cc   : > { %4941 = vmatmul.mubr.msk.bf16.vlgmr.msra.gmra.mrb[4].mxu1 %vm872_vm10, %v1041_v34 }
 0x5cd   : > { %4952 = vmatprep.mubr.msk.bf16.mxu1 %vm5581_vm0, %v5580_v1 }
 0x5e0   : > { %v1148_v35 = vpop.xlane.xlu1 %1147 }
 0x5e1   : > { %5436 = vrcp.f32 %v1148_v35 }
 0x5e2   : > { %5438 = vrcp.f32 %v1258_v29 }
 0x5e4   : > { %v1153_v36 = vpop.permute.xlu1 %1152 }
 0x5e5   : > { %v1158_v37 = vsel %vm936_vm11, %v1153_v36, 0 }
 0x5e6   : > { %4951 = vmatpush3.bf16.msra.mxu1 %v1158_v37  ;;  %v4568_v37 = vld [vmem:[%s6861_s11] ss:$0 sm:$0xff] }
 0x5e7   : > { %4962 = vmatprep.subr.bf16.mxu1 %v5580_v1 }
 0x5e8   : > { %v1263_v40 = vpop.permute.xlu1 %1262 }
 0x5e9   : > { %v1268_v43 = vsel %vm936_vm11, %v1263_v40, 0 }
 0x5eb   : > { %v5437_v38 = vpop.eup %5436 }
 0x5ec   : > { %v1150_v39 = vmul.f32 %v5437_v38, %v5431_v12  ;;  %v5439_v42 = vpop.eup %5438 }
 0x5ed   : > { %v1260_v44 = vmul.f32 %v5439_v42, %v5429_v6 }
 0x5ee   : > { %v1151_v41 = vpack.c.bf16 %v1150_v39, %v1150_v39  ;;  %v4569_v39 = vld [vmem:[%s6862_s12] ss:$0 sm:$0xff] }
 0x5ef   : > { %v1261_v45 = vpack.c.bf16 %v1260_v44, %v1260_v44  ;;  %v5369_v44 = vld [vmem:[%s6765_s15 + $0x10] sm:$0xff]  }
 0x5f0   : > { %4953 = vmatmul.mubr.msk.bf16.vlgmr.msra.gmra.mrb[8].mxu1 %vm872_vm10, %v1151_v41 }
 0x5f1   : > { %4963 = vmatpush3.bf16.msra.mxu1 %v1268_v43  ;;  %4964 = vmatprep.mubr.msk.bf16.mxu1 %vm5581_vm0, %v5580_v1  ;;  %v5368_v43 = vld [vmem:[%s6765_s15 + $0x8] sm:$0xff]  }
 0x5f2   : > { %4976 = vmatprep.subr.bf16.mxu1 %v5580_v1 }
 0x5f8   : > { %4965 = vmatmul.mubr.msk.bf16.vlgmr.msra.gmra.mrb[12].mxu1 %vm872_vm10, %v1261_v45  ;;  %v5370_v45 = vld [vmem:[%s6765_s15 + $0x18] sm:$0xff]  }
 0x5f9   : > { %4980 = vmatprep.mubr.msk.bf16.mxu1 %vm5581_vm0, %v5580_v1  ;;  %4977 = vmatpush3.bf16.msra.mxu1 %v5365_v31 }
 0x5fa   : > { %4978 = vmatprep.subr.bf16.mxu1 %v5580_v1 }
 0x68e   : > { %v974_v46 = vpop.f32.mrb[0].mxu1 }
 0x68f   : > { %v4930_v48 = vpop.f32.mrb[1].mxu1 }
 0x690   : > { %v977_v49 = vpop.f32.mrb[2].mxu1  ;;  %v5372_v48 = vld [vmem:[%s6765_s15 + $0x28] sm:$0xff]  }
 0x691   : > { %v4931_v50 = vpop.f32.mrb[3].mxu1  ;;  %v5373_v49 = vld [vmem:[%s6765_s15 + $0x30] sm:$0xff]  }
 0x692   : > { %v5374_v50 = vld [vmem:[%s6765_s15 + $0x38] sm:$0xff]  }
 0x69f   : > { %v1084_v51 = vpop.f32.mrb[4].mxu1 }
 0x6a0   : > { %1311 = vrot.lane.b32.xlu0 %v1084_v51, %s6808_s26  ;;  %v4942_v52 = vpop.f32.mrb[5].mxu1  ;;  %v4570_v51 = vld [vmem:[%s6764_s14] ss:$0 sm:$0xff]  ;;  %s6868_s26 = smov 64  }
 0x6a1   : > { %v1087_v53 = vpop.f32.mrb[6].mxu1 }
 0x6a2   : > { %v4943_v54 = vpop.f32.mrb[7].mxu1 }
 0x6c3   : > { %v1194_v57 = vpop.f32.mrb[8].mxu1 }
 0x6c4   : > { %1315 = vrot.lane.b32.xlu1 %v1194_v57, %s6806_s2  ;;  %v4954_v58 = vpop.f32.mrb[9].mxu1  ;;  %s6867_s2 = smov 104  }
 0x6c5   : > { %v1197_v59 = vpop.f32.mrb[10].mxu1 }
 0x6c6   : > { %v4955_v60 = vpop.f32.mrb[11].mxu1 }
 0x6cb   : > { %v1304_v61 = vpop.f32.mrb[12].mxu1 }
 0x6cc   : > { %1319 = vrot.lane.b32.xlu0 %v1304_v61, %s6804_s28  ;;  %v4966_v62 = vpop.f32.mrb[13].mxu1  ;;  %s6870_s28 = smov 72  }
 0x6cd   : > { %v1307_v63 = vpop.f32.mrb[14].mxu1 }
 0x6ce   : > { %v4967_v0 = vpop.f32.mrb[15].mxu1 }
 0x712   : > { %v1312_v2 = vpop.permute.xlu0 %1311 }
 0x713   : > { %v1322_v4 = vsel %vm872_vm10, %v974_v46, %v1312_v2  ;;  %v5371_v46 = vld [vmem:[%s6765_s15 + $0x20] sm:$0xff]  }
 0x736   : > { %v1316_v3 = vpop.permute.xlu1 %1315 }
 0x737   : > { %v1323_v5 = vsel %vm727_vm8, %v1322_v4, %v1316_v3  ;;  %v4574_v4 = vld [vmem:[%s6766_s16] ss:$0 sm:$0xff] }
 0x73e   : > { %v1320_v6 = vpop.permute.xlu0 %1319 }
 0x73f   : > { %v1325_v7 = vsel %vm1324_vm12, %v1323_v5, %v1320_v6 }
 0x740   : > { %v1326_v8 = vpack.c.bf16 %v1325_v7, %v1325_v7 }
 0x742   : > { %4973 = vmatmul.mubr.msk.bf16.vlgmr.msra.gmra.mrb[24].mxu0 %vm774_vm9, %v1326_v8 }
 0x743   : > { %5000 = vmatprep.mubr.msk.bf16.mxu0 %vm5581_vm0, %v5580_v1  ;;  %4985 = vmatpush3.bf16.msra.mxu0 %v5367_v32 }
 0x744   : > { %4986 = vmatprep.subr.bf16.mxu0 %v5580_v1 }
 0x747   : > { %4987 = vmatpush3.bf16.msra.mxu0 %v5368_v43 }
 0x748   : > { %4988 = vmatprep.subr.bf16.mxu0 %v5580_v1 }
 0x74b   : > { %4989 = vmatpush3.bf16.msra.mxu0 %v5369_v44 }
 0x74c   : > { %4990 = vmatprep.subr.bf16.mxu0 %v5580_v1 }
 0x74f   : > { %4991 = vmatpush3.bf16.msra.mxu0 %v5370_v45 }
 0x750   : > { %4992 = vmatprep.subr.bf16.mxu0 %v5580_v1 }
 0x753   : > { %4993 = vmatpush3.bf16.msra.mxu0 %v5371_v46 }
 0x754   : > { %4994 = vmatprep.subr.bf16.mxu0 %v5580_v1 }
 0x757   : > { %4995 = vmatpush3.bf16.msra.mxu0 %v5372_v48 }
 0x758   : > { %4996 = vmatprep.subr.bf16.mxu0 %v5580_v1 }
 0x75b   : > { %4997 = vmatpush3.bf16.msra.mxu0 %v5373_v49 }
 0x75c   : > { %4998 = vmatprep.subr.bf16.mxu0 %v5580_v1 }
 0x75f   : > { %4999 = vmatpush3.bf16.msra.mxu0 %v5374_v50 }
 0x760   : > { %5030 = vmatprep.subr.bf16.mxu0 %v5580_v1 }
 0x815   : > { %v1381_v11 = vpop.f32.mrb[24].mxu0 }
 0x816   : > { %v1382_v12 = vadd.f32 %v4564_v10, %v1381_v11  ;;  %v4974_v13 = vpop.f32.mrb[25].mxu0 }
 0x817   : > { %v1384_v14 = vpop.f32.mrb[26].mxu0 }
 0x818   : > { %v5942_v15 = vadd.f32 %v1382_v12, %v5813_v47  ;;  %v4975_v16 = vpop.f32.mrb[27].mxu0  ;;  %v5366_v47 = vld [vmem:[%s6860_s13 + $0x8] sm:$0xff]  }
 0x819   : > { %4979 = vmatpush3.bf16.msra.mxu1 %v5366_v47  ;;  %v4583_v47 = vld [vmem:[%s6857_s22 + $0x1] ss:$0 sm:$0xff] }
 0x81a   : > { %v1390_v17 = vsel %vm774_vm9, %v5942_v15, 0.0  ;;  %5004 = vmatprep.subr.bf16.mxu1 %v5580_v1 }
 0x81b   : > { %1391 = vadd.xlane.f32.xlu1 %v1390_v17 }
 0x8a8   : > { %v1392_v26 = vpop.xlane.xlu1 %1391 }
 0x8a9   : > { %v1393_v27 = vmul.f32 0.03125, %v1392_v26 }
 0x8ab   : > { %v1394_v28 = vsub.f32 %v5942_v15, %v1393_v27  ;;  %v5375_v27 = vld [vmem:[%s6757_s7 + $0x10] sm:$0xff]  }
 0x8ad   : > { %v1395_v9 = vmul.f32 %v1394_v28, %v1394_v28 }
 0x8af   : > { %v1396_v29 = vsel %vm774_vm9, %v1395_v9, 0.0 }
 0x8b0   : > { %1397 = vadd.xlane.f32.xlu0 %v1396_v29 }
 0x93d   : > { %v1398_v33 = vpop.xlane.xlu0 %1397 }
 0x93e   : > { %v1399_v34 = vmul.f32 0.03125, %v1398_v33  ;;  %v4584_v33 = vld [vmem:[%s6756_s6 + $0x1] ss:$0 sm:$0xff] }
 0x940   : > { %v1400_v35 = vadd.f32 1e-05, %v1399_v34 }
 0x942   : > { %5440 = vrsqrt.f32 %v1400_v35 }
 0x94c   : > { %v5441_v36 = vpop.eup %5440 }
 0x94d   : > { %v1402_v38 = vmul.f32 %v5441_v36, %v1394_v28 }
 0x94f   : > { %v1407_v40 = vmul.f32 %v4568_v37, %v1402_v38  ;;  %v4589_v37 = vld [vmem:[%s6758_s8 + $0x1] ss:$0 sm:$0xff] }
 0x951   : > { %v1412_v41 = vadd.f32 %v4569_v39, %v1407_v40 }
 0x953   : > { %v1417_v42 = vpack.c.bf16 %v1412_v41, %v1412_v41 }
 0x955   : > { %4981 = vmatmul.mubr.msk.bf16.vlgmr.msra.gmra.mrb[16].mxu1 %vm774_vm9, %v1417_v42 }
 0x956   : > { %5008 = vmatprep.mubr.msk.bf16.mxu1 %vm5581_vm0, %v5580_v1  ;;  %5005 = vmatpush3.bf16.msra.mxu1 %v5375_v27 }
 0x957   : > { %5006 = vmatprep.subr.bf16.mxu1 %v5580_v1 }
 0xa28   : > { %v1472_v52 = vpop.f32.mrb[16].mxu1 }
 0xa29   : > { %v1473_v53 = vadd.f32 %v4570_v51, %v1472_v52  ;;  %v4982_v54 = vpop.f32.mrb[17].mxu1 }
 0xa2a   : > { %v1475_v55 = vpop.f32.mrb[18].mxu1 }
 0xa2b   : > { %v1479_v56 = vmul.f32 0.044715, %v1473_v53  ;;  %v4983_v57 = vpop.f32.mrb[19].mxu1  ;;  %v1478_v63 = vmul.f32 0.5, %v1473_v53 }
 0xa2d   : > { %v1480_v58 = vmul.f32 %v1479_v56, %v1473_v53 }
 0xa2f   : > { %v1481_v59 = vmul.f32 %v1480_v58, %v1473_v53 }
 0xa31   : > { %v1482_v60 = vadd.f32 %v1481_v59, %v1473_v53 }
 0xa33   : > { %v1483_v61 = vmul.f32 0.7978846, %v1482_v60 }
 0xa35   : > { %5442 = vtanh.f32 %v1483_v61 }
 0xa3f   : > { %v5443_v62 = vpop.eup %5442 }
 0xa40   : > { %v1485_v0 = vadd.f32 1.0, %v5443_v62 }
 0xa42   : > { %v1486_v2 = vmul.f32 %v1485_v0, %v1478_v63 }
 0xa44   : > { %v1503_v3 = vpack.c.bf16 %v1486_v2, %v1486_v2 }
 0xa46   : > { %5001 = vmatmul.mubr.bf16.vlgmr.msra.gmra.mrb[28].mxu0 %v1503_v3 }
 0xa47   : > { %5032 = vmatprep.mubr.msk.bf16.mxu0 %vm5581_vm0, %v5580_v1 }
 0xb19   : > { %v1591_v5 = vpop.f32.mrb[28].mxu0 }
 0xb1a   : > { %v1592_v6 = vadd.f32 %v4574_v4, %v1591_v5  ;;  %v5002_v7 = vpop.f32.mrb[29].mxu0 }
 0xb1b   : > { %v1594_v8 = vpop.f32.mrb[30].mxu0 }
 0xb1c   : > { %v6006_v10 = vadd.f32 %v1592_v6, %v5942_v15  ;;  %v5003_v11 = vpop.f32.mrb[31].mxu0  ;;  %v5376_v15 = vld [vmem:[%s6757_s7 + $0x18] sm:$0xff]  }
 0xb1d   : > { %5007 = vmatpush3.bf16.msra.mxu1 %v5376_v15 }
 0xb1e   : > { %v1600_v12 = vsel %vm774_vm9, %v6006_v10, 0.0  ;;  %5012 = vmatprep.subr.bf16.mxu1 %v5580_v1 }
 0xb1f   : > { %1601 = vadd.xlane.f32.xlu0 %v1600_v12 }
 0xbac   : > { %v1602_v13 = vpop.xlane.xlu0 %1601 }
 0xbad   : > { %v1603_v14 = vmul.f32 0.03125, %v1602_v13 }
 0xbaf   : > { %v1604_v16 = vsub.f32 %v6006_v10, %v1603_v14 }
 0xbb1   : > { %v1605_v17 = vmul.f32 %v1604_v16, %v1604_v16 }
 0xbb3   : > { %v1606_v26 = vsel %vm774_vm9, %v1605_v17, 0.0 }
 0xbb4   : > { %1607 = vadd.xlane.f32.xlu1 %v1606_v26 }
 0xc41   : > { %v1608_v28 = vpop.xlane.xlu1 %1607 }
 0xc42   : > { %v1609_v9 = vmul.f32 0.03125, %v1608_v28 }
 0xc44   : > { %v1610_v29 = vadd.f32 1e-05, %v1609_v9 }
 0xc46   : > { %5444 = vrsqrt.f32 %v1610_v29 }
 0xc50   : > { %v5445_v31 = vpop.eup %5444 }
 0xc51   : > { %v1612_v32 = vmul.f32 %v5445_v31, %v1604_v16 }
 0xc53   : > { %v1617_v34 = vmul.f32 %v4583_v47, %v1612_v32 }
 0xc55   : > { %v1622_v35 = vadd.f32 %v4584_v33, %v1617_v34 }
 0xc57   : > { %v1628_v36 = vpack.c.bf16 %v1622_v35, %v1622_v35 }
 0xc59   : > { %5009 = vmatmul.mubr.msk.bf16.vlgmr.msra.gmra.mrb[20].mxu1 %vm774_vm9, %v1628_v36 }
 0xc5a   : > { %5014 = vmatprep.mubr.msk.bf16.mxu1 %vm5581_vm0, %v5580_v1 }
 0xd2c   : > { %v1683_v38 = vpop.f32.mrb[20].mxu1 }
 0xd2d   : > { %v1684_v39 = vadd.f32 %v4589_v37, %v1683_v38  ;;  %v5010_v40 = vpop.f32.mrb[21].mxu1 }
 0xd2e   : > { %v1686_v41 = vpop.f32.mrb[22].mxu1 }
 0xd2f   : > { %v6032_v42 = vpack.c.bf16 %v1684_v39, %v1684_v39  ;;  %v5011_v43 = vpop.f32.mrb[23].mxu1 }
 0xd31   : > { %1696 = vrot.lane.b32.xlu0 %v6032_v42, %s6863_s29 }
 0xd35   : > { %1806 = vrot.lane.b32.xlu0 %v6032_v42, %s6864_s21 }
 0xd39   : > { %1804 = vrot.lane.b32.xlu0 %v6032_v42, %s6865_s27 }
 0xd3d   : > { %1914 = vrot.lane.b32.xlu0 %v6032_v42, %s6866_s30 }
 0xd41   : > { %2024 = vrot.lane.b32.xlu0 %v6032_v42, %s6867_s2  ;;  %s6818_s2 = sand.u32 1, %s5570_s25   ;;  %s6889_s25 = smov 16  }
 0xda3   : > { %v1697_v44 = vpop.permute.xlu0 %1696 }
 0xda4   : > { %v1702_v45 = vsel %vm872_vm10, %v1697_v44, 0 }
 0xda5   : > { %5013 = vmatpush3.bf16.xpose.msra.mxu1 %v1702_v45 }
 0xda6   : > { %5018 = vmatprep.subr.bf16.mxu1 %v5580_v1 }
 0xda7   : > { %v1807_v63 = vpop.permute.xlu0 %1806 }
 0xda8   : > { %v1812_v2 = vsel %vm872_vm10, %v1807_v63, 0 }
 0xdab   : > { %v1805_v4 = vpop.permute.xlu0 %1804 }
 0xdac   : > { %5015 = vmatmul.mubr.msk.bf16.vlgmr.msra.gmra.mrb[24].mxu1 %vm872_vm10, %v6032_v42 }
 0xdad   : > { %5020 = vmatprep.mubr.msk.bf16.mxu1 %vm5581_vm0, %v5580_v1 }
 0xdaf   : > { %v1915_v7 = vpop.permute.xlu0 %1914 }
 0xdb3   : > { %v2025_v11 = vpop.permute.xlu0 %2024 }
 0xe7f   : > { %v1738_v46 = vpop.f32.mrb[24].mxu1 }
 0xe80   : > { %v1739_v48 = vadd.f32 %v1738_v46, %v5879_v30  ;;  %v5016_v49 = vpop.f32.mrb[25].mxu1 }
 0xe81   : > { %v1741_v50 = vpop.f32.mrb[26].mxu1 }
 0xe82   : > { %v5017_v51 = vpop.f32.mrb[27].mxu1  ;;  %v1744_v52 = vsel %vm872_vm10, %v1739_v48, -inf }
 0xe83   : > { %1745 = vmax.xlane.f32.xlu1 %v1744_v52 }
 0xf10   : > { %v1746_v53 = vpop.xlane.xlu1 %1745 }
 0xf11   : > { %v1747_v54 = vsub.f32 %v1739_v48, %v1746_v53 }
 0xf13   : > { %v1748_v55 = vmul.f32 1.442695, %v1747_v54 }
 0xf15   : > { %5446 = vpow2.f32 %v1748_v55 }
 0xf1f   : > { %v5447_v56 = vpop.eup %5446 }
 0xf20   : > { %v1750_v57 = vsel %vm872_vm10, %v5447_v56, 0.0 }
 0xf21   : > { %1751 = vadd.xlane.f32.xlu1 %v1750_v57 }
 0xf32   : > { %1756 = vrot.lane.b32.xlu1 %v6032_v42, %s6868_s26  ;;  %s6873_s26 = smov 40  }
 0xf36   : > { %1916 = vrot.lane.b32.xlu1 %v6032_v42, %s6869_s23 }
 0xf3a   : > { %2026 = vrot.lane.b32.xlu1 %v6032_v42, %s6870_s28 }
 0xfae   : > { %v1752_v58 = vpop.xlane.xlu1 %1751 }
 0xfaf   : > { %5448 = vrcp.f32 %v1752_v58 }
 0xfb2   : > { %v1757_v59 = vpop.permute.xlu1 %1756 }
 0xfb3   : > { %v1762_v60 = vsel %vm936_vm11, %v1757_v59, 0 }
 0xfb4   : > { %5019 = vmatpush3.bf16.msra.mxu1 %v1762_v60 }
 0xfb5   : > { %5024 = vmatprep.subr.bf16.mxu1 %v5580_v1 }
 0xfb6   : > { %v1917_v3 = vpop.permute.xlu1 %1916 }
 0xfb7   : > { %v1922_v5 = vsel %vm872_vm10, %v1917_v3, 0 }
 0xfb9   : > { %v5449_v61 = vpop.eup %5448 }
 0xfba   : > { %v1754_v62 = vmul.f32 %v5449_v61, %v5447_v56  ;;  %v2027_v6 = vpop.permute.xlu1 %2026 }
 0xfbb   : > { %v2032_v8 = vsel %vm872_vm10, %v2027_v6, 0 }
 0xfbc   : > { %v1755_v0 = vpack.c.bf16 %v1754_v62, %v1754_v62 }
 0xfbe   : > { %5021 = vmatmul.mubr.msk.bf16.vlgmr.msra.gmra.mrb[28].mxu1 %vm872_vm10, %v1755_v0 }
 0xfbf   : > { %5025 = vmatpush3.bf16.xpose.msra.mxu1 %v1812_v2  ;;  %5026 = vmatprep.mubr.msk.bf16.mxu1 %vm5581_vm0, %v5580_v1 }
 0xfc0   : > { %5036 = vmatprep.subr.bf16.mxu1 %v5580_v1 }
 0xfc6   : > { %5027 = vmatmul.mubr.msk.bf16.vlgmr.msra.gmra.mrb[32].mxu1 %vm872_vm10, %v1805_v4 }
 0xfc7   : > { %5037 = vmatpush3.bf16.xpose.msra.mxu1 %v1922_v5  ;;  %5038 = vmatprep.mubr.msk.bf16.mxu1 %vm5581_vm0, %v5580_v1 }
 0xfc8   : > { %5048 = vmatprep.subr.bf16.mxu1 %v5580_v1 }
 0xfce   : > { %5039 = vmatmul.mubr.msk.bf16.vlgmr.msra.gmra.mrb[36].mxu1 %vm872_vm10, %v1915_v7 }
 0xfcf   : > { %5049 = vmatpush3.bf16.xpose.msra.mxu1 %v2032_v8  ;;  %5050 = vmatprep.mubr.msk.bf16.mxu1 %vm5581_vm0, %v5580_v1 }
 0xfd0   : > { %5060 = vmatprep.subr.bf16.mxu1 %v5580_v1 }
 0xfd6   : > { %5051 = vmatmul.mubr.msk.bf16.vlgmr.msra.gmra.mrb[40].mxu1 %vm872_vm10, %v2025_v11 }
 0xfd7   : > { %5064 = vmatprep.mubr.msk.bf16.mxu1 %vm5581_vm0, %v5580_v1 }
0x1091   : > { %v6079_v12 = vpop.f32.mrb[28].mxu1 }
0x1092   : > { %v5022_v13 = vpop.f32.mrb[29].mxu1 }
0x1093   : > { %v1801_v14 = vpop.f32.mrb[30].mxu1 }
0x1094   : > { %v5023_v16 = vpop.f32.mrb[31].mxu1  ;;  %v5377_v14 = vld [vmem:[%s6759_s9 + $0x10] sm:$0xff]  }
0x1095   : > { %5061 = vmatpush3.bf16.msra.mxu1 %v5377_v14 }
0x1096   : > { %5062 = vmatprep.subr.bf16.mxu1 %v5580_v1 }
0x1099   : > { %v1848_v17 = vpop.f32.mrb[32].mxu1 }
0x109a   : > { %v1849_v26 = vadd.f32 %v1848_v17, %v5879_v30  ;;  %v5028_v27 = vpop.f32.mrb[33].mxu1 }
0x109b   : > { %v1851_v15 = vpop.f32.mrb[34].mxu1 }
0x109c   : > { %v5029_v28 = vpop.f32.mrb[35].mxu1  ;;  %v1854_v9 = vsel %vm872_vm10, %v1849_v26, -inf }
0x109d   : > { %1855 = vmax.xlane.f32.xlu1 %v1854_v9 }
0x10a1   : > { %v1958_v29 = vpop.f32.mrb[36].mxu1 }
0x10a2   : > { %v1959_v31 = vadd.f32 %v1958_v29, %v5879_v30  ;;  %v5040_v47 = vpop.f32.mrb[37].mxu1 }
0x10a3   : > { %v1961_v32 = vpop.f32.mrb[38].mxu1 }
0x10a4   : > { %v5041_v33 = vpop.f32.mrb[39].mxu1  ;;  %v1964_v34 = vsel %vm872_vm10, %v1959_v31, -inf }
0x10a5   : > { %1965 = vmax.xlane.f32.xlu0 %v1964_v34 }
0x10a9   : > { %v2068_v35 = vpop.f32.mrb[40].mxu1 }
0x10aa   : > { %v2069_v36 = vadd.f32 %v2068_v35, %v5879_v30  ;;  %v5052_v37 = vpop.f32.mrb[41].mxu1 }
0x10ab   : > { %v2071_v38 = vpop.f32.mrb[42].mxu1 }
0x10ac   : > { %v5053_v39 = vpop.f32.mrb[43].mxu1  ;;  %v2074_v40 = vsel %vm872_vm10, %v2069_v36, -inf }
0x10ad   : > { %2075 = vmax.xlane.f32.xlu0 %v2074_v40 }
0x112a   : > { %v1856_v41 = vpop.xlane.xlu1 %1855 }
0x112b   : > { %v1857_v43 = vsub.f32 %v1849_v26, %v1856_v41 }
0x112d   : > { %v1858_v44 = vmul.f32 1.442695, %v1857_v43  ;;  %v4605_v43 = vld [vmem:[%s6859_s10 + $0x1] ss:$0 sm:$0xff]  ;;  %s6882_s10 = smov 72  }
0x112f   : > { %5450 = vpow2.f32 %v1858_v44 }
0x1132   : > { %v1966_v45 = vpop.xlane.xlu0 %1965 }
0x1133   : > { %v1967_v46 = vsub.f32 %v1959_v31, %v1966_v45  ;;  %v5378_v31 = vld [vmem:[%s6759_s9 + $0x18] sm:$0xff]  }
0x1134   : > { %5063 = vmatpush3.bf16.msra.mxu1 %v5378_v31 }
0x1135   : > { %v1968_v48 = vmul.f32 1.442695, %v1967_v46  ;;  %5076 = vmatprep.subr.bf16.mxu1 %v5580_v1 }
0x1137   : > { %5452 = vpow2.f32 %v1968_v48 }
0x1139   : > { %v5451_v49 = vpop.eup %5450 }
0x113a   : > { %v1860_v50 = vsel %vm872_vm10, %v5451_v49, 0.0  ;;  %v2076_v52 = vpop.xlane.xlu0 %2075 }
0x113b   : > { %1861 = vadd.xlane.f32.xlu1 %v1860_v50  ;;  %v2077_v53 = vsub.f32 %v2069_v36, %v2076_v52 }
0x113d   : > { %v2078_v54 = vmul.f32 1.442695, %v2077_v53 }
0x113f   : > { %5454 = vpow2.f32 %v2078_v54 }
0x1141   : > { %v5453_v51 = vpop.eup %5452 }
0x1142   : > { %v1970_v30 = vsel %vm872_vm10, %v5453_v51, 0.0 }
0x1143   : > { %1971 = vadd.xlane.f32.xlu0 %v1970_v30 }
0x1149   : > { %v5455_v55 = vpop.eup %5454 }
0x114a   : > { %v2080_v56 = vsel %vm872_vm10, %v5455_v55, 0.0 }
0x114c   : > { %1976 = vrot.lane.b32.xlu1 %v6032_v42, %s6871_s5  ;;  %s6876_s5 = smov 24  }
0x1159   : > { %1866 = vrot.lane.b32.xlu0 %v6032_v42, %s6872_s3  ;;  %s6874_s3 = smov 8  }
0x1170   : > { %2081 = vadd.xlane.f32.xlu1 %v2080_v56  ;;  %v5381_v56 = vld [vmem:[%s6765_s15 + $0x40] sm:$0xff]  }
0x1181   : > { %2086 = vrot.lane.b32.xlu1 %v6032_v42, %s6873_s26  ;;  %s4544_s26 = sshll.u32 %s6818_s2, 4  ;;  %s6898_s2 = sld [smem:[#allocation25_spill]] }
0x1182   : > { %s6254_s28 = scalar_lea.vmem [#allocation2], %s4544_s26  ;;  %s6887_s26 = smov 48  }
0x1183   : > { %6881 = sst [smem:[#allocation14_spill]] %s6254_s28 }
0x11c8   : > { %v1862_v57 = vpop.xlane.xlu1 %1861 }
0x11c9   : > { %5456 = vrcp.f32 %v1862_v57 }
0x11cc   : > { %v1977_v63 = vpop.permute.xlu1 %1976 }
0x11cd   : > { %v1982_v2 = vsel %vm936_vm11, %v1977_v63, 0  ;;  %v4610_v63 = vld [vmem:[%s6862_s12 + $0x1] ss:$0 sm:$0xff]  ;;  %s6886_s12 = smov 56  }
0x11d0   : > { %v1972_v58 = vpop.xlane.xlu0 %1971 }
0x11d1   : > { %5458 = vrcp.f32 %v1972_v58 }
0x11d3   : > { %v5457_v59 = vpop.eup %5456 }
0x11d4   : > { %v1864_v60 = vmul.f32 %v5457_v59, %v5451_v49  ;;  %v1867_v61 = vpop.permute.xlu0 %1866 }
0x11d5   : > { %v1872_v62 = vsel %vm936_vm11, %v1867_v61, 0  ;;  %v4609_v61 = vld [vmem:[%s6861_s11 + $0x1] ss:$0 sm:$0xff]  ;;  %s6883_s11 = smov 104  }
0x11d6   : > { %5031 = vmatpush3.bf16.msra.mxu0 %v1872_v62  ;;  %v1865_v0 = vpack.c.bf16 %v1864_v60, %v1864_v60 }
0x11d7   : > { %5042 = vmatprep.subr.bf16.mxu0 %v5580_v1 }
0x11d9   : > { %5033 = vmatmul.mubr.msk.bf16.vlgmr.msra.gmra.mrb[32].mxu0 %vm872_vm10, %v1865_v0 }
0x11da   : > { %5043 = vmatpush3.bf16.msra.mxu0 %v1982_v2  ;;  %5044 = vmatprep.mubr.msk.bf16.mxu0 %vm5581_vm0, %v5580_v1 }
0x11db   : > { %v5459_v42 = vpop.eup %5458  ;;  %5054 = vmatprep.subr.bf16.mxu0 %v5580_v1 }
0x11dc   : > { %v1974_v3 = vmul.f32 %v5459_v42, %v5453_v51 }
0x11de   : > { %v1975_v4 = vpack.c.bf16 %v1974_v3, %v1974_v3  ;;  %v5382_v3 = vld [vmem:[%s6765_s15 + $0x48] sm:$0xff]  }
0x11e1   : > { %5045 = vmatmul.mubr.msk.bf16.vlgmr.msra.gmra.mrb[36].mxu0 %vm872_vm10, %v1975_v4  ;;  %v5383_v4 = vld [vmem:[%s6765_s15 + $0x50] sm:$0xff]  }
0x11e2   : > { %5056 = vmatprep.mubr.msk.bf16.mxu0 %vm5581_vm0, %v5580_v1 }
0x11fd   : > { %v2082_v5 = vpop.xlane.xlu1 %2081 }
0x11fe   : > { %5460 = vrcp.f32 %v2082_v5  ;;  %v5384_v5 = vld [vmem:[%s6765_s15 + $0x58] sm:$0xff]  }
0x1201   : > { %v2087_v6 = vpop.permute.xlu1 %2086 }
0x1202   : > { %v2092_v7 = vsel %vm936_vm11, %v2087_v6, 0  ;;  %v5385_v6 = vld [vmem:[%s6765_s15 + $0x60] sm:$0xff]  }
0x1203   : > { %5055 = vmatpush3.bf16.msra.mxu0 %v2092_v7  ;;  %v5386_v7 = vld [vmem:[%s6765_s15 + $0x68] sm:$0xff]  }
0x1204   : > { %5068 = vmatprep.subr.bf16.mxu0 %v5580_v1 }
0x1208   : > { %v5461_v8 = vpop.eup %5460 }
0x1209   : > { %v2084_v11 = vmul.f32 %v5461_v8, %v5455_v55  ;;  %v5379_v55 = vld [vmem:[%s6860_s13 + $0x10] sm:$0xff]  }
0x120a   : > { %v5387_v8 = vld [vmem:[%s6765_s15 + $0x70] sm:$0xff]  }
0x120b   : > { %v2085_v13 = vpack.c.bf16 %v2084_v11, %v2084_v11  ;;  %v5388_v11 = vld [vmem:[%s6765_s15 + $0x78] sm:$0xff]  }
0x120d   : > { %5057 = vmatmul.mubr.msk.bf16.vlgmr.msra.gmra.mrb[40].mxu0 %vm872_vm10, %v2085_v13  ;;  %v4615_v13 = vld [vmem:[%s6764_s14 + $0x1] ss:$0 sm:$0xff] }
0x120e   : > { %5072 = vmatprep.mubr.msk.bf16.mxu0 %vm5581_vm0, %v5580_v1  ;;  %5069 = vmatpush3.bf16.msra.mxu0 %v5379_v55  ;;  %v2603_v55 = vrot.slane %v5783_v23, 4 }
0x120f   : > { %5070 = vmatprep.subr.bf16.mxu0 %v5580_v1 }
0x12ac   : > { %v1908_v16 = vpop.f32.mrb[32].mxu0 }
0x12ad   : > { %2135 = vrot.lane.b32.xlu0 %v1908_v16, %s6874_s3  ;;  %v5034_v17 = vpop.f32.mrb[33].mxu0 }
0x12ae   : > { %v1911_v26 = vpop.f32.mrb[34].mxu0 }
0x12af   : > { %v5035_v27 = vpop.f32.mrb[35].mxu0 }
0x12b4   : > { %v2018_v15 = vpop.f32.mrb[36].mxu0 }
0x12b5   : > { %2139 = vrot.lane.b32.xlu1 %v2018_v15, %s6875_s4  ;;  %v5046_v28 = vpop.f32.mrb[37].mxu0  ;;  %s6884_s4 = sld [smem:[#allocation17_spill]] }
0x12b6   : > { %v2021_v9 = vpop.f32.mrb[38].mxu0 }
0x12b7   : > { %v5047_v29 = vpop.f32.mrb[39].mxu0 }
0x12e0   : > { %v2128_v47 = vpop.f32.mrb[40].mxu0 }
0x12e1   : > { %2143 = vrot.lane.b32.xlu0 %v2128_v47, %s6876_s5  ;;  %v5058_v32 = vpop.f32.mrb[41].mxu0  ;;  %s6885_s5 = smov 64  }
0x12e2   : > { %v2131_v33 = vpop.f32.mrb[42].mxu0 }
0x12e3   : > { %v5059_v34 = vpop.f32.mrb[43].mxu0 }
0x131f   : > { %v2136_v35 = vpop.permute.xlu0 %2135 }
0x1320   : > { %v2146_v37 = vsel %vm872_vm10, %v6079_v12, %v2136_v35 }
0x1327   : > { %v2140_v36 = vpop.permute.xlu1 %2139 }
0x1328   : > { %v2147_v38 = vsel %vm727_vm8, %v2146_v37, %v2140_v36  ;;  %v4635_v36 = vld [vmem:[%s6766_s16 + $0x1] ss:$0 sm:$0xff] }
0x1353   : > { %v2144_v39 = vpop.permute.xlu0 %2143 }
0x1354   : > { %v2148_v40 = vsel %vm1324_vm12, %v2147_v38, %v2144_v39 }
0x1355   : > { %v2149_v41 = vpack.c.bf16 %v2148_v40, %v2148_v40 }
0x1357   : > { %5065 = vmatmul.mubr.msk.bf16.vlgmr.msra.gmra.mrb[44].mxu1 %vm774_vm9, %v2149_v41 }
0x1358   : > { %5092 = vmatprep.mubr.msk.bf16.mxu1 %vm5581_vm0, %v5580_v1  ;;  %5077 = vmatpush3.bf16.msra.mxu1 %v5381_v56  ;;  %v2605_v56 = vrot.slane %v5785_v24, 3  ;;  %v4644_v24 = vld [vmem:[%s6878_s17] ss:$0 sm:$0xff] }
0x1359   : > { %5078 = vmatprep.subr.bf16.mxu1 %v5580_v1 }
0x135c   : > { %5079 = vmatpush3.bf16.msra.mxu1 %v5382_v3 }
0x135d   : > { %5080 = vmatprep.subr.bf16.mxu1 %v5580_v1 }
0x1360   : > { %5081 = vmatpush3.bf16.msra.mxu1 %v5383_v4  ;;  %v5596_v4 = vmov 1966171168  }
0x1361   : > { %5082 = vmatprep.subr.bf16.mxu1 %v5580_v1 }
0x1364   : > { %5083 = vmatpush3.bf16.msra.mxu1 %v5384_v5  ;;  %v2522_v5 = vunpack.c.l.s4 %v5596_v4 }
0x1365   : > { %5084 = vmatprep.subr.bf16.mxu1 %v5580_v1 }
0x1368   : > { %5085 = vmatpush3.bf16.msra.mxu1 %v5385_v6  ;;  %v2524_v6 = vlaneseq }
0x1369   : > { %5086 = vmatprep.subr.bf16.mxu1 %v5580_v1 }
0x136c   : > { %5087 = vmatpush3.bf16.msra.mxu1 %v5386_v7  ;;  %v2523_v7 = vunpack.c.0.s8 %v2522_v5 }
0x136d   : > { %5088 = vmatprep.subr.bf16.mxu1 %v5580_v1 }
0x1370   : > { %5089 = vmatpush3.bf16.msra.mxu1 %v5387_v8  ;;  %v2525_v8 = vshrl.u32 %v2524_v6, 7 }
0x1371   : > { %5090 = vmatprep.subr.bf16.mxu1 %v5580_v1 }
0x1374   : > { %5091 = vmatpush3.bf16.msra.mxu1 %v5388_v11  ;;  %v4646_v11 = vld [vmem:[%s6880_s20] ss:$0 sm:$0xff] }
0x1375   : > { %5124 = vmatprep.subr.bf16.mxu1 %v5580_v1 }
0x142a   : > { %v2204_v44 = vpop.f32.mrb[44].mxu1 }
0x142b   : > { %v2205_v45 = vadd.f32 %v4605_v43, %v2204_v44  ;;  %v5066_v46 = vpop.f32.mrb[45].mxu1 }
0x142c   : > { %v2207_v48 = vpop.f32.mrb[46].mxu1 }
0x142d   : > { %v6133_v12 = vadd.f32 %v2205_v45, %v6006_v10  ;;  %v5067_v49 = vpop.f32.mrb[47].mxu1  ;;  %v5380_v10 = vld [vmem:[%s6860_s13 + $0x18] sm:$0xff]  }
0x142e   : > { %5071 = vmatpush3.bf16.msra.mxu0 %v5380_v10 }
0x142f   : > { %v2213_v50 = vsel %vm774_vm9, %v6133_v12, 0.0  ;;  %5096 = vmatprep.subr.bf16.mxu0 %v5580_v1 }
0x1430   : > { %2214 = vadd.xlane.f32.xlu1 %v2213_v50 }
0x14bd   : > { %v2215_v51 = vpop.xlane.xlu1 %2214 }
0x14be   : > { %v2216_v30 = vmul.f32 0.03125, %v2215_v51  ;;  %v5389_v51 = vld [vmem:[%s6877_s19] sm:$0xff]  }
0x14c0   : > { %v2217_v52 = vsub.f32 %v6133_v12, %v2216_v30  ;;  %v5390_v30 = vld [vmem:[%s6877_s19 + $0x8] sm:$0xff]   ;;  %s6895_s19 = sld [smem:[#allocation22_spill]] }
0x14c2   : > { %v2218_v53 = vmul.f32 %v2217_v52, %v2217_v52 }
0x14c4   : > { %v2219_v54 = vsel %vm774_vm9, %v2218_v53, 0.0  ;;  %v2599_v53 = vrot.slane %v5779_v21, 6 }
0x14c5   : > { %2220 = vadd.xlane.f32.xlu0 %v2219_v54  ;;  %v2601_v54 = vrot.slane %v5781_v22, 5 }
0x1552   : > { %v2221_v57 = vpop.xlane.xlu0 %2220 }
0x1553   : > { %v2222_v58 = vmul.f32 0.03125, %v2221_v57 }
0x1555   : > { %v2223_v59 = vadd.f32 1e-05, %v2222_v58 }
0x1557   : > { %5462 = vrsqrt.f32 %v2223_v59 }
0x1561   : > { %v5463_v60 = vpop.eup %5462 }
0x1562   : > { %v2225_v62 = vmul.f32 %v5463_v60, %v2217_v52  ;;  %v2597_v52 = vrot.slane %v5777_v20, 7 }
0x1564   : > { %v2230_v0 = vmul.f32 %v4609_v61, %v2225_v62  ;;  %v4645_v62 = vld [vmem:[%s6879_s18] ss:$0 sm:$0xff] }
0x1566   : > { %v2235_v2 = vadd.f32 %v4610_v63, %v2230_v0 }
0x1568   : > { %v2241_v42 = vpack.c.bf16 %v2235_v2, %v2235_v2  ;;  %v5391_v2 = vld [vmem:[%s6853_s24] sm:$0xff]   ;;  %s6892_s24 = sld [smem:[#allocation22_spill]] }
0x156a   : > { %5073 = vmatmul.mubr.msk.bf16.vlgmr.msra.gmra.mrb[44].mxu0 %vm774_vm9, %v2241_v42 }
0x156b   : > { %5100 = vmatprep.mubr.msk.bf16.mxu0 %vm5581_vm0, %v5580_v1  ;;  %5097 = vmatpush3.bf16.msra.mxu0 %v5389_v51 }
0x156c   : > { %5098 = vmatprep.subr.bf16.mxu0 %v5580_v1 }
0x156f   : > { %5099 = vmatpush3.bf16.msra.mxu0 %v5390_v30 }
0x1570   : > { %5104 = vmatprep.subr.bf16.mxu0 %v5580_v1 }
0x163d   : > { %v2296_v14 = vpop.f32.mrb[44].mxu0 }
0x163e   : > { %v2297_v16 = vadd.f32 %v4615_v13, %v2296_v14  ;;  %v5074_v17 = vpop.f32.mrb[45].mxu0  ;;  %v6242_v13 = vsub.s32 %v2523_v7, %v2525_v8 }
0x163f   : > { %v2299_v26 = vpop.f32.mrb[46].mxu0 }
0x1640   : > { %v2303_v27 = vmul.f32 0.044715, %v2297_v16  ;;  %v5075_v15 = vpop.f32.mrb[47].mxu0  ;;  %v2302_v32 = vmul.f32 0.5, %v2297_v16 }
0x1642   : > { %v2304_v28 = vmul.f32 %v2303_v27, %v2297_v16 }
0x1644   : > { %v2305_v9 = vmul.f32 %v2304_v28, %v2297_v16 }
0x1646   : > { %v2306_v29 = vadd.f32 %v2305_v9, %v2297_v16 }
0x1648   : > { %v2307_v31 = vmul.f32 0.7978846, %v2306_v29 }
0x164a   : > { %5464 = vtanh.f32 %v2307_v31 }
0x1654   : > { %v5465_v47 = vpop.eup %5464 }
0x1655   : > { %v2309_v33 = vadd.f32 1.0, %v5465_v47  ;;  %v4650_v47 = vld [vmem:[%s6855_s0] ss:$0 sm:$0xff]  ;;  %s6896_s0 = sld [smem:[#allocation23_spill]] }
0x1657   : > { %v2310_v34 = vmul.f32 %v2309_v33, %v2302_v32 }
0x1659   : > { %v2328_v35 = vpack.c.bf16 %v2310_v34, %v2310_v34 }
0x165b   : > { %5093 = vmatmul.mubr.bf16.vlgmr.msra.gmra.mrb[48].mxu1 %v2328_v35 }
0x165c   : > { %5126 = vmatprep.mubr.msk.bf16.mxu1 %vm5581_vm0, %v5580_v1 }
0x172e   : > { %v2416_v37 = vpop.f32.mrb[48].mxu1 }
0x172f   : > { %v2417_v38 = vadd.f32 %v4635_v36, %v2416_v37  ;;  %v5094_v39 = vpop.f32.mrb[49].mxu1 }
0x1730   : > { %v2419_v40 = vpop.f32.mrb[50].mxu1 }
0x1731   : > { %v5095_v41 = vpop.f32.mrb[51].mxu1  ;;  %v2422_v43 = vadd.f32 %v2417_v38, %v6133_v12  ;;  %v2595_v12 = vrot.slane %v5773_v18, 1  ;;  %v2607_v18 = vrot.slane %v5787_v25, 2 }
0x1733   : > { %v2425_v44 = vsel %vm774_vm9, %v2422_v43, 0.0  ;;  %v2596_v10 = vsel %vm700_vm1, %v5775_v19, %v2595_v12 }
0x1734   : > { %2426 = vadd.xlane.f32.xlu0 %v2425_v44  ;;  %v2598_v57 = vsel %vm703_vm2, %v2597_v52, %v2596_v10 }
0x1735   : > { %v2600_v20 = vsel %vm706_vm3, %v2599_v53, %v2598_v57  ;;  %v5392_v53 = vld [vmem:[%s6757_s7] sm:$0xff]  }
0x1736   : > { %v2602_v21 = vsel %vm709_vm4, %v2601_v54, %v2600_v20  ;;  %v5393_v54 = vld [vmem:[%s6757_s7 + $0x8] sm:$0xff]  }
0x1737   : > { %v2604_v58 = vsel %vm712_vm5, %v2603_v55, %v2602_v21  ;;  %v4654_v21 = vld [vmem:[%s6756_s6] ss:$0 sm:$0xff] }
0x1738   : > { %v2606_v22 = vsel %vm715_vm6, %v2605_v56, %v2604_v58 }
0x1739   : > { %v2608_v59 = vsel %vm718_vm7, %v2607_v18, %v2606_v22  ;;  %v4653_v18 = vld [vmem:[%s6857_s22] ss:$0 sm:$0xff] }
0x173a   : > { %v2609_v3 = vpack.c.b16 %v2608_v59, %v2608_v59 }
0x17c1   : > { %v2427_v45 = vpop.xlane.xlu0 %2426 }
0x17c2   : > { %v2428_v46 = vmul.f32 0.03125, %v2427_v45  ;;  %v5514_v45 = vld [vmem:[%s6856_s1] sm:$0xff]  ;;  %s6891_s1 = sld [smem:[#allocation21_spill]] }
0x17c4   : > { %v2429_v48 = vsub.f32 %v2422_v43, %v2428_v46 }
0x17c6   : > { %v2430_v49 = vmul.f32 %v2429_v48, %v2429_v48 }
0x17c8   : > { %v2431_v50 = vsel %vm774_vm9, %v2430_v49, 0.0 }
0x17c9   : > { %2432 = vadd.xlane.f32.xlu1 %v2431_v50 }
0x1856   : > { %v2433_v23 = vpop.xlane.xlu1 %2432 }
0x1857   : > { %v2434_v60 = vmul.f32 0.03125, %v2433_v23  ;;  %v4655_v23 = vld [vmem:[%s6758_s8] ss:$0 sm:$0xff] }
0x1859   : > { %v2435_v61 = vadd.f32 1e-05, %v2434_v60 }
0x185b   : > { %5466 = vrsqrt.f32 %v2435_v61 }
0x1865   : > { %v5467_v19 = vpop.eup %5466 }
0x1866   : > { %v2437_v25 = vmul.f32 %v5467_v19, %v2429_v48 }
0x1868   : > { %v2444_v63 = vmul.f32 %v4644_v24, %v2437_v25 }
0x186a   : > { %v2451_v0 = vadd.f32 %v4645_v62, %v2444_v63 }
0x186c   : > { %v2456_v42 = vpack.c.bf16 %v2451_v0, %v2451_v0 }
0x186e   : > { %5101 = vmatmul.mubr.msk.bf16.vlgmr.msra.gmra.mrb[48].mxu0 %vm774_vm9, %v2456_v42 }
0x186f   : > { %5105 = vmatpush3.bf16.msra.mxu0 %v5391_v2  ;;  %5106 = vmatprep.mubr.msk.bf16.mxu0 %vm5581_vm0, %v5580_v1 }
0x1870   : > { %5110 = vmatprep.subr.bf16.mxu0 %v5580_v1 }
0x1876   : > { %5107 = vmatmul.mubr.msk.bf16.vlgmr.msra.gmra.mrb[52].mxu0 %vm727_vm8, %v2609_v3 }
0x1877   : > { %5114 = vmatprep.mubr.msk.bf16.mxu0 %vm5581_vm0, %v5580_v1  ;;  %5111 = vmatpush3.bf16.msra.mxu0 %v5392_v53 }
0x1878   : > { %5112 = vmatprep.subr.bf16.mxu0 %v5580_v1 }
0x187b   : > { %5113 = vmatpush3.bf16.msra.mxu0 %v5393_v54 }
0x187c   : > { %5118 = vmatprep.subr.bf16.mxu0 %v5580_v1 }
0x1941   : > { %v2513_v14 = vpop.f32.mrb[48].mxu0 }
0x1942   : > { %v2514_v16 = vadd.f32 %v4646_v11, %v2513_v14  ;;  %v5102_v17 = vpop.f32.mrb[49].mxu0 }
0x1943   : > { %v2516_v26 = vpop.f32.mrb[50].mxu0 }
0x1944   : > { %v2520_v27 = vcombine.high %v2514_v16, %v2514_v16  ;;  %v2527_v15 = vrot.slane %v2514_v16, %v6242_v13  ;;  %v5103_v28 = vpop.f32.mrb[51].mxu0  ;;  %v6342_v16 = vld [vmem:[%s6884_s4] sm:$0xff]  ;;  %s6888_s4 = smov 40  }
0x1946   : > { %v2534_v9 = vrot.slane %v2520_v27, %v6242_v13  ;;  %v2535_v29 = vcombine.high %v2527_v15, %v2527_v15  ;;  %v2543_v31 = vrot.slane %v2527_v15, %v6242_v13 }
0x1948   : > { %v2536_v32 = vcombine.high %v2534_v9, %v2534_v9  ;;  %v2550_v33 = vrot.slane %v2534_v9, %v6242_v13  ;;  %v2557_v34 = vrot.slane %v2535_v29, %v6242_v13  ;;  %v2565_v35 = vcombine.high %v2543_v31, %v2543_v31  ;;  %2578 = vst.msk [vmem:[%s6254_s28] sm:$0x1] %vm2577_vm13, %v2543_v31 }
0x1949   : > { %v2653_v36 = vpop.f32.mrb[52].mxu0 }
0x194a   : > { %v2564_v37 = vrot.slane %v2536_v32, %v6242_v13  ;;  %v2566_v38 = vcombine.high %v2550_v33, %v2550_v33  ;;  %v2567_v39 = vcombine.high %v2557_v34, %v2557_v34  ;;  %2579 = vst.msk [vmem:[%s6254_s28 + $0x2] sm:$0x1] %vm2577_vm13, %v2557_v34  ;;  %2580 = vst.msk [vmem:[%s6254_s28 + $0x4] sm:$0x1] %vm2577_vm13, %v2565_v35  ;;  %v5108_v41 = vpop.f32.mrb[53].mxu0 }
0x194b   : > { %2582 = vst.msk [vmem:[%s6254_s28 + $0x8] sm:$0x1] %vm2577_vm13, %v2550_v33  ;;  %v2654_v40 = vadd.f32 %v4650_v47, %v2653_v36  ;;  %v2656_v43 = vpop.f32.mrb[54].mxu0 }
0x194c   : > { %v2568_v44 = vcombine.high %v2564_v37, %v2564_v37  ;;  %2581 = vst.msk [vmem:[%s6254_s28 + $0x6] sm:$0x1] %vm2577_vm13, %v2567_v39  ;;  %2583 = vst.msk [vmem:[%s6254_s28 + $0xa] sm:$0x1] %vm2577_vm13, %v2564_v37  ;;  %v5109_v48 = vpop.f32.mrb[55].mxu0 }
0x194d   : > { %2584 = vst.msk [vmem:[%s6254_s28 + $0xc] sm:$0x1] %vm2577_vm13, %v2566_v38  ;;  %v6274_v46 = vadd.f32 %v5514_v45, %v2654_v40 }
0x194e   : > { %2585 = vst.msk [vmem:[%s6254_s28 + $0xe] sm:$0x1] %vm2577_vm13, %v2568_v44  ;;  %s6890_s28 = smov 24  }
0x194f   : > { %v2662_v49 = vsel %vm774_vm9, %v6274_v46, 0.0 }
0x1950   : > { %2663 = vadd.xlane.f32.xlu0 %v2662_v49 }
0x19dd   : > { %v2664_v50 = vpop.xlane.xlu0 %2663 }
0x19de   : > { %v2665_v51 = vmul.f32 0.03125, %v2664_v50 }
0x19e0   : > { %v2666_v30 = vsub.f32 %v6274_v46, %v2665_v51 }
0x19e2   : > { %v2667_v12 = vmul.f32 %v2666_v30, %v2666_v30 }
0x19e4   : > { %v2668_v52 = vsel %vm774_vm9, %v2667_v12, 0.0 }
0x19e5   : > { %2669 = vadd.xlane.f32.xlu1 %v2668_v52 }
0x1a72   : > { %v2670_v55 = vpop.xlane.xlu1 %2669 }
0x1a73   : > { %v2671_v10 = vmul.f32 0.03125, %v2670_v55 }
0x1a75   : > { %v2672_v56 = vadd.f32 1e-05, %v2671_v10 }
0x1a77   : > { %5468 = vrsqrt.f32 %v2672_v56 }
0x1a81   : > { %v5469_v57 = vpop.eup %5468 }
0x1a82   : > { %v2674_v20 = vmul.f32 %v5469_v57, %v2666_v30 }
0x1a84   : > { %v2679_v58 = vmul.f32 %v4653_v18, %v2674_v20 }
0x1a86   : > { %v2684_v22 = vadd.f32 %v4654_v21, %v2679_v58 }
0x1a88   : > { %v2689_v59 = vpack.c.bf16 %v2684_v22, %v2684_v22 }
0x1a8a   : > { %5115 = vmatmul.mubr.msk.bf16.vlgmr.msra.gmra.mrb[56].mxu0 %vm774_vm9, %v2689_v59 }
0x1a8b   : > { %5120 = vmatprep.mubr.msk.bf16.mxu0 %vm5581_vm0, %v5580_v1 }
0x1b5d   : > { %v2744_v60 = vpop.f32.mrb[56].mxu0 }
0x1b5e   : > { %v2745_v61 = vadd.f32 %v4655_v23, %v2744_v60  ;;  %v5116_v19 = vpop.f32.mrb[57].mxu0 }
0x1b5f   : > { %v2747_v24 = vpop.f32.mrb[58].mxu0 }
0x1b60   : > { %v6302_v25 = vpack.c.bf16 %v2745_v61, %v2745_v61  ;;  %v5117_v62 = vpop.f32.mrb[59].mxu0 }
0x1b62   : > { %2866 = vrot.lane.b32.xlu1 %v6302_v25, %s6864_s21  ;;  %2756 = vrot.lane.b32.xlu0 %v6302_v25, %s6863_s29 }
0x1b66   : > { %2864 = vrot.lane.b32.xlu1 %v6302_v25, %s6865_s27  ;;  %2976 = vrot.lane.b32.xlu0 %v6302_v25, %s6869_s23 }
0x1b6a   : > { %2974 = vrot.lane.b32.xlu1 %v6302_v25, %s6866_s30  ;;  %3086 = vrot.lane.b32.xlu0 %v6302_v25, %s6882_s10 }
0x1b6e   : > { %3084 = vrot.lane.b32.xlu1 %v6302_v25, %s6883_s11 }
0x1bd4   : > { %v2757_v63 = vpop.permute.xlu0 %2756  ;;  %v2867_v2 = vpop.permute.xlu1 %2866 }
0x1bd5   : > { %v2762_v0 = vsel %vm872_vm10, %v2757_v63, 0  ;;  %v2872_v42 = vsel %vm872_vm10, %v2867_v2, 0 }
0x1bd6   : > { %5119 = vmatpush3.bf16.xpose.msra.mxu0 %v2762_v0 }
0x1bd7   : > { %5130 = vmatprep.subr.bf16.mxu0 %v5580_v1 }
0x1bd8   : > { %v2977_v3 = vpop.permute.xlu0 %2976  ;;  %v2865_v4 = vpop.permute.xlu1 %2864 }
0x1bd9   : > { %v2982_v5 = vsel %vm872_vm10, %v2977_v3, 0 }
0x1bdc   : > { %v3087_v6 = vpop.permute.xlu0 %3086  ;;  %v2975_v7 = vpop.permute.xlu1 %2974 }
0x1bdd   : > { %5121 = vmatmul.mubr.msk.bf16.vlgmr.msra.gmra.mrb[60].mxu0 %vm872_vm10, %v6302_v25  ;;  %v3092_v8 = vsel %vm872_vm10, %v3087_v6, 0 }
0x1bde   : > { %5131 = vmatpush3.bf16.xpose.msra.mxu0 %v2872_v42  ;;  %5132 = vmatprep.mubr.msk.bf16.mxu0 %vm5581_vm0, %v5580_v1 }
0x1bdf   : > { %5142 = vmatprep.subr.bf16.mxu0 %v5580_v1 }
0x1be0   : > { %v3085_v11 = vpop.permute.xlu1 %3084 }
0x1be5   : > { %5133 = vmatmul.mubr.msk.bf16.vlgmr.msra.gmra.mrb[64].mxu0 %vm872_vm10, %v2865_v4 }
0x1be6   : > { %5143 = vmatpush3.bf16.xpose.msra.mxu0 %v2982_v5  ;;  %5144 = vmatprep.mubr.msk.bf16.mxu0 %vm5581_vm0, %v5580_v1 }
0x1be7   : > { %5154 = vmatprep.subr.bf16.mxu0 %v5580_v1 }
0x1bed   : > { %5145 = vmatmul.mubr.msk.bf16.vlgmr.msra.gmra.mrb[68].mxu0 %vm872_vm10, %v2975_v7 }
0x1bee   : > { %5155 = vmatpush3.bf16.xpose.msra.mxu0 %v3092_v8  ;;  %5156 = vmatprep.mubr.msk.bf16.mxu0 %vm5581_vm0, %v5580_v1 }
0x1bef   : > { %5166 = vmatprep.subr.bf16.mxu0 %v5580_v1 }
0x1bf5   : > { %5157 = vmatmul.mubr.msk.bf16.vlgmr.msra.gmra.mrb[72].mxu0 %vm872_vm10, %v3085_v11 }
0x1bf6   : > { %5170 = vmatprep.mubr.msk.bf16.mxu0 %vm5581_vm0, %v5580_v1 }
0x1cb0   : > { %v2798_v14 = vpop.f32.mrb[60].mxu0 }
0x1cb1   : > { %v2799_v17 = vadd.f32 %v6342_v16, %v2798_v14  ;;  %v5122_v26 = vpop.f32.mrb[61].mxu0 }
0x1cb2   : > { %v2801_v27 = vpop.f32.mrb[62].mxu0 }
0x1cb3   : > { %v5123_v15 = vpop.f32.mrb[63].mxu0  ;;  %v2804_v28 = vsel %vm872_vm10, %v2799_v17, -inf }
0x1cb4   : > { %2805 = vmax.xlane.f32.xlu0 %v2804_v28 }
0x1cb8   : > { %v2908_v9 = vpop.f32.mrb[64].mxu0 }
0x1cb9   : > { %v2909_v29 = vadd.f32 %v6342_v16, %v2908_v9  ;;  %v5134_v31 = vpop.f32.mrb[65].mxu0 }
0x1cba   : > { %v2911_v47 = vpop.f32.mrb[66].mxu0 }
0x1cbb   : > { %v5135_v32 = vpop.f32.mrb[67].mxu0  ;;  %v2914_v33 = vsel %vm872_vm10, %v2909_v29, -inf }
0x1cbc   : > { %2915 = vmax.xlane.f32.xlu1 %v2914_v33 }
0x1cc0   : > { %v3018_v34 = vpop.f32.mrb[68].mxu0 }
0x1cc1   : > { %v3019_v35 = vadd.f32 %v6342_v16, %v3018_v34  ;;  %v5146_v36 = vpop.f32.mrb[69].mxu0 }
0x1cc2   : > { %v3021_v37 = vpop.f32.mrb[70].mxu0 }
0x1cc3   : > { %v5147_v38 = vpop.f32.mrb[71].mxu0  ;;  %v3024_v39 = vsel %vm872_vm10, %v3019_v35, -inf }
0x1cc4   : > { %3025 = vmax.xlane.f32.xlu0 %v3024_v39  ;;  %v5394_v38 = vld [vmem:[%s6759_s9] sm:$0xff]   ;;  %v5395_v39 = vld [vmem:[%s6759_s9 + $0x8] sm:$0xff]  }
0x1cc5   : > { %5167 = vmatpush3.bf16.msra.mxu0 %v5394_v38 }
0x1cc6   : > { %5168 = vmatprep.subr.bf16.mxu0 %v5580_v1 }
0x1cc8   : > { %v3128_v40 = vpop.f32.mrb[72].mxu0 }
0x1cc9   : > { %v3129_v41 = vadd.f32 %v6342_v16, %v3128_v40  ;;  %v5158_v43 = vpop.f32.mrb[73].mxu0  ;;  %5169 = vmatpush3.bf16.msra.mxu0 %v5395_v39 }
0x1cca   : > { %v3131_v44 = vpop.f32.mrb[74].mxu0  ;;  %5182 = vmatprep.subr.bf16.mxu0 %v5580_v1 }
0x1ccb   : > { %v5159_v45 = vpop.f32.mrb[75].mxu0  ;;  %v3134_v48 = vsel %vm872_vm10, %v3129_v41, -inf }
0x1ccc   : > { %3135 = vmax.xlane.f32.xlu0 %v3134_v48 }
0x1d41   : > { %v2806_v49 = vpop.xlane.xlu0 %2805 }
0x1d42   : > { %v2807_v50 = vsub.f32 %v2799_v17, %v2806_v49 }
0x1d44   : > { %v2808_v51 = vmul.f32 1.442695, %v2807_v50 }
0x1d46   : > { %5470 = vpow2.f32 %v2808_v51 }
0x1d49   : > { %v2916_v30 = vpop.xlane.xlu1 %2915 }
0x1d4a   : > { %v2917_v12 = vsub.f32 %v2909_v29, %v2916_v30 }
0x1d4c   : > { %v2918_v52 = vmul.f32 1.442695, %v2917_v12 }
0x1d4e   : > { %5472 = vpow2.f32 %v2918_v52 }
0x1d50   : > { %v5471_v53 = vpop.eup %5470 }
0x1d51   : > { %v2810_v54 = vsel %vm872_vm10, %v5471_v53, 0.0  ;;  %v3026_v55 = vpop.xlane.xlu0 %3025 }
0x1d52   : > { %2811 = vadd.xlane.f32.xlu1 %v2810_v54  ;;  %v3027_v22 = vsub.f32 %v3019_v35, %v3026_v55 }
0x1d54   : > { %v3028_v59 = vmul.f32 1.442695, %v3027_v22 }
0x1d58   : > { %v5473_v10 = vpop.eup %5472 }
0x1d59   : > { %v3136_v56 = vpop.xlane.xlu0 %3135  ;;  %v2920_v57 = vsel %vm872_vm10, %v5473_v10, 0.0 }
0x1d5a   : > { %v3137_v18 = vsub.f32 %v3129_v41, %v3136_v56  ;;  %2921 = vadd.xlane.f32.xlu0 %v2920_v57 }
0x1d5c   : > { %v3138_v20 = vmul.f32 1.442695, %v3137_v18 }
0x1d5e   : > { %5474 = vpow2.f32 %v3138_v20 }
0x1d5f   : > { %5476 = vpow2.f32 %v3028_v59 }
0x1d63   : > { %2816 = vrot.lane.b32.xlu1 %v6302_v25, %s6885_s5 }
0x1d68   : > { %v5475_v21 = vpop.eup %5474 }
0x1d69   : > { %v3140_v58 = vsel %vm872_vm10, %v5475_v21, 0.0  ;;  %v5477_v23 = vpop.eup %5476 }
0x1d6a   : > { %3141 = vadd.xlane.f32.xlu0 %v3140_v58  ;;  %v3030_v60 = vsel %vm872_vm10, %v5477_v23, 0.0 }
0x1d80   : > { %2926 = vrot.lane.b32.xlu0 %v6302_v25, %s6886_s12 }
0x1d87   : > { %3031 = vadd.xlane.f32.xlu1 %v3030_v60 }
0x1d98   : > { %3036 = vrot.lane.b32.xlu1 %v6302_v25, %s6887_s26 }
0x1d9c   : > { %3146 = vrot.lane.b32.xlu1 %v6302_v25, %s6888_s4 }
0x1ddf   : > { %v2812_v61 = vpop.xlane.xlu1 %2811 }
0x1de0   : > { %5478 = vrcp.f32 %v2812_v61 }
0x1de3   : > { %v2817_v19 = vpop.permute.xlu1 %2816 }
0x1de4   : > { %v2822_v24 = vsel %vm936_vm11, %v2817_v19, 0 }
0x1de5   : > { %5125 = vmatpush3.bf16.msra.mxu1 %v2822_v24  ;;  %v5396_v24 = vld [vmem:[%s6860_s13] sm:$0xff]  }
0x1de6   : > { %5136 = vmatprep.subr.bf16.mxu1 %v5580_v1 }
0x1de7   : > { %v2922_v63 = vpop.xlane.xlu0 %2921 }
0x1de8   : > { %5480 = vrcp.f32 %v2922_v63 }
0x1dea   : > { %v5479_v62 = vpop.eup %5478 }
0x1deb   : > { %v2814_v0 = vmul.f32 %v5479_v62, %v5471_v53  ;;  %v5398_v62 = vld [vmem:[%s6765_s15] sm:$0xff]  }
0x1ded   : > { %v2815_v2 = vpack.c.bf16 %v2814_v0, %v2814_v0 }
0x1def   : > { %5127 = vmatmul.mubr.msk.bf16.vlgmr.msra.gmra.mrb[52].mxu1 %vm872_vm10, %v2815_v2 }
0x1df0   : > { %5138 = vmatprep.mubr.msk.bf16.mxu1 %vm5581_vm0, %v5580_v1 }
0x1df2   : > { %v5481_v42 = vpop.eup %5480 }
0x1df3   : > { %v2924_v3 = vmul.f32 %v5481_v42, %v5473_v10  ;;  %v4667_v10 = vld [vmem:[%s6891_s1] ss:$0 sm:$0xff] }
0x1df5   : > { %v2925_v6 = vpack.c.bf16 %v2924_v3, %v2924_v3 }
0x1df7   : > { %v3142_v25 = vpop.xlane.xlu0 %3141 }
0x1dfb   : > { %v2927_v4 = vpop.permute.xlu0 %2926 }
0x1dfc   : > { %v2932_v5 = vsel %vm936_vm11, %v2927_v4, 0 }
0x1dfd   : > { %5137 = vmatpush3.bf16.msra.mxu1 %v2932_v5 }
0x1dfe   : > { %5148 = vmatprep.subr.bf16.mxu1 %v5580_v1 }
0x1e00   : > { %5139 = vmatmul.mubr.msk.bf16.vlgmr.msra.gmra.mrb[56].mxu1 %vm872_vm10, %v2925_v6 }
0x1e01   : > { %5150 = vmatprep.mubr.msk.bf16.mxu1 %vm5581_vm0, %v5580_v1 }
0x1e14   : > { %v3032_v7 = vpop.xlane.xlu1 %3031 }
0x1e15   : > { %5482 = vrcp.f32 %v3032_v7 }
0x1e16   : > { %5484 = vrcp.f32 %v3142_v25  ;;  %v4671_v25 = vld [vmem:[%s6892_s24] ss:$0 sm:$0xff] }
0x1e18   : > { %v3037_v8 = vpop.permute.xlu1 %3036 }
0x1e19   : > { %v3042_v11 = vsel %vm936_vm11, %v3037_v8, 0  ;;  %v5399_v8 = vld [vmem:[%s6765_s15 + $0x8] sm:$0xff]  }
0x1e1a   : > { %5149 = vmatpush3.bf16.msra.mxu1 %v3042_v11  ;;  %v5400_v11 = vld [vmem:[%s6765_s15 + $0x10] sm:$0xff]  }
0x1e1b   : > { %5160 = vmatprep.subr.bf16.mxu1 %v5580_v1 }
0x1e1c   : > { %v3147_v26 = vpop.permute.xlu1 %3146 }
0x1e1d   : > { %v3152_v28 = vsel %vm936_vm11, %v3147_v26, 0  ;;  %v5403_v26 = vld [vmem:[%s6765_s15 + $0x28] sm:$0xff]  }
0x1e1f   : > { %v5483_v14 = vpop.eup %5482 }
0x1e20   : > { %v3034_v17 = vmul.f32 %v5483_v14, %v5477_v23  ;;  %v5485_v15 = vpop.eup %5484  ;;  %v5401_v14 = vld [vmem:[%s6765_s15 + $0x18] sm:$0xff]  }
0x1e21   : > { %v3144_v9 = vmul.f32 %v5485_v15, %v5475_v21  ;;  %v5405_v15 = vld [vmem:[%s6765_s15 + $0x38] sm:$0xff]  }
0x1e22   : > { %v3035_v27 = vpack.c.bf16 %v3034_v17, %v3034_v17  ;;  %v5402_v17 = vld [vmem:[%s6765_s15 + $0x20] sm:$0xff]  }
0x1e23   : > { %v3145_v29 = vpack.c.bf16 %v3144_v9, %v3144_v9 }
0x1e24   : > { %5151 = vmatmul.mubr.msk.bf16.vlgmr.msra.gmra.mrb[60].mxu1 %vm872_vm10, %v3035_v27  ;;  %v5404_v27 = vld [vmem:[%s6765_s15 + $0x30] sm:$0xff]  }
0x1e25   : > { %5161 = vmatpush3.bf16.msra.mxu1 %v3152_v28  ;;  %5162 = vmatprep.mubr.msk.bf16.mxu1 %vm5581_vm0, %v5580_v1  ;;  %v4673_v28 = vld [vmem:[%s6764_s14] ss:$0 sm:$0xff] }
0x1e26   : > { %5174 = vmatprep.subr.bf16.mxu1 %v5580_v1 }
0x1e2c   : > { %5163 = vmatmul.mubr.msk.bf16.vlgmr.msra.gmra.mrb[64].mxu1 %vm872_vm10, %v3145_v29 }
0x1e2d   : > { %5178 = vmatprep.mubr.msk.bf16.mxu1 %vm5581_vm0, %v5580_v1  ;;  %5175 = vmatpush3.bf16.msra.mxu1 %v5396_v24  ;;  %v4692_v24 = vld [vmem:[%s6758_s8 + $0x1] ss:$0 sm:$0xff] }
0x1e2e   : > { %5176 = vmatprep.subr.bf16.mxu1 %v5580_v1 }
0x1ec2   : > { %v2858_v31 = vpop.f32.mrb[52].mxu1 }
0x1ec3   : > { %v5128_v47 = vpop.f32.mrb[53].mxu1 }
0x1ec4   : > { %v2861_v32 = vpop.f32.mrb[54].mxu1 }
0x1ec5   : > { %v5129_v33 = vpop.f32.mrb[55].mxu1 }
0x1ed3   : > { %v2968_v34 = vpop.f32.mrb[56].mxu1 }
0x1ed4   : > { %3195 = vrot.lane.b32.xlu0 %v2968_v34, %s6874_s3  ;;  %v5140_v35 = vpop.f32.mrb[57].mxu1 }
0x1ed5   : > { %v2971_v36 = vpop.f32.mrb[58].mxu1 }
0x1ed6   : > { %v5141_v37 = vpop.f32.mrb[59].mxu1 }
0x1ef7   : > { %v3078_v40 = vpop.f32.mrb[60].mxu1 }
0x1ef8   : > { %3199 = vrot.lane.b32.xlu1 %v3078_v40, %s6889_s25  ;;  %v5152_v41 = vpop.f32.mrb[61].mxu1 }
0x1ef9   : > { %v3081_v43 = vpop.f32.mrb[62].mxu1 }
0x1efa   : > { %v5153_v44 = vpop.f32.mrb[63].mxu1 }
0x1efb   : > { %v4677_v44 = vld [vmem:[%s6766_s16] ss:$0 sm:$0xff] }
0x1eff   : > { %v3188_v45 = vpop.f32.mrb[64].mxu1 }
0x1f00   : > { %3203 = vrot.lane.b32.xlu0 %v3188_v45, %s6890_s28  ;;  %v5164_v48 = vpop.f32.mrb[65].mxu1 }
0x1f01   : > { %v3191_v49 = vpop.f32.mrb[66].mxu1 }
0x1f02   : > { %v5165_v50 = vpop.f32.mrb[67].mxu1 }
0x1f46   : > { %v3196_v51 = vpop.permute.xlu0 %3195 }
0x1f47   : > { %v3206_v12 = vsel %vm872_vm10, %v2858_v31, %v3196_v51 }
0x1f6a   : > { %v3200_v30 = vpop.permute.xlu1 %3199 }
0x1f6b   : > { %v3207_v52 = vsel %vm727_vm8, %v3206_v12, %v3200_v30 }
0x1f72   : > { %v3204_v53 = vpop.permute.xlu0 %3203 }
0x1f73   : > { %v3208_v54 = vsel %vm1324_vm12, %v3207_v52, %v3204_v53 }
0x1f74   : > { %v3209_v55 = vpack.c.bf16 %v3208_v54, %v3208_v54 }
0x1f76   : > { %5171 = vmatmul.mubr.msk.bf16.vlgmr.msra.gmra.mrb[76].mxu0 %vm774_vm9, %v3209_v55 }
0x1f77   : > { %5198 = vmatprep.mubr.msk.bf16.mxu0 %vm5581_vm0, %v5580_v1  ;;  %5183 = vmatpush3.bf16.msra.mxu0 %v5398_v62 }
0x1f78   : > { %5184 = vmatprep.subr.bf16.mxu0 %v5580_v1 }
0x1f7b   : > { %5185 = vmatpush3.bf16.msra.mxu0 %v5399_v8 }
0x1f7c   : > { %5186 = vmatprep.subr.bf16.mxu0 %v5580_v1 }
0x1f7f   : > { %5187 = vmatpush3.bf16.msra.mxu0 %v5400_v11 }
0x1f80   : > { %5188 = vmatprep.subr.bf16.mxu0 %v5580_v1 }
0x1f83   : > { %5189 = vmatpush3.bf16.msra.mxu0 %v5401_v14 }
0x1f84   : > { %5190 = vmatprep.subr.bf16.mxu0 %v5580_v1 }
0x1f87   : > { %5191 = vmatpush3.bf16.msra.mxu0 %v5402_v17 }
0x1f88   : > { %5192 = vmatprep.subr.bf16.mxu0 %v5580_v1 }
0x1f8b   : > { %5193 = vmatpush3.bf16.msra.mxu0 %v5403_v26 }
0x1f8c   : > { %5194 = vmatprep.subr.bf16.mxu0 %v5580_v1 }
0x1f8f   : > { %5195 = vmatpush3.bf16.msra.mxu0 %v5404_v27 }
0x1f90   : > { %5196 = vmatprep.subr.bf16.mxu0 %v5580_v1 }
0x1f93   : > { %5197 = vmatpush3.bf16.msra.mxu0 %v5405_v15 }
0x1f94   : > { %5228 = vmatprep.subr.bf16.mxu0 %v5580_v1 }
0x2049   : > { %v3264_v56 = vpop.f32.mrb[76].mxu0 }
0x204a   : > { %v3265_v57 = vadd.f32 %v4667_v10, %v3264_v56  ;;  %v5172_v18 = vpop.f32.mrb[77].mxu0  ;;  %v5406_v56 = vld [vmem:[%s6757_s7 + $0x10] sm:$0xff]  }
0x204b   : > { %v3267_v20 = vpop.f32.mrb[78].mxu0 }
0x204c   : > { %v6405_v21 = vadd.f32 %v3265_v57, %v6274_v46  ;;  %v5173_v58 = vpop.f32.mrb[79].mxu0  ;;  %v5397_v46 = vld [vmem:[%s6860_s13 + $0x8] sm:$0xff]   ;;  %s6893_s13 = sld [smem:[#allocation23_spill]]  ;;  %v5407_v57 = vld [vmem:[%s6757_s7 + $0x18] sm:$0xff]  }
0x204d   : > { %5177 = vmatpush3.bf16.msra.mxu1 %v5397_v46 }
0x204e   : > { %v3273_v22 = vsel %vm774_vm9, %v6405_v21, 0.0  ;;  %5202 = vmatprep.subr.bf16.mxu1 %v5580_v1 }
0x204f   : > { %3274 = vadd.xlane.f32.xlu1 %v3273_v22  ;;  %v4686_v22 = vld [vmem:[%s6857_s22 + $0x1] ss:$0 sm:$0xff] }
0x2052   : > { %v4672_v4 = vld [vmem:[%s6893_s13] ss:$0 sm:$0xff]  ;;  %s6897_s13 = sld [smem:[#allocation27_spill]] }
0x20dc   : > { %v3275_v59 = vpop.xlane.xlu1 %3274 }
0x20dd   : > { %v3276_v23 = vmul.f32 0.03125, %v3275_v59 }
0x20df   : > { %v3277_v60 = vsub.f32 %v6405_v21, %v3276_v23  ;;  %v4687_v23 = vld [vmem:[%s6756_s6 + $0x1] ss:$0 sm:$0xff] }
0x20e1   : > { %v3278_v61 = vmul.f32 %v3277_v60, %v3277_v60 }
0x20e3   : > { %v3279_v19 = vsel %vm774_vm9, %v3278_v61, 0.0 }
0x20e4   : > { %3280 = vadd.xlane.f32.xlu0 %v3279_v19 }
0x2171   : > { %v3281_v63 = vpop.xlane.xlu0 %3280 }
0x2172   : > { %v3282_v0 = vmul.f32 0.03125, %v3281_v63 }
0x2174   : > { %v3283_v2 = vadd.f32 1e-05, %v3282_v0 }
0x2176   : > { %5486 = vrsqrt.f32 %v3283_v2 }
0x2180   : > { %v5487_v42 = vpop.eup %5486 }
0x2181   : > { %v3285_v3 = vmul.f32 %v5487_v42, %v3277_v60 }
0x2183   : > { %v3290_v5 = vmul.f32 %v4671_v25, %v3285_v3 }
0x2185   : > { %v3295_v6 = vadd.f32 %v4672_v4, %v3290_v5 }
0x2187   : > { %v3300_v7 = vpack.c.bf16 %v3295_v6, %v3295_v6 }
0x2189   : > { %5179 = vmatmul.mubr.msk.bf16.vlgmr.msra.gmra.mrb[68].mxu1 %vm774_vm9, %v3300_v7 }
0x218a   : > { %5206 = vmatprep.mubr.msk.bf16.mxu1 %vm5581_vm0, %v5580_v1  ;;  %5203 = vmatpush3.bf16.msra.mxu1 %v5406_v56 }
0x218b   : > { %5204 = vmatprep.subr.bf16.mxu1 %v5580_v1 }
0x218e   : > { %5205 = vmatpush3.bf16.msra.mxu1 %v5407_v57 }
0x218f   : > { %5210 = vmatprep.subr.bf16.mxu1 %v5580_v1 }
0x225c   : > { %v3355_v9 = vpop.f32.mrb[68].mxu1 }
0x225d   : > { %v3356_v29 = vadd.f32 %v4673_v28, %v3355_v9  ;;  %v5180_v31 = vpop.f32.mrb[69].mxu1 }
0x225e   : > { %v3358_v47 = vpop.f32.mrb[70].mxu1 }
0x225f   : > { %v3362_v32 = vmul.f32 0.044715, %v3356_v29  ;;  %v5181_v33 = vpop.f32.mrb[71].mxu1  ;;  %v3361_v39 = vmul.f32 0.5, %v3356_v29 }
0x2261   : > { %v3363_v34 = vmul.f32 %v3362_v32, %v3356_v29 }
0x2263   : > { %v3364_v35 = vmul.f32 %v3363_v34, %v3356_v29 }
0x2265   : > { %v3365_v36 = vadd.f32 %v3364_v35, %v3356_v29 }
0x2267   : > { %v3366_v37 = vmul.f32 0.7978846, %v3365_v36 }
0x2269   : > { %5488 = vtanh.f32 %v3366_v37 }
0x2273   : > { %v5489_v38 = vpop.eup %5488 }
0x2274   : > { %v3368_v40 = vadd.f32 1.0, %v5489_v38 }
0x2276   : > { %v3369_v41 = vmul.f32 %v3368_v40, %v3361_v39 }
0x2278   : > { %v3386_v43 = vpack.c.bf16 %v3369_v41, %v3369_v41 }
0x227a   : > { %5199 = vmatmul.mubr.bf16.vlgmr.msra.gmra.mrb[80].mxu0 %v3386_v43 }
0x227b   : > { %5230 = vmatprep.mubr.msk.bf16.mxu0 %vm5581_vm0, %v5580_v1 }
0x234d   : > { %v3474_v45 = vpop.f32.mrb[80].mxu0 }
0x234e   : > { %v3475_v48 = vadd.f32 %v4677_v44, %v3474_v45  ;;  %v5200_v49 = vpop.f32.mrb[81].mxu0 }
0x234f   : > { %v3477_v50 = vpop.f32.mrb[82].mxu0 }
0x2350   : > { %v6469_v51 = vadd.f32 %v3475_v48, %v6405_v21  ;;  %v5201_v30 = vpop.f32.mrb[83].mxu0 }
0x2352   : > { %v3483_v12 = vsel %vm774_vm9, %v6469_v51, 0.0 }
0x2353   : > { %3484 = vadd.xlane.f32.xlu0 %v3483_v12 }
0x23e0   : > { %v3485_v52 = vpop.xlane.xlu0 %3484 }
0x23e1   : > { %v3486_v53 = vmul.f32 0.03125, %v3485_v52 }
0x23e3   : > { %v3487_v54 = vsub.f32 %v6469_v51, %v3486_v53 }
0x23e5   : > { %v3488_v55 = vmul.f32 %v3487_v54, %v3487_v54 }
0x23e7   : > { %v3489_v10 = vsel %vm774_vm9, %v3488_v55, 0.0 }
0x23e8   : > { %3490 = vadd.xlane.f32.xlu1 %v3489_v10 }
0x2475   : > { %v3491_v18 = vpop.xlane.xlu1 %3490 }
0x2476   : > { %v3492_v20 = vmul.f32 0.03125, %v3491_v18 }
0x2478   : > { %v3493_v21 = vadd.f32 1e-05, %v3492_v20 }
0x247a   : > { %5490 = vrsqrt.f32 %v3493_v21 }
0x2484   : > { %v5491_v58 = vpop.eup %5490 }
0x2485   : > { %v3495_v59 = vmul.f32 %v5491_v58, %v3487_v54 }
0x2487   : > { %v3500_v60 = vmul.f32 %v4686_v22, %v3495_v59 }
0x2489   : > { %v3505_v61 = vadd.f32 %v4687_v23, %v3500_v60 }
0x248b   : > { %v3510_v19 = vpack.c.bf16 %v3505_v61, %v3505_v61 }
0x248d   : > { %5207 = vmatmul.mubr.msk.bf16.vlgmr.msra.gmra.mrb[72].mxu1 %vm774_vm9, %v3510_v19 }
0x248e   : > { %5212 = vmatprep.mubr.msk.bf16.mxu1 %vm5581_vm0, %v5580_v1 }
0x2560   : > { %v3565_v46 = vpop.f32.mrb[72].mxu1 }
0x2561   : > { %v3566_v62 = vadd.f32 %v4692_v24, %v3565_v46  ;;  %v5208_v63 = vpop.f32.mrb[73].mxu1 }
0x2562   : > { %v3568_v0 = vpop.f32.mrb[74].mxu1 }
0x2563   : > { %v6495_v2 = vpack.c.bf16 %v3566_v62, %v3566_v62  ;;  %v5209_v42 = vpop.f32.mrb[75].mxu1 }
0x2565   : > { %3577 = vrot.lane.b32.xlu0 %v6495_v2, %s6863_s29 }
0x2569   : > { %3687 = vrot.lane.b32.xlu0 %v6495_v2, %s6864_s21  ;;  %s6899_s21 = sld [smem:[#allocation26_spill]] }
0x256d   : > { %3685 = vrot.lane.b32.xlu0 %v6495_v2, %s6865_s27 }
0x2571   : > { %3795 = vrot.lane.b32.xlu0 %v6495_v2, %s6866_s30 }
0x2575   : > { %3905 = vrot.lane.b32.xlu0 %v6495_v2, %s6883_s11 }
0x25d7   : > { %v3578_v25 = vpop.permute.xlu0 %3577 }
0x25d8   : > { %v3583_v3 = vsel %vm872_vm10, %v3578_v25, 0 }
0x25d9   : > { %5211 = vmatpush3.bf16.xpose.msra.mxu1 %v3583_v3 }
0x25da   : > { %5216 = vmatprep.subr.bf16.mxu1 %v5580_v1 }
0x25db   : > { %v3688_v32 = vpop.permute.xlu0 %3687 }
0x25dc   : > { %v3693_v34 = vsel %vm872_vm10, %v3688_v32, 0 }
0x25df   : > { %v3686_v36 = vpop.permute.xlu0 %3685 }
0x25e0   : > { %5213 = vmatmul.mubr.msk.bf16.vlgmr.msra.gmra.mrb[76].mxu1 %vm872_vm10, %v6495_v2 }
0x25e1   : > { %5218 = vmatprep.mubr.msk.bf16.mxu1 %vm5581_vm0, %v5580_v1 }
0x25e3   : > { %v3796_v39 = vpop.permute.xlu0 %3795 }
0x25e7   : > { %v3906_v41 = vpop.permute.xlu0 %3905 }
0x26b3   : > { %v3619_v4 = vpop.f32.mrb[76].mxu1 }
0x26b4   : > { %v3620_v5 = vadd.f32 %v6342_v16, %v3619_v4  ;;  %v5214_v6 = vpop.f32.mrb[77].mxu1 }
0x26b5   : > { %v3622_v7 = vpop.f32.mrb[78].mxu1 }
0x26b6   : > { %v5215_v8 = vpop.f32.mrb[79].mxu1  ;;  %v3625_v11 = vsel %vm872_vm10, %v3620_v5, -inf }
0x26b7   : > { %3626 = vmax.xlane.f32.xlu1 %v3625_v11 }
0x2744   : > { %v3627_v14 = vpop.xlane.xlu1 %3626 }
0x2745   : > { %v3628_v17 = vsub.f32 %v3620_v5, %v3627_v14 }
0x2747   : > { %v3629_v26 = vmul.f32 1.442695, %v3628_v17 }
0x2749   : > { %5492 = vpow2.f32 %v3629_v26 }
0x2753   : > { %v5493_v27 = vpop.eup %5492 }
0x2754   : > { %v3631_v15 = vsel %vm872_vm10, %v5493_v27, 0.0 }
0x2755   : > { %3632 = vadd.xlane.f32.xlu1 %v3631_v15 }
0x2766   : > { %3637 = vrot.lane.b32.xlu1 %v6495_v2, %s6885_s5 }
0x276a   : > { %3797 = vrot.lane.b32.xlu1 %v6495_v2, %s6869_s23  ;;  %s6902_s23 = sld [smem:[#allocation9_spill]] }
0x276e   : > { %3907 = vrot.lane.b32.xlu1 %v6495_v2, %s6882_s10  ;;  %s6894_s10 = sld [smem:[#allocation24_spill]] }
0x27e2   : > { %v3633_v28 = vpop.xlane.xlu1 %3632 }
0x27e3   : > { %5494 = vrcp.f32 %v3633_v28 }
0x27e6   : > { %v3638_v9 = vpop.permute.xlu1 %3637 }
0x27e7   : > { %v3643_v29 = vsel %vm936_vm11, %v3638_v9, 0 }
0x27e8   : > { %5217 = vmatpush3.bf16.msra.mxu1 %v3643_v29 }
0x27e9   : > { %5222 = vmatprep.subr.bf16.mxu1 %v5580_v1 }
0x27ea   : > { %v3798_v35 = vpop.permute.xlu1 %3797 }
0x27eb   : > { %v3803_v37 = vsel %vm872_vm10, %v3798_v35, 0 }
0x27ed   : > { %v5495_v31 = vpop.eup %5494 }
0x27ee   : > { %v3635_v47 = vmul.f32 %v5495_v31, %v5493_v27  ;;  %v3908_v38 = vpop.permute.xlu1 %3907 }
0x27ef   : > { %v3913_v40 = vsel %vm872_vm10, %v3908_v38, 0 }
0x27f0   : > { %v3636_v33 = vpack.c.bf16 %v3635_v47, %v3635_v47 }
0x27f2   : > { %5219 = vmatmul.mubr.msk.bf16.vlgmr.msra.gmra.mrb[80].mxu1 %vm872_vm10, %v3636_v33 }
0x27f3   : > { %5223 = vmatpush3.bf16.xpose.msra.mxu1 %v3693_v34  ;;  %5224 = vmatprep.mubr.msk.bf16.mxu1 %vm5581_vm0, %v5580_v1 }
0x27f4   : > { %5234 = vmatprep.subr.bf16.mxu1 %v5580_v1 }
0x27fa   : > { %5225 = vmatmul.mubr.msk.bf16.vlgmr.msra.gmra.mrb[84].mxu1 %vm872_vm10, %v3686_v36  ;;  %v5408_v36 = vld [vmem:[%s6759_s9 + $0x10] sm:$0xff]  }
0x27fb   : > { %5235 = vmatpush3.bf16.xpose.msra.mxu1 %v3803_v37  ;;  %5236 = vmatprep.mubr.msk.bf16.mxu1 %vm5581_vm0, %v5580_v1 }
0x27fc   : > { %5246 = vmatprep.subr.bf16.mxu1 %v5580_v1 }
0x2802   : > { %5237 = vmatmul.mubr.msk.bf16.vlgmr.msra.gmra.mrb[88].mxu1 %vm872_vm10, %v3796_v39 }
0x2803   : > { %5247 = vmatpush3.bf16.xpose.msra.mxu1 %v3913_v40  ;;  %5248 = vmatprep.mubr.msk.bf16.mxu1 %vm5581_vm0, %v5580_v1 }
0x2804   : > { %5258 = vmatprep.subr.bf16.mxu1 %v5580_v1 }
0x280a   : > { %5249 = vmatmul.mubr.msk.bf16.vlgmr.msra.gmra.mrb[92].mxu1 %vm872_vm10, %v3906_v41 }
0x280b   : > { %5262 = vmatprep.mubr.msk.bf16.mxu1 %vm5581_vm0, %v5580_v1  ;;  %5259 = vmatpush3.bf16.msra.mxu1 %v5408_v36 }
0x280c   : > { %5260 = vmatprep.subr.bf16.mxu1 %v5580_v1 }
0x28c5   : > { %v6542_v43 = vpop.f32.mrb[80].mxu1 }
0x28c6   : > { %v5220_v44 = vpop.f32.mrb[81].mxu1 }
0x28c7   : > { %v3682_v45 = vpop.f32.mrb[82].mxu1 }
0x28c8   : > { %v5221_v48 = vpop.f32.mrb[83].mxu1 }
0x28cd   : > { %v3729_v49 = vpop.f32.mrb[84].mxu1 }
0x28ce   : > { %v3730_v50 = vadd.f32 %v6342_v16, %v3729_v49  ;;  %v5226_v30 = vpop.f32.mrb[85].mxu1  ;;  %v5409_v49 = vld [vmem:[%s6759_s9 + $0x18] sm:$0xff]  }
0x28cf   : > { %v3732_v12 = vpop.f32.mrb[86].mxu1  ;;  %5261 = vmatpush3.bf16.msra.mxu1 %v5409_v49 }
0x28d0   : > { %v5227_v52 = vpop.f32.mrb[87].mxu1  ;;  %v3735_v53 = vsel %vm872_vm10, %v3730_v50, -inf  ;;  %5274 = vmatprep.subr.bf16.mxu1 %v5580_v1 }
0x28d1   : > { %3736 = vmax.xlane.f32.xlu1 %v3735_v53 }
0x28d5   : > { %v3839_v54 = vpop.f32.mrb[88].mxu1 }
0x28d6   : > { %v3840_v55 = vadd.f32 %v6342_v16, %v3839_v54  ;;  %v5238_v10 = vpop.f32.mrb[89].mxu1 }
0x28d7   : > { %v3842_v56 = vpop.f32.mrb[90].mxu1 }
0x28d8   : > { %v5239_v57 = vpop.f32.mrb[91].mxu1  ;;  %v3845_v18 = vsel %vm872_vm10, %v3840_v55, -inf }
0x28d9   : > { %3846 = vmax.xlane.f32.xlu0 %v3845_v18 }
0x28dd   : > { %v3949_v20 = vpop.f32.mrb[92].mxu1 }
0x28de   : > { %v3950_v21 = vadd.f32 %v6342_v16, %v3949_v20  ;;  %v5250_v58 = vpop.f32.mrb[93].mxu1  ;;  %v4708_v20 = vld [vmem:[%s6891_s1 + $0x1] ss:$0 sm:$0xff] }
0x28df   : > { %v3952_v22 = vpop.f32.mrb[94].mxu1 }
0x28e0   : > { %v5251_v59 = vpop.f32.mrb[95].mxu1  ;;  %v3955_v23 = vsel %vm872_vm10, %v3950_v21, -inf }
0x28e1   : > { %3956 = vmax.xlane.f32.xlu0 %v3955_v23 }
0x295e   : > { %v3737_v60 = vpop.xlane.xlu1 %3736 }
0x295f   : > { %v3738_v61 = vsub.f32 %v3730_v50, %v3737_v60 }
0x2961   : > { %v3739_v19 = vmul.f32 1.442695, %v3738_v61 }
0x2963   : > { %5496 = vpow2.f32 %v3739_v19 }
0x2966   : > { %v3847_v24 = vpop.xlane.xlu0 %3846 }
0x2967   : > { %v3848_v46 = vsub.f32 %v3840_v55, %v3847_v24 }
0x2969   : > { %v3849_v62 = vmul.f32 1.442695, %v3848_v46 }
0x296b   : > { %5498 = vpow2.f32 %v3849_v62 }
0x296d   : > { %v5497_v63 = vpop.eup %5496 }
0x296e   : > { %v3741_v0 = vsel %vm872_vm10, %v5497_v63, 0.0  ;;  %v3957_v25 = vpop.xlane.xlu0 %3956 }
0x296f   : > { %3742 = vadd.xlane.f32.xlu1 %v3741_v0  ;;  %v3958_v3 = vsub.f32 %v3950_v21, %v3957_v25  ;;  %v5412_v0 = vld [vmem:[%s6765_s15 + $0x40] sm:$0xff]  }
0x2971   : > { %v3959_v4 = vmul.f32 1.442695, %v3958_v3 }
0x2973   : > { %5500 = vpow2.f32 %v3959_v4  ;;  %v4712_v4 = vld [vmem:[%s6895_s19 + $0x1] ss:$0 sm:$0xff] }
0x2975   : > { %v5499_v42 = vpop.eup %5498 }
0x2976   : > { %v3851_v16 = vsel %vm872_vm10, %v5499_v42, 0.0 }
0x2977   : > { %3852 = vadd.xlane.f32.xlu0 %v3851_v16 }
0x297d   : > { %v5501_v5 = vpop.eup %5500 }
0x297e   : > { %v3961_v6 = vsel %vm872_vm10, %v5501_v5, 0.0 }
0x2980   : > { %3857 = vrot.lane.b32.xlu1 %v6495_v2, %s6887_s26 }
0x298d   : > { %3747 = vrot.lane.b32.xlu0 %v6495_v2, %s6886_s12 }
0x29a4   : > { %3962 = vadd.xlane.f32.xlu1 %v3961_v6  ;;  %v4713_v6 = vld [vmem:[%s6896_s0 + $0x1] ss:$0 sm:$0xff]  ;;  %s5597_s0 = smov [#allocation2]  }
0x29a5   : > { %s5520_s17 = sshll.u32 %s5597_s0, 4  ;;  %s5521_s17 = int_to_ptr.vmem [resolvable:$false] %s5520_s17 }
0x29a6   : > { %s5522_s18 = scalar_lea.vmem %s5521_s17, 512 }
0x29b5   : > { %3967 = vrot.lane.b32.xlu1 %v6495_v2, %s6888_s4  ;;  %s6905_s4 = sld [smem:[#allocation29_spill]] }
0x29fc   : > { %v3743_v7 = vpop.xlane.xlu1 %3742 }
0x29fd   : > { %5502 = vrcp.f32 %v3743_v7 }
0x2a00   : > { %v3858_v27 = vpop.permute.xlu1 %3857 }
0x2a01   : > { %v3863_v28 = vsel %vm936_vm11, %v3858_v27, 0  ;;  %v5416_v27 = vld [vmem:[%s6765_s15 + $0x60] sm:$0xff]  }
0x2a04   : > { %v3853_v8 = vpop.xlane.xlu0 %3852 }
0x2a05   : > { %5504 = vrcp.f32 %v3853_v8 }
0x2a07   : > { %v5503_v11 = vpop.eup %5502 }
0x2a08   : > { %v3745_v14 = vmul.f32 %v5503_v11, %v5497_v63  ;;  %v3748_v17 = vpop.permute.xlu0 %3747  ;;  %v5410_v63 = vld [vmem:[%s6894_s10 + $0x10] sm:$0xff]  }
0x2a09   : > { %v3753_v26 = vsel %vm936_vm11, %v3748_v17, 0  ;;  %v5414_v17 = vld [vmem:[%s6765_s15 + $0x50] sm:$0xff]  }
0x2a0a   : > { %5229 = vmatpush3.bf16.msra.mxu0 %v3753_v26  ;;  %v3746_v15 = vpack.c.bf16 %v3745_v14, %v3745_v14  ;;  %v5413_v14 = vld [vmem:[%s6765_s15 + $0x48] sm:$0xff]   ;;  %v5415_v26 = vld [vmem:[%s6765_s15 + $0x58] sm:$0xff]  }
0x2a0b   : > { %5240 = vmatprep.subr.bf16.mxu0 %v5580_v1 }
0x2a0d   : > { %5231 = vmatmul.mubr.msk.bf16.vlgmr.msra.gmra.mrb[84].mxu0 %vm872_vm10, %v3746_v15  ;;  %v5417_v15 = vld [vmem:[%s6765_s15 + $0x68] sm:$0xff]  }
0x2a0e   : > { %5241 = vmatpush3.bf16.msra.mxu0 %v3863_v28  ;;  %5242 = vmatprep.mubr.msk.bf16.mxu0 %vm5581_vm0, %v5580_v1  ;;  %v5418_v28 = vld [vmem:[%s6765_s15 + $0x70] sm:$0xff]  }
0x2a0f   : > { %v5505_v2 = vpop.eup %5504  ;;  %5252 = vmatprep.subr.bf16.mxu0 %v5580_v1 }
0x2a10   : > { %v3855_v9 = vmul.f32 %v5505_v2, %v5499_v42  ;;  %v5419_v2 = vld [vmem:[%s6765_s15 + $0x78] sm:$0xff]  }
0x2a12   : > { %v3856_v29 = vpack.c.bf16 %v3855_v9, %v3855_v9  ;;  %v4718_v9 = vld [vmem:[%s6764_s14 + $0x1] ss:$0 sm:$0xff] }
0x2a15   : > { %5243 = vmatmul.mubr.msk.bf16.vlgmr.msra.gmra.mrb[88].mxu0 %vm872_vm10, %v3856_v29 }
0x2a16   : > { %5254 = vmatprep.mubr.msk.bf16.mxu0 %vm5581_vm0, %v5580_v1 }
0x2a31   : > { %v3963_v31 = vpop.xlane.xlu1 %3962 }
0x2a32   : > { %5506 = vrcp.f32 %v3963_v31 }
0x2a35   : > { %v3968_v47 = vpop.permute.xlu1 %3967 }
0x2a36   : > { %v3973_v32 = vsel %vm936_vm11, %v3968_v47, 0 }
0x2a37   : > { %5253 = vmatpush3.bf16.msra.mxu0 %v3973_v32 }
0x2a38   : > { %5266 = vmatprep.subr.bf16.mxu0 %v5580_v1 }
0x2a3c   : > { %v5507_v33 = vpop.eup %5506 }
0x2a3d   : > { %v3965_v34 = vmul.f32 %v5507_v33, %v5501_v5 }
0x2a3f   : > { %v3966_v35 = vpack.c.bf16 %v3965_v34, %v3965_v34 }
0x2a41   : > { %5255 = vmatmul.mubr.msk.bf16.vlgmr.msra.gmra.mrb[92].mxu0 %vm872_vm10, %v3966_v35 }
0x2a42   : > { %5270 = vmatprep.mubr.msk.bf16.mxu0 %vm5581_vm0, %v5580_v1  ;;  %5267 = vmatpush3.bf16.msra.mxu0 %v5410_v63 }
0x2a43   : > { %5268 = vmatprep.subr.bf16.mxu0 %v5580_v1 }
0x2ae0   : > { %v3789_v37 = vpop.f32.mrb[84].mxu0 }
0x2ae1   : > { %4016 = vrot.lane.b32.xlu0 %v3789_v37, %s6874_s3  ;;  %v5232_v38 = vpop.f32.mrb[85].mxu0  ;;  %s6901_s3 = sld [smem:[#allocation14_spill]] }
0x2ae2   : > { %v3792_v39 = vpop.f32.mrb[86].mxu0 }
0x2ae3   : > { %v5233_v40 = vpop.f32.mrb[87].mxu0 }
0x2ae7   : > { %s4478_s11 = sshll.u32 %s6901_s3, 4  ;;  %s6697_s11 = int_to_ptr.vmem [resolvable:$true] %s4478_s11 }
0x2ae8   : > { %v3899_v41 = vpop.f32.mrb[88].mxu0  ;;  %s5516_s24 = scalar_lea.vmem %s6697_s11, 256  ;;  %p5523_p0 = scmp.lt.s32.totalorder %s6697_s11, %s5521_s17 }
0x2ae9   : > { %4020 = vrot.lane.b32.xlu1 %v3899_v41, %s6889_s25  ;;  %v5244_v44 = vpop.f32.mrb[89].mxu0  ;;  %s6900_s25 = sld [smem:[#allocation28_spill]]  ;;  %p5517_p11 = scmp.ne.s32.totalorder %s6697_s11, %s5516_s24 }
0x2aea   : > { %v3902_v45 = vpop.f32.mrb[90].mxu0  ;;  %p5524_p1 = scmp.lt.s32.totalorder %s5522_s18, %s5516_s24 }
0x2aeb   : > { %v5245_v48 = vpop.f32.mrb[91].mxu0  ;;  %p5518_p12 = pnand %p5517_p11, %p5748_p5 }
0x2aec   : > { %v4738_v48 = vld [vmem:[%s6766_s16 + $0x1] ss:$0 sm:$0xff]  ;;  %p5525_p2 = por %p5524_p1, %p5523_p0 }
0x2aed   : > { %p5519_p13 = pneg %p5518_p12 }
0x2aef   : > { %p5526_p3 = pnand %p5525_p2, %p5519_p13 }
0x2b14   : > { %v4009_v50 = vpop.f32.mrb[92].mxu0 }
0x2b15   : > { %4024 = vrot.lane.b32.xlu0 %v4009_v50, %s6890_s28  ;;  %v5256_v30 = vpop.f32.mrb[93].mxu0  ;;  %s6903_s28 = sld [smem:[#allocation6_spill]] }
0x2b16   : > { %v4012_v12 = vpop.f32.mrb[94].mxu0 }
0x2b17   : > { %v5257_v52 = vpop.f32.mrb[95].mxu0 }
0x2b1b   : > { %s6906_s19 = sand.u32 1, %s6903_s28  }
0x2b53   : > { %v4017_v53 = vpop.permute.xlu0 %4016 }
0x2b54   : > { %v4027_v55 = vsel %vm872_vm10, %v6542_v43, %v4017_v53 }
0x2b5b   : > { %v4021_v54 = vpop.permute.xlu1 %4020 }
0x2b5c   : > { %v4028_v10 = vsel %vm727_vm8, %v4027_v55, %v4021_v54 }
0x2b87   : > { %v4025_v56 = vpop.permute.xlu0 %4024 }
0x2b88   : > { %v4029_v57 = vsel %vm1324_vm12, %v4028_v10, %v4025_v56 }
0x2b89   : > { %v4030_v18 = vpack.c.bf16 %v4029_v57, %v4029_v57 }
0x2b8b   : > { %5263 = vmatmul.mubr.msk.bf16.vlgmr.msra.gmra.mrb[96].mxu1 %vm774_vm9, %v4030_v18 }
0x2b8c   : > { %5290 = vmatprep.mubr.msk.bf16.mxu1 %vm5581_vm0, %v5580_v1  ;;  %5275 = vmatpush3.bf16.msra.mxu1 %v5412_v0 }
0x2b8d   : > { %5276 = vmatprep.subr.bf16.mxu1 %v5580_v1 }
0x2b90   : > { %5277 = vmatpush3.bf16.msra.mxu1 %v5413_v14 }
0x2b91   : > { %5278 = vmatprep.subr.bf16.mxu1 %v5580_v1 }
0x2b94   : > { %5279 = vmatpush3.bf16.msra.mxu1 %v5414_v17 }
0x2b95   : > { %5280 = vmatprep.subr.bf16.mxu1 %v5580_v1 }
0x2b98   : > { %5281 = vmatpush3.bf16.msra.mxu1 %v5415_v26 }
0x2b99   : > { %5282 = vmatprep.subr.bf16.mxu1 %v5580_v1 }
0x2b9c   : > { %5283 = vmatpush3.bf16.msra.mxu1 %v5416_v27 }
0x2b9d   : > { %5284 = vmatprep.subr.bf16.mxu1 %v5580_v1 }
0x2ba0   : > { %5285 = vmatpush3.bf16.msra.mxu1 %v5417_v15 }
0x2ba1   : > { %5286 = vmatprep.subr.bf16.mxu1 %v5580_v1 }
0x2ba4   : > { %5287 = vmatpush3.bf16.msra.mxu1 %v5418_v28 }
0x2ba5   : > { %5288 = vmatprep.subr.bf16.mxu1 %v5580_v1 }
0x2ba8   : > { %5289 = vmatpush3.bf16.msra.mxu1 %v5419_v2 }
0x2c5e   : > { %v4085_v21 = vpop.f32.mrb[96].mxu1 }
0x2c5f   : > { %v4086_v58 = vadd.f32 %v4708_v20, %v4085_v21  ;;  %v5264_v22 = vpop.f32.mrb[97].mxu1  ;;  %v5420_v20 = vld [vmem:[%s6897_s13] sm:$0xff]   ;;  %v5421_v21 = vld [vmem:[%s6897_s13 + $0x8] sm:$0xff]   ;;  %s6709_s13 = scalar_lea.sflag [#allocation3], %s6906_s19 }
0x2c60   : > { %v4088_v59 = vpop.f32.mrb[98].mxu1 }
0x2c61   : > { %v6596_v43 = vadd.f32 %v4086_v58, %v6469_v51  ;;  %v5265_v23 = vpop.f32.mrb[99].mxu1  ;;  %v5411_v51 = vld [vmem:[%s6894_s10 + $0x18] sm:$0xff]   ;;  %s4759_s10 = sshll.u32 %s6902_s23, 8 }
0x2c62   : > { %5269 = vmatpush3.bf16.msra.mxu0 %v5411_v51  ;;  %v4747_v23 = vld [vmem:[%s6898_s2] ss:$0 sm:$0xff]  ;;  %s6695_s1 = scalar_lea.hbm %s6905_s4, %s4759_s10 }
0x2c63   : > { %v4094_v60 = vsel %vm774_vm9, %v6596_v43, 0.0  ;;  %5294 = vmatprep.subr.bf16.mxu0 %v5580_v1 }
0x2c64   : > { %4095 = vadd.xlane.f32.xlu1 %v4094_v60 }
0x2cf1   : > { %v4096_v61 = vpop.xlane.xlu1 %4095 }
0x2cf2   : > { %v4097_v19 = vmul.f32 0.03125, %v4096_v61  ;;  %v4748_v61 = vld [vmem:[%s6899_s21] ss:$0 sm:$0xff] }
0x2cf4   : > { %v4098_v24 = vsub.f32 %v6596_v43, %v4097_v19 }
0x2cf6   : > { %v4099_v46 = vmul.f32 %v4098_v24, %v4098_v24 }
0x2cf8   : > { %v4100_v62 = vsel %vm774_vm9, %v4099_v46, 0.0 }
0x2cf9   : > { %4101 = vadd.xlane.f32.xlu0 %v4100_v62 }
0x2d86   : > { %v4102_v42 = vpop.xlane.xlu0 %4101 }
0x2d87   : > { %v4103_v16 = vmul.f32 0.03125, %v4102_v42 }
0x2d89   : > { %v4104_v25 = vadd.f32 1e-05, %v4103_v16 }
0x2d8b   : > { %5508 = vrsqrt.f32 %v4104_v25 }
0x2d95   : > { %v5509_v3 = vpop.eup %5508 }
0x2d96   : > { %v4106_v5 = vmul.f32 %v5509_v3, %v4098_v24 }
0x2d98   : > { %v4111_v7 = vmul.f32 %v4712_v4, %v4106_v5 }
0x2d9a   : > { %v4116_v8 = vadd.f32 %v4713_v6, %v4111_v7 }
0x2d9c   : > { %v4121_v11 = vpack.c.bf16 %v4116_v8, %v4116_v8 }
0x2d9e   : > { %5271 = vmatmul.mubr.msk.bf16.vlgmr.msra.gmra.mrb[96].mxu0 %vm774_vm9, %v4121_v11 }
0x2d9f   : > { %5298 = vmatprep.mubr.msk.bf16.mxu0 %vm5581_vm0, %v5580_v1  ;;  %5295 = vmatpush3.bf16.msra.mxu0 %v5420_v20 }
0x2da0   : > { %5296 = vmatprep.subr.bf16.mxu0 %v5580_v1  ;;  %v4749_v1 = vld [vmem:[%s6900_s25] ss:$0 sm:$0xff] }
0x2da3   : > { %5297 = vmatpush3.bf16.msra.mxu0 %v5421_v21 }
0x2e71   : > { %v4176_v29 = vpop.f32.mrb[96].mxu0 }
0x2e72   : > { %v4177_v31 = vadd.f32 %v4718_v9, %v4176_v29  ;;  %v5272_v47 = vpop.f32.mrb[97].mxu0 }
0x2e73   : > { %v4179_v32 = vpop.f32.mrb[98].mxu0 }
0x2e74   : > { %v4183_v33 = vmul.f32 0.044715, %v4177_v31  ;;  %v5273_v34 = vpop.f32.mrb[99].mxu0  ;;  %v4182_v40 = vmul.f32 0.5, %v4177_v31 }
0x2e76   : > { %v4184_v35 = vmul.f32 %v4183_v33, %v4177_v31 }
0x2e78   : > { %v4185_v36 = vmul.f32 %v4184_v35, %v4177_v31 }
0x2e7a   : > { %v4186_v37 = vadd.f32 %v4185_v36, %v4177_v31 }
0x2e7c   : > { %v4187_v38 = vmul.f32 0.7978846, %v4186_v37 }
0x2e7e   : > { %5510 = vtanh.f32 %v4187_v38 }
0x2e88   : > { %v5511_v39 = vpop.eup %5510 }
0x2e89   : > { %v4189_v41 = vadd.f32 1.0, %v5511_v39 }
0x2e8b   : > { %v4190_v44 = vmul.f32 %v4189_v41, %v4182_v40 }
0x2e8d   : > { %v4207_v45 = vpack.c.bf16 %v4190_v44, %v4190_v44 }
0x2e8f   : > { %5291 = vmatmul.mubr.bf16.vlgmr.msra.gmra.mrb[100].mxu1 %v4207_v45 }
0x2f62   : > { %v4295_v49 = vpop.f32.mrb[100].mxu1 }
0x2f63   : > { %v4296_v50 = vadd.f32 %v4738_v48, %v4295_v49  ;;  %v5292_v30 = vpop.f32.mrb[101].mxu1 }
0x2f64   : > { %v4298_v12 = vpop.f32.mrb[102].mxu1 }
0x2f65   : > { %v4301_v52 = vadd.f32 %v4296_v50, %v6596_v43  ;;  %v5293_v53 = vpop.f32.mrb[103].mxu1 }
0x2f67   : > { %v4304_v54 = vsel %vm774_vm9, %v4301_v52, 0.0 }
0x2f68   : > { %4305 = vadd.xlane.f32.xlu0 %v4304_v54 }
0x2ff5   : > { %v4306_v55 = vpop.xlane.xlu0 %4305 }
0x2ff6   : > { %v4307_v10 = vmul.f32 0.03125, %v4306_v55 }
0x2ff8   : > { %v4308_v56 = vsub.f32 %v4301_v52, %v4307_v10 }
0x2ffa   : > { %v4309_v57 = vmul.f32 %v4308_v56, %v4308_v56 }
0x2ffc   : > { %v4310_v18 = vsel %vm774_vm9, %v4309_v57, 0.0 }
0x2ffd   : > { %4311 = vadd.xlane.f32.xlu1 %v4310_v18 }
0x308a   : > { %v4312_v58 = vpop.xlane.xlu1 %4311 }
0x308b   : > { %v4313_v22 = vmul.f32 0.03125, %v4312_v58 }
0x308d   : > { %v4314_v59 = vadd.f32 1e-05, %v4313_v22 }
0x308f   : > { %5512 = vrsqrt.f32 %v4314_v59 }
0x3099   : > { %v5513_v43 = vpop.eup %5512 }
0x309a   : > { %v4316_v60 = vmul.f32 %v5513_v43, %v4308_v56 }
0x309c   : > { %v4323_v19 = vmul.f32 %v4747_v23, %v4316_v60 }
0x309e   : > { %v4330_v24 = vadd.f32 %v4748_v61, %v4323_v19 }
0x30a0   : > { %v4335_v46 = vpack.c.bf16 %v4330_v24, %v4330_v24 }
0x30a2   : > { %5299 = vmatmul.mubr.msk.bf16.vlgmr.msra.gmra.mrb[100].mxu0 %vm774_vm9, %v4335_v46 }
0x3175   : > { %v4392_v62 = vpop.f32.mrb[100].mxu0 }
0x3176   : > { %v4393_v63 = vadd.f32 %v4749_v1, %v4392_v62  ;;  %v5300_v51 = vpop.f32.mrb[101].mxu0 }
0x3177   : > { %v4395_v0 = vpop.f32.mrb[102].mxu0 }
0x3178   : > { %v4399_v42 = vcombine.high %v4393_v63, %v4393_v63  ;;  %v4406_v16 = vrot.slane %v4393_v63, %v6242_v13  ;;  %v5301_v25 = vpop.f32.mrb[103].mxu0 }
0x317a   : > { %v4413_v3 = vrot.slane %v4399_v42, %v6242_v13  ;;  %v4414_v4 = vcombine.high %v4406_v16, %v4406_v16  ;;  %v4422_v5 = vrot.slane %v4406_v16, %v6242_v13 }
0x317c   : > { %v4415_v6 = vcombine.high %v4413_v3, %v4413_v3  ;;  %v4429_v7 = vrot.slane %v4413_v3, %v6242_v13  ;;  %v4436_v8 = vrot.slane %v4414_v4, %v6242_v13  ;;  %v4444_v11 = vcombine.high %v4422_v5, %v4422_v5  ;;  %4456 = vst.msk [vmem:[%s6901_s3 + $0x1] sm:$0x1] %vm2577_vm13, %v4422_v5 }
0x317e   : > { %v4443_v14 = vrot.slane %v4415_v6, %v6242_v13  ;;  %v4445_v17 = vcombine.high %v4429_v7, %v4429_v7  ;;  %v4446_v26 = vcombine.high %v4436_v8, %v4436_v8  ;;  %4457 = vst.msk [vmem:[%s6901_s3 + $0x3] sm:$0x1] %vm2577_vm13, %v4436_v8  ;;  %4458 = vst.msk [vmem:[%s6901_s3 + $0x5] sm:$0x1] %vm2577_vm13, %v4444_v11 }
0x317f   : > { %4460 = vst.msk [vmem:[%s6901_s3 + $0x9] sm:$0x1] %vm2577_vm13, %v4429_v7 }
0x3180   : > { %v4447_v13 = vcombine.high %v4443_v14, %v4443_v14  ;;  %4459 = vst.msk [vmem:[%s6901_s3 + $0x7] sm:$0x1] %vm2577_vm13, %v4446_v26  ;;  %4461 = vst.msk [vmem:[%s6901_s3 + $0xb] sm:$0x1] %vm2577_vm13, %v4443_v14 }
0x3181   : > { %4462 = vst.msk [vmem:[%s6901_s3 + $0xd] sm:$0x1] %vm2577_vm13, %v4445_v17 }
0x3182   : > { %4463 = vst.msk [vmem:[%s6901_s3 + $0xf] sm:$0x1] %vm2577_vm13, %v4447_v13 }
0x3183   : > { %5529 = shalt.err (!%p5526_p3)
}
0x3184   : > { %s5530_s2 = scalar_lea.hbm %s6695_s1, 256  ;;  %s5534_s21 = scalar_lea.hbm %s6905_s4, 512 }
0x3185   : > { %p5531_p4 = scmp.ne.s32.totalorder %s6695_s1, %s5530_s2  ;;  %p5535_p9 = scmp.lt.u32.totalorder %s6695_s1, %s6905_s4 }
0x3186   : > { %p5536_p10 = scmp.lt.u32.totalorder %s5534_s21, %s5530_s2  ;;  %p5538_p12 = scmp.lt.u32.totalorder %s5530_s2, %s6695_s1 }
0x3187   : > { %p5532_p7 = pnand %p5531_p4, %p5748_p5 }
0x3188   : > { %p5537_p11 = por %p5536_p10, %p5535_p9 }
0x3189   : > { %p5533_p8 = pneg %p5532_p7 }
0x318a   : > { %p5539_p13 = por %p5538_p12, %p5537_p11 }
0x318c   : > { %p5540_p0 = pnand %p5539_p13, %p5533_p8 }
0x318e   : > { %5543 = shalt.err (!%p5540_p0)
}
0x318f   : > { %s5598_s25 = smov 32   ;;  %s5599_s3 = smov 2  }
0x3190   : > { %5302 = dma.vmem_to_hbm [thread:$0]  (%p5748_p5), %s6697_s11, 256, %s6695_s1, %s6709_s13, %s5598_s25, %s5598_s25, %s5599_s3  }
0x3191 PF: > { %s6907_s23 = sld [smem:[#allocation8_spill]]  ;;  %s6908_s28 = sld [smem:[#allocation5_spill]] }
0x3197   : > { %p5308_p1 = scmp.ge.s32.totalorder %s6907_s23, 2  ;;  %s4493_s12 = sand.u32 1, %s6908_s28  }
0x3198   : > { %s4494_s26 = scalar_lea.sflag [#allocation3], %s4493_s12 }
0x3199   : > { %p5305_p2 = pnand %p5308_p1, %p5752_p6 }
0x319b   : > { %5561 = dma.done.wait (!%p5305_p2), %s4494_s26, 256  }
0x319c   : > { %5563 = vsyncadd (!%p5305_p2), %s4494_s26, 4294967040  ;;  %s6910_s27 = sld [smem:[#allocation10_spill]]  ;;  %s6911_s2 = sld [smem:[#allocation6_spill]] }
0x319d   : > { %s6912_s25 = sld [smem:[#allocation7_spill]]  ;;  %s6913_s26 = sld [smem:[#allocation11_spill]] }
0x31a2   : > { %p31_p3 = scmp.ge.s32.totalorder %s6910_s27, 4  }
0x31a4   :  { %33 = sbr.rel (!%p31_p3) target bundleno = 19 (0x13), region = 143 }
0x31ab   :  { %4499 = vsyncpa [#allocation3], 1 }
0x31ac   :  { %4501 = vsyncpa [#allocation3 + $0x1], 1 }

</bundles_post_ra>
